<compile_context>
chip_gen: v7x
topology: tpu7x:2x2x1
jax: 0.10.0
libtpu: 0.0.40
codegen_flags: <defaults>
</compile_context>

<pallas_src>
import functools

import jax
import jax.numpy as jnp
from jax import lax
from jax.experimental import pallas as pl
from jax.experimental.pallas import tpu as pltpu

BN_EPS = 1e-5
KSIZE = 5          # all convs are 5x5 with padding=2
PAD = KSIZE // 2
CMAX = 8           # channels padded to 8 everywhere (C_in 3->8, C_out <= 8)


def _round_up(x, m):
    return (x + m - 1) // m * m


# ----------------------------- Pallas kernel --------------------------------
def _fused_kernel(x_ref, w_ref, sh_ref, m1_ref, m3_ref, s2_ref, s4_ref, o_ref,
                  *, row1, row2):
    """All four Conv+BN(eval)+ReLU blocks for one image, VMEM-resident.

    x_ref : (1, 8, L1)   image, channels padded 3->8, spatial zero-padded by 2,
                         flattened row-major into the first (H+4)*(W+4) lanes
    w_ref : (4, 8, 200)  per-layer conv weights with BN scale folded in,
                         columns ordered (i*5 + j)*8 + c_in
    sh_ref: (4, 8, 1)    per-layer fused BN shift (beta + scale*(bias - mean))
    m1_ref: (1, L1)      interior mask of the (H+4)x(W+4) flat layout
    m3_ref: (1, L2)      interior mask of the (H/2+4)x(W/2+4) flat layout
    s2_ref: (L1, L2)     0/1 stride-2 gather: layer-2 conv -> layer-3 input layout
    s4_ref: (L2, P4)     0/1 stride-2 gather: layer-4 conv -> final flat 4x4
    o_ref : (1, 3, P4)
    """

    def conv_bn_relu(a, layer, row_w):
        # a: (8, L) activation in zero-padded flat coords.  The conv result is
        # valid at every interior position; border / tail positions are cleaned
        # up by the caller (interior mask or the stride-2 selection matmul).
        c, l = a.shape
        margin = 2 * row_w + 2                      # largest |tap offset|
        zpad = jnp.zeros((c, margin), a.dtype)
        a_ext = jnp.concatenate([zpad, a, zpad], axis=1)
        taps = []
        for i in range(KSIZE):
            for j in range(KSIZE):
                d = (i - PAD) * row_w + (j - PAD)
                taps.append(a_ext[:, margin + d: margin + d + l])
        patches = jnp.concatenate(taps, axis=0)     # (25*8, L): in-kernel im2col
        acc = jnp.dot(w_ref[layer], patches,
                      preferred_element_type=jnp.float32)        # (8, L)
        return jnp.maximum(acc + sh_ref[layer], 0.0)             # BN shift + ReLU

    a = x_ref[0]                                             # (8, L1)
    a = conv_bn_relu(a, 0, row1) * m1_ref[...]               # block1, stride 1
    a = jnp.dot(conv_bn_relu(a, 1, row1), s2_ref[...],       # block2, stride 2
                preferred_element_type=jnp.float32)          # (8, L2)
    a = conv_bn_relu(a, 2, row2) * m3_ref[...]               # block3, stride 1
    a = jnp.dot(conv_bn_relu(a, 3, row2), s4_ref[...],       # block4, stride 2
                preferred_element_type=jnp.float32)          # (8, P4)
    o_ref[0] = a[:3, :]                                      # drop padded channels


# ------------------------------- JAX glue ------------------------------------
def _interior_mask(h, w, lanes):
    m = jnp.zeros((h + 2 * PAD, w + 2 * PAD), jnp.float32)
    m = m.at[PAD:PAD + h, PAD:PAD + w].set(1.0).reshape(1, -1)
    return jnp.pad(m, ((0, 0), (0, lanes - m.shape[1])))


def _stride2_select(h, w, lanes_in, q_of_yx, lanes_out):
    """0/1 matrix S with S[p, q] = 1 where p is the padded-flat index of input
    position (2y, 2x) and q = q_of_yx(y, x) is its index in the target layout."""
    yy, xx = jnp.meshgrid(jnp.arange(h // 2), jnp.arange(w // 2), indexing="ij")
    p = (2 * yy + PAD) * (w + 2 * PAD) + (2 * xx + PAD)
    q = q_of_yx(yy, xx)
    s = jnp.zeros((lanes_in, lanes_out), jnp.float32)
    return s.at[p.ravel(), q.ravel()].set(1.0)


def _fold_bn(params):
    """Fold eval-mode BN into the conv weight and a per-channel shift; pad to 8 ch."""
    w, b, gamma, beta, mean, var = params            # w: (C_out, C_in, 5, 5) OIHW
    c_out, c_in, kh, kw = w.shape
    scale = gamma / jnp.sqrt(var + BN_EPS)
    shift = beta + scale * (b - mean)
    wm = jnp.transpose(w * scale[:, None, None, None], (0, 2, 3, 1))  # (Co,5,5,Ci)
    wm = jnp.pad(wm, ((0, CMAX - c_out), (0, 0), (0, 0), (0, CMAX - c_in)))
    wm = wm.reshape(CMAX, kh * kw * CMAX)                              # (8, 200)
    return (wm.astype(jnp.float32),
            jnp.pad(shift, (0, CMAX - c_out)).astype(jnp.float32))


def preprocess_block(x_nchw, all_params):
    """PreprocessBlock forward. x_nchw: (N, 3, H, W) -> (N, 3, H//4, W//4)."""
    n, c_in, h, w = x_nchw.shape
    assert c_in == 3 and h % 4 == 0 and w % 4 == 0
    h2, w2, h4, w4 = h // 2, w // 2, h // 4, w // 4
    row1, row2 = w + 2 * PAD, w2 + 2 * PAD                 # padded-row strides
    lp1, lp2 = (h + 2 * PAD) * row1, (h2 + 2 * PAD) * row2  # padded-flat lengths
    l1, l2 = _round_up(lp1, 128), _round_up(lp2, 128)       # lane-aligned buffers
    p4 = h4 * w4

    folded = [_fold_bn(p) for p in all_params]
    w_all = jnp.stack([f[0] for f in folded])               # (4, 8, 200)
    sh_all = jnp.stack([f[1] for f in folded])[..., None]   # (4, 8, 1)

    # Embed the input: pad channels 3->8, spatial pad=2, flatten, pad lanes.
    xe = jnp.pad(x_nchw, ((0, 0), (0, CMAX - c_in), (PAD, PAD), (PAD, PAD)))
    a0 = jnp.pad(xe.reshape(n, CMAX, lp1), ((0, 0), (0, 0), (0, l1 - lp1)))
    a0 = a0.astype(jnp.float32)

    m1 = _interior_mask(h, w, l1)
    m3 = _interior_mask(h2, w2, l2)
    s2 = _stride2_select(h, w, l1, lambda y, x: (y + PAD) * row2 + (x + PAD), l2)
    s4 = _stride2_select(h2, w2, l2, lambda y, x: y * w4 + x, p4)

    kernel = functools.partial(_fused_kernel, row1=row1, row2=row2)
    out = pl.pallas_call(
        kernel,
        out_shape=jax.ShapeDtypeStruct((n, 3, p4), jnp.float32),
        grid_spec=pltpu.PrefetchScalarGridSpec(
            num_scalar_prefetch=0,
            grid=(n,),
            in_specs=[
                pl.BlockSpec((1, CMAX, l1), lambda i: (i, 0, 0)),
                pl.BlockSpec((4, CMAX, KSIZE * KSIZE * CMAX), lambda i: (0, 0, 0)),
                pl.BlockSpec((4, CMAX, 1), lambda i: (0, 0, 0)),
                pl.BlockSpec((1, l1), lambda i: (0, 0)),
                pl.BlockSpec((1, l2), lambda i: (0, 0)),
                pl.BlockSpec((l1, l2), lambda i: (0, 0)),
                pl.BlockSpec((l2, p4), lambda i: (0, 0)),
            ],
            out_specs=pl.BlockSpec((1, 3, p4), lambda i: (i, 0, 0)),
        ),
        compiler_params=pltpu.CompilerParams(
            dimension_semantics=("parallel",)),
    )(a0, w_all, sh_all, m1, m3, s2, s4)
    return out.reshape(n, 3, h4, w4)


# -------------------------- deterministic parameters --------------------------
def make_params(key):
    specs = [(3, 8), (8, 8), (8, 8), (8, 3)]  # (in_channels, out_channels)
    params = []
    for i, (cin, cout) in enumerate(specs):
        ks = jax.random.split(jax.random.fold_in(key, i), 6)
        w = 0.1 * jax.random.normal(ks[0], (cout, cin, 5, 5), jnp.float32)
        b = 0.1 * jax.random.normal(ks[1], (cout,), jnp.float32)
        gamma = 1.0 + 0.1 * jax.random.normal(ks[2], (cout,), jnp.float32)
        beta = 0.1 * jax.random.normal(ks[3], (cout,), jnp.float32)
        mean = 0.1 * jax.random.normal(ks[4], (cout,), jnp.float32)
        var = jnp.abs(jax.random.normal(ks[5], (cout,), jnp.float32)) + 0.5
        params.append((w, b, gamma, beta, mean, var))
    return params


# ------------------------------ pure-JAX reference ----------------------------
def reference(x_nchw, all_params):
    x = x_nchw
    strides = (1, 2, 1, 2)
    for (w, b, gamma, beta, mean, var), s in zip(all_params, strides):
        y = lax.conv_general_dilated(
            x, w, window_strides=(s, s), padding=((PAD, PAD), (PAD, PAD)),
            dimension_numbers=("NCHW", "OIHW", "NCHW"),
            precision=lax.Precision.HIGHEST)
        y = y + b[None, :, None, None]
        y = (y - mean[None, :, None, None]) / jnp.sqrt(var[None, :, None, None] + BN_EPS)
        y = y * gamma[None, :, None, None] + beta[None, :, None, None]
        x = jnp.maximum(y, 0.0)
    return x


if __name__ == "__main__":
    key = jax.random.PRNGKey(0)
    k_x, k_p = jax.random.split(key)
    x = jax.random.normal(k_x, (2, 3, 16, 16), jnp.float32)   # NCHW, like PyTorch
    params = make_params(k_p)

    out = jax.jit(preprocess_block)(x, params)
    out = jax.block_until_ready(out)

    ref = reference(x, params)
    assert out.shape == (2, 3, 4, 4), out.shape
    err = float(jnp.max(jnp.abs(out - ref)))
    # Both sides accumulate in f32; the tolerance only absorbs possible MXU
    # pass-count / rounding differences vs XLA's conv.  Structural bugs
    # (indexing, BN fold, stride sampling) would show up as O(0.1+) errors.
    assert err < 2e-2, f"max abs err {err}"
    print("KERNEL_OK")
</pallas_src>

<mosaic_0001>
module attributes {stable_mosaic.version = 11 : i64} {
  func.func @_fused_kernel(%arg0: i32, %arg1: memref<1x8x512xf32, #tpu.memory_space<vmem>>, %arg2: memref<4x8x200xf32, #tpu.memory_space<vmem>>, %arg3: memref<4x8x1xf32, #tpu.memory_space<vmem>>, %arg4: memref<1x512xf32, #tpu.memory_space<vmem>>, %arg5: memref<1x256xf32, #tpu.memory_space<vmem>>, %arg6: memref<512x256xf32, #tpu.memory_space<vmem>>, %arg7: memref<256x16xf32, #tpu.memory_space<vmem>>, %arg8: memref<1x3x16xf32, #tpu.memory_space<vmem>>) attributes {dimension_semantics = [#tpu.dimension_semantics<parallel>], iteration_bounds = array<i64: 2>, scalar_prefetch = 0 : i64, scratch_operands = 0 : i64, tpu.core_type = #tpu.core_type<tc>, window_params = [{transform_indices = @transform_0, window_bounds = array<i64: 1, 8, 512>}, {pipeline_mode = #tpu.pipeline_mode<synchronous>, transform_indices = @transform_1, window_bounds = array<i64: 4, 8, 200>}, {pipeline_mode = #tpu.pipeline_mode<synchronous>, transform_indices = @transform_2, window_bounds = array<i64: 4, 8, 1>}, {pipeline_mode = #tpu.pipeline_mode<synchronous>, transform_indices = @transform_3, window_bounds = array<i64: 1, 512>}, {pipeline_mode = #tpu.pipeline_mode<synchronous>, transform_indices = @transform_4, window_bounds = array<i64: 1, 256>}, {pipeline_mode = #tpu.pipeline_mode<synchronous>, transform_indices = @transform_5, window_bounds = array<i64: 512, 256>}, {pipeline_mode = #tpu.pipeline_mode<synchronous>, transform_indices = @transform_6, window_bounds = array<i64: 256, 16>}, {transform_indices = @transform_7, window_bounds = array<i64: 1, 3, 16>}]} {
    %c0 = arith.constant 0 : index
    %c0_0 = arith.constant 0 : index
    %c0_1 = arith.constant 0 : index
    %0 = vector.load %arg1[%c0, %c0_0, %c0_1] : memref<1x8x512xf32, #tpu.memory_space<vmem>>, vector<1x8x512xf32>
    %1 = vector.shape_cast %0 : vector<1x8x512xf32> to vector<8x512xf32>
    %cst = arith.constant 0.000000e+00 : f32
    %2 = vector.broadcast %cst : f32 to vector<8x42xf32>
    %3 = tpu.concatenate %2, %1, %2 in 1 : vector<8x42xf32>, vector<8x512xf32>, vector<8x42xf32> -> vector<8x596xf32>
    %4 = vector.extract_strided_slice %3 {offsets = [0, 0], sizes = [8, 512], strides = [1, 1]} : vector<8x596xf32> to vector<8x512xf32>
    %5 = vector.extract_strided_slice %3 {offsets = [0, 1], sizes = [8, 512], strides = [1, 1]} : vector<8x596xf32> to vector<8x512xf32>
    %6 = vector.extract_strided_slice %3 {offsets = [0, 2], sizes = [8, 512], strides = [1, 1]} : vector<8x596xf32> to vector<8x512xf32>
    %7 = vector.extract_strided_slice %3 {offsets = [0, 3], sizes = [8, 512], strides = [1, 1]} : vector<8x596xf32> to vector<8x512xf32>
    %8 = vector.extract_strided_slice %3 {offsets = [0, 4], sizes = [8, 512], strides = [1, 1]} : vector<8x596xf32> to vector<8x512xf32>
    %9 = vector.extract_strided_slice %3 {offsets = [0, 20], sizes = [8, 512], strides = [1, 1]} : vector<8x596xf32> to vector<8x512xf32>
    %10 = vector.extract_strided_slice %3 {offsets = [0, 21], sizes = [8, 512], strides = [1, 1]} : vector<8x596xf32> to vector<8x512xf32>
    %11 = vector.extract_strided_slice %3 {offsets = [0, 22], sizes = [8, 512], strides = [1, 1]} : vector<8x596xf32> to vector<8x512xf32>
    %12 = vector.extract_strided_slice %3 {offsets = [0, 23], sizes = [8, 512], strides = [1, 1]} : vector<8x596xf32> to vector<8x512xf32>
    %13 = vector.extract_strided_slice %3 {offsets = [0, 24], sizes = [8, 512], strides = [1, 1]} : vector<8x596xf32> to vector<8x512xf32>
    %14 = vector.extract_strided_slice %3 {offsets = [0, 40], sizes = [8, 512], strides = [1, 1]} : vector<8x596xf32> to vector<8x512xf32>
    %15 = vector.extract_strided_slice %3 {offsets = [0, 41], sizes = [8, 512], strides = [1, 1]} : vector<8x596xf32> to vector<8x512xf32>
    %16 = vector.extract_strided_slice %3 {offsets = [0, 42], sizes = [8, 512], strides = [1, 1]} : vector<8x596xf32> to vector<8x512xf32>
    %17 = vector.extract_strided_slice %3 {offsets = [0, 43], sizes = [8, 512], strides = [1, 1]} : vector<8x596xf32> to vector<8x512xf32>
    %18 = vector.extract_strided_slice %3 {offsets = [0, 44], sizes = [8, 512], strides = [1, 1]} : vector<8x596xf32> to vector<8x512xf32>
    %19 = vector.extract_strided_slice %3 {offsets = [0, 60], sizes = [8, 512], strides = [1, 1]} : vector<8x596xf32> to vector<8x512xf32>
    %20 = vector.extract_strided_slice %3 {offsets = [0, 61], sizes = [8, 512], strides = [1, 1]} : vector<8x596xf32> to vector<8x512xf32>
    %21 = vector.extract_strided_slice %3 {offsets = [0, 62], sizes = [8, 512], strides = [1, 1]} : vector<8x596xf32> to vector<8x512xf32>
    %22 = vector.extract_strided_slice %3 {offsets = [0, 63], sizes = [8, 512], strides = [1, 1]} : vector<8x596xf32> to vector<8x512xf32>
    %23 = vector.extract_strided_slice %3 {offsets = [0, 64], sizes = [8, 512], strides = [1, 1]} : vector<8x596xf32> to vector<8x512xf32>
    %24 = vector.extract_strided_slice %3 {offsets = [0, 80], sizes = [8, 512], strides = [1, 1]} : vector<8x596xf32> to vector<8x512xf32>
    %25 = vector.extract_strided_slice %3 {offsets = [0, 81], sizes = [8, 512], strides = [1, 1]} : vector<8x596xf32> to vector<8x512xf32>
    %26 = vector.extract_strided_slice %3 {offsets = [0, 82], sizes = [8, 512], strides = [1, 1]} : vector<8x596xf32> to vector<8x512xf32>
    %27 = vector.extract_strided_slice %3 {offsets = [0, 83], sizes = [8, 512], strides = [1, 1]} : vector<8x596xf32> to vector<8x512xf32>
    %28 = vector.extract_strided_slice %3 {offsets = [0, 84], sizes = [8, 512], strides = [1, 1]} : vector<8x596xf32> to vector<8x512xf32>
    %29 = tpu.concatenate %4, %5, %6, %7, %8, %9, %10, %11, %12, %13, %14, %15, %16, %17, %18, %19 in 0 : vector<8x512xf32>, vector<8x512xf32>, vector<8x512xf32>, vector<8x512xf32>, vector<8x512xf32>, vector<8x512xf32>, vector<8x512xf32>, vector<8x512xf32>, vector<8x512xf32>, vector<8x512xf32>, vector<8x512xf32>, vector<8x512xf32>, vector<8x512xf32>, vector<8x512xf32>, vector<8x512xf32>, vector<8x512xf32> -> vector<128x512xf32>
    %30 = tpu.concatenate %20, %21, %22, %23, %24, %25, %26, %27, %28 in 0 : vector<8x512xf32>, vector<8x512xf32>, vector<8x512xf32>, vector<8x512xf32>, vector<8x512xf32>, vector<8x512xf32>, vector<8x512xf32>, vector<8x512xf32>, vector<8x512xf32> -> vector<72x512xf32>
    %31 = tpu.concatenate %29, %30 in 0 : vector<128x512xf32>, vector<72x512xf32> -> vector<200x512xf32>
    %c0_2 = arith.constant 0 : index
    %c0_3 = arith.constant 0 : index
    %c0_4 = arith.constant 0 : index
    %32 = vector.load %arg2[%c0_2, %c0_3, %c0_4] : memref<4x8x200xf32, #tpu.memory_space<vmem>>, vector<1x8x200xf32>
    %33 = vector.shape_cast %32 : vector<1x8x200xf32> to vector<8x200xf32>
    %cst_5 = arith.constant dense<0.000000e+00> : vector<8x512xf32>
    %34 = tpu.matmul %33, %31, %cst_5 {dimension_numbers = #tpu.dot_dimension_numbers<[1], [0], [0], [1], [0, 0, 1, 1], [], []>} : vector<8x200xf32>, vector<200x512xf32>, vector<8x512xf32> -> vector<8x512xf32>
    %c0_6 = arith.constant 0 : index
    %c0_7 = arith.constant 0 : index
    %c0_8 = arith.constant 0 : index
    %35 = vector.load %arg3[%c0_6, %c0_7, %c0_8] : memref<4x8x1xf32, #tpu.memory_space<vmem>>, vector<1x8x1xf32>
    %36 = vector.shape_cast %35 : vector<1x8x1xf32> to vector<8x1xf32>
    %37 = vector.broadcast %36 : vector<8x1xf32> to vector<8x512xf32>
    %38 = arith.addf %34, %37 : vector<8x512xf32>
    %cst_9 = arith.constant 0.000000e+00 : f32
    %39 = vector.broadcast %cst_9 : f32 to vector<8x512xf32>
    %40 = arith.maximumf %38, %39 : vector<8x512xf32>
    %c0_10 = arith.constant 0 : index
    %c0_11 = arith.constant 0 : index
    %41 = vector.load %arg4[%c0_10, %c0_11] : memref<1x512xf32, #tpu.memory_space<vmem>>, vector<1x512xf32>
    %42 = vector.broadcast %41 : vector<1x512xf32> to vector<8x512xf32>
    %43 = arith.mulf %40, %42 : vector<8x512xf32>
    %cst_12 = arith.constant 0.000000e+00 : f32
    %44 = vector.broadcast %cst_12 : f32 to vector<8x42xf32>
    %45 = tpu.concatenate %44, %43, %44 in 1 : vector<8x42xf32>, vector<8x512xf32>, vector<8x42xf32> -> vector<8x596xf32>
    %46 = vector.extract_strided_slice %45 {offsets = [0, 0], sizes = [8, 512], strides = [1, 1]} : vector<8x596xf32> to vector<8x512xf32>
    %47 = vector.extract_strided_slice %45 {offsets = [0, 1], sizes = [8, 512], strides = [1, 1]} : vector<8x596xf32> to vector<8x512xf32>
    %48 = vector.extract_strided_slice %45 {offsets = [0, 2], sizes = [8, 512], strides = [1, 1]} : vector<8x596xf32> to vector<8x512xf32>
    %49 = vector.extract_strided_slice %45 {offsets = [0, 3], sizes = [8, 512], strides = [1, 1]} : vector<8x596xf32> to vector<8x512xf32>
    %50 = vector.extract_strided_slice %45 {offsets = [0, 4], sizes = [8, 512], strides = [1, 1]} : vector<8x596xf32> to vector<8x512xf32>
    %51 = vector.extract_strided_slice %45 {offsets = [0, 20], sizes = [8, 512], strides = [1, 1]} : vector<8x596xf32> to vector<8x512xf32>
    %52 = vector.extract_strided_slice %45 {offsets = [0, 21], sizes = [8, 512], strides = [1, 1]} : vector<8x596xf32> to vector<8x512xf32>
    %53 = vector.extract_strided_slice %45 {offsets = [0, 22], sizes = [8, 512], strides = [1, 1]} : vector<8x596xf32> to vector<8x512xf32>
    %54 = vector.extract_strided_slice %45 {offsets = [0, 23], sizes = [8, 512], strides = [1, 1]} : vector<8x596xf32> to vector<8x512xf32>
    %55 = vector.extract_strided_slice %45 {offsets = [0, 24], sizes = [8, 512], strides = [1, 1]} : vector<8x596xf32> to vector<8x512xf32>
    %56 = vector.extract_strided_slice %45 {offsets = [0, 40], sizes = [8, 512], strides = [1, 1]} : vector<8x596xf32> to vector<8x512xf32>
    %57 = vector.extract_strided_slice %45 {offsets = [0, 41], sizes = [8, 512], strides = [1, 1]} : vector<8x596xf32> to vector<8x512xf32>
    %58 = vector.extract_strided_slice %45 {offsets = [0, 42], sizes = [8, 512], strides = [1, 1]} : vector<8x596xf32> to vector<8x512xf32>
    %59 = vector.extract_strided_slice %45 {offsets = [0, 43], sizes = [8, 512], strides = [1, 1]} : vector<8x596xf32> to vector<8x512xf32>
    %60 = vector.extract_strided_slice %45 {offsets = [0, 44], sizes = [8, 512], strides = [1, 1]} : vector<8x596xf32> to vector<8x512xf32>
    %61 = vector.extract_strided_slice %45 {offsets = [0, 60], sizes = [8, 512], strides = [1, 1]} : vector<8x596xf32> to vector<8x512xf32>
    %62 = vector.extract_strided_slice %45 {offsets = [0, 61], sizes = [8, 512], strides = [1, 1]} : vector<8x596xf32> to vector<8x512xf32>
    %63 = vector.extract_strided_slice %45 {offsets = [0, 62], sizes = [8, 512], strides = [1, 1]} : vector<8x596xf32> to vector<8x512xf32>
    %64 = vector.extract_strided_slice %45 {offsets = [0, 63], sizes = [8, 512], strides = [1, 1]} : vector<8x596xf32> to vector<8x512xf32>
    %65 = vector.extract_strided_slice %45 {offsets = [0, 64], sizes = [8, 512], strides = [1, 1]} : vector<8x596xf32> to vector<8x512xf32>
    %66 = vector.extract_strided_slice %45 {offsets = [0, 80], sizes = [8, 512], strides = [1, 1]} : vector<8x596xf32> to vector<8x512xf32>
    %67 = vector.extract_strided_slice %45 {offsets = [0, 81], sizes = [8, 512], strides = [1, 1]} : vector<8x596xf32> to vector<8x512xf32>
    %68 = vector.extract_strided_slice %45 {offsets = [0, 82], sizes = [8, 512], strides = [1, 1]} : vector<8x596xf32> to vector<8x512xf32>
    %69 = vector.extract_strided_slice %45 {offsets = [0, 83], sizes = [8, 512], strides = [1, 1]} : vector<8x596xf32> to vector<8x512xf32>
    %70 = vector.extract_strided_slice %45 {offsets = [0, 84], sizes = [8, 512], strides = [1, 1]} : vector<8x596xf32> to vector<8x512xf32>
    %71 = tpu.concatenate %46, %47, %48, %49, %50, %51, %52, %53, %54, %55, %56, %57, %58, %59, %60, %61 in 0 : vector<8x512xf32>, vector<8x512xf32>, vector<8x512xf32>, vector<8x512xf32>, vector<8x512xf32>, vector<8x512xf32>, vector<8x512xf32>, vector<8x512xf32>, vector<8x512xf32>, vector<8x512xf32>, vector<8x512xf32>, vector<8x512xf32>, vector<8x512xf32>, vector<8x512xf32>, vector<8x512xf32>, vector<8x512xf32> -> vector<128x512xf32>
    %72 = tpu.concatenate %62, %63, %64, %65, %66, %67, %68, %69, %70 in 0 : vector<8x512xf32>, vector<8x512xf32>, vector<8x512xf32>, vector<8x512xf32>, vector<8x512xf32>, vector<8x512xf32>, vector<8x512xf32>, vector<8x512xf32>, vector<8x512xf32> -> vector<72x512xf32>
    %73 = tpu.concatenate %71, %72 in 0 : vector<128x512xf32>, vector<72x512xf32> -> vector<200x512xf32>
    %c1 = arith.constant 1 : index
    %c0_13 = arith.constant 0 : index
    %c0_14 = arith.constant 0 : index
    %74 = vector.load %arg2[%c1, %c0_13, %c0_14] : memref<4x8x200xf32, #tpu.memory_space<vmem>>, vector<1x8x200xf32>
    %75 = vector.shape_cast %74 : vector<1x8x200xf32> to vector<8x200xf32>
    %cst_15 = arith.constant dense<0.000000e+00> : vector<8x512xf32>
    %76 = tpu.matmul %75, %73, %cst_15 {dimension_numbers = #tpu.dot_dimension_numbers<[1], [0], [0], [1], [0, 0, 1, 1], [], []>} : vector<8x200xf32>, vector<200x512xf32>, vector<8x512xf32> -> vector<8x512xf32>
    %c1_16 = arith.constant 1 : index
    %c0_17 = arith.constant 0 : index
    %c0_18 = arith.constant 0 : index
    %77 = vector.load %arg3[%c1_16, %c0_17, %c0_18] : memref<4x8x1xf32, #tpu.memory_space<vmem>>, vector<1x8x1xf32>
    %78 = vector.shape_cast %77 : vector<1x8x1xf32> to vector<8x1xf32>
    %79 = vector.broadcast %78 : vector<8x1xf32> to vector<8x512xf32>
    %80 = arith.addf %76, %79 : vector<8x512xf32>
    %cst_19 = arith.constant 0.000000e+00 : f32
    %81 = vector.broadcast %cst_19 : f32 to vector<8x512xf32>
    %82 = arith.maximumf %80, %81 : vector<8x512xf32>
    %c0_20 = arith.constant 0 : index
    %c0_21 = arith.constant 0 : index
    %83 = vector.load %arg6[%c0_20, %c0_21] : memref<512x256xf32, #tpu.memory_space<vmem>>, vector<512x256xf32>
    %cst_22 = arith.constant dense<0.000000e+00> : vector<8x256xf32>
    %84 = tpu.matmul %82, %83, %cst_22 {dimension_numbers = #tpu.dot_dimension_numbers<[1], [0], [0], [1], [0, 0, 1, 1], [], []>} : vector<8x512xf32>, vector<512x256xf32>, vector<8x256xf32> -> vector<8x256xf32>
    %cst_23 = arith.constant 0.000000e+00 : f32
    %85 = vector.broadcast %cst_23 : f32 to vector<8x26xf32>
    %86 = tpu.concatenate %85, %84, %85 in 1 : vector<8x26xf32>, vector<8x256xf32>, vector<8x26xf32> -> vector<8x308xf32>
    %87 = vector.extract_strided_slice %86 {offsets = [0, 0], sizes = [8, 256], strides = [1, 1]} : vector<8x308xf32> to vector<8x256xf32>
    %88 = vector.extract_strided_slice %86 {offsets = [0, 1], sizes = [8, 256], strides = [1, 1]} : vector<8x308xf32> to vector<8x256xf32>
    %89 = vector.extract_strided_slice %86 {offsets = [0, 2], sizes = [8, 256], strides = [1, 1]} : vector<8x308xf32> to vector<8x256xf32>
    %90 = vector.extract_strided_slice %86 {offsets = [0, 3], sizes = [8, 256], strides = [1, 1]} : vector<8x308xf32> to vector<8x256xf32>
    %91 = vector.extract_strided_slice %86 {offsets = [0, 4], sizes = [8, 256], strides = [1, 1]} : vector<8x308xf32> to vector<8x256xf32>
    %92 = vector.extract_strided_slice %86 {offsets = [0, 12], sizes = [8, 256], strides = [1, 1]} : vector<8x308xf32> to vector<8x256xf32>
    %93 = vector.extract_strided_slice %86 {offsets = [0, 13], sizes = [8, 256], strides = [1, 1]} : vector<8x308xf32> to vector<8x256xf32>
    %94 = vector.extract_strided_slice %86 {offsets = [0, 14], sizes = [8, 256], strides = [1, 1]} : vector<8x308xf32> to vector<8x256xf32>
    %95 = vector.extract_strided_slice %86 {offsets = [0, 15], sizes = [8, 256], strides = [1, 1]} : vector<8x308xf32> to vector<8x256xf32>
    %96 = vector.extract_strided_slice %86 {offsets = [0, 16], sizes = [8, 256], strides = [1, 1]} : vector<8x308xf32> to vector<8x256xf32>
    %97 = vector.extract_strided_slice %86 {offsets = [0, 24], sizes = [8, 256], strides = [1, 1]} : vector<8x308xf32> to vector<8x256xf32>
    %98 = vector.extract_strided_slice %86 {offsets = [0, 25], sizes = [8, 256], strides = [1, 1]} : vector<8x308xf32> to vector<8x256xf32>
    %99 = vector.extract_strided_slice %86 {offsets = [0, 26], sizes = [8, 256], strides = [1, 1]} : vector<8x308xf32> to vector<8x256xf32>
    %100 = vector.extract_strided_slice %86 {offsets = [0, 27], sizes = [8, 256], strides = [1, 1]} : vector<8x308xf32> to vector<8x256xf32>
    %101 = vector.extract_strided_slice %86 {offsets = [0, 28], sizes = [8, 256], strides = [1, 1]} : vector<8x308xf32> to vector<8x256xf32>
    %102 = vector.extract_strided_slice %86 {offsets = [0, 36], sizes = [8, 256], strides = [1, 1]} : vector<8x308xf32> to vector<8x256xf32>
    %103 = vector.extract_strided_slice %86 {offsets = [0, 37], sizes = [8, 256], strides = [1, 1]} : vector<8x308xf32> to vector<8x256xf32>
    %104 = vector.extract_strided_slice %86 {offsets = [0, 38], sizes = [8, 256], strides = [1, 1]} : vector<8x308xf32> to vector<8x256xf32>
    %105 = vector.extract_strided_slice %86 {offsets = [0, 39], sizes = [8, 256], strides = [1, 1]} : vector<8x308xf32> to vector<8x256xf32>
    %106 = vector.extract_strided_slice %86 {offsets = [0, 40], sizes = [8, 256], strides = [1, 1]} : vector<8x308xf32> to vector<8x256xf32>
    %107 = vector.extract_strided_slice %86 {offsets = [0, 48], sizes = [8, 256], strides = [1, 1]} : vector<8x308xf32> to vector<8x256xf32>
    %108 = vector.extract_strided_slice %86 {offsets = [0, 49], sizes = [8, 256], strides = [1, 1]} : vector<8x308xf32> to vector<8x256xf32>
    %109 = vector.extract_strided_slice %86 {offsets = [0, 50], sizes = [8, 256], strides = [1, 1]} : vector<8x308xf32> to vector<8x256xf32>
    %110 = vector.extract_strided_slice %86 {offsets = [0, 51], sizes = [8, 256], strides = [1, 1]} : vector<8x308xf32> to vector<8x256xf32>
    %111 = vector.extract_strided_slice %86 {offsets = [0, 52], sizes = [8, 256], strides = [1, 1]} : vector<8x308xf32> to vector<8x256xf32>
    %112 = tpu.concatenate %87, %88, %89, %90, %91, %92, %93, %94, %95, %96, %97, %98, %99, %100, %101, %102 in 0 : vector<8x256xf32>, vector<8x256xf32>, vector<8x256xf32>, vector<8x256xf32>, vector<8x256xf32>, vector<8x256xf32>, vector<8x256xf32>, vector<8x256xf32>, vector<8x256xf32>, vector<8x256xf32>, vector<8x256xf32>, vector<8x256xf32>, vector<8x256xf32>, vector<8x256xf32>, vector<8x256xf32>, vector<8x256xf32> -> vector<128x256xf32>
    %113 = tpu.concatenate %103, %104, %105, %106, %107, %108, %109, %110, %111 in 0 : vector<8x256xf32>, vector<8x256xf32>, vector<8x256xf32>, vector<8x256xf32>, vector<8x256xf32>, vector<8x256xf32>, vector<8x256xf32>, vector<8x256xf32>, vector<8x256xf32> -> vector<72x256xf32>
    %114 = tpu.concatenate %112, %113 in 0 : vector<128x256xf32>, vector<72x256xf32> -> vector<200x256xf32>
    %c2 = arith.constant 2 : index
    %c0_24 = arith.constant 0 : index
    %c0_25 = arith.constant 0 : index
    %115 = vector.load %arg2[%c2, %c0_24, %c0_25] : memref<4x8x200xf32, #tpu.memory_space<vmem>>, vector<1x8x200xf32>
    %116 = vector.shape_cast %115 : vector<1x8x200xf32> to vector<8x200xf32>
    %cst_26 = arith.constant dense<0.000000e+00> : vector<8x256xf32>
    %117 = tpu.matmul %116, %114, %cst_26 {dimension_numbers = #tpu.dot_dimension_numbers<[1], [0], [0], [1], [0, 0, 1, 1], [], []>} : vector<8x200xf32>, vector<200x256xf32>, vector<8x256xf32> -> vector<8x256xf32>
    %c2_27 = arith.constant 2 : index
    %c0_28 = arith.constant 0 : index
    %c0_29 = arith.constant 0 : index
    %118 = vector.load %arg3[%c2_27, %c0_28, %c0_29] : memref<4x8x1xf32, #tpu.memory_space<vmem>>, vector<1x8x1xf32>
    %119 = vector.shape_cast %118 : vector<1x8x1xf32> to vector<8x1xf32>
    %120 = vector.broadcast %119 : vector<8x1xf32> to vector<8x256xf32>
    %121 = arith.addf %117, %120 : vector<8x256xf32>
    %cst_30 = arith.constant 0.000000e+00 : f32
    %122 = vector.broadcast %cst_30 : f32 to vector<8x256xf32>
    %123 = arith.maximumf %121, %122 : vector<8x256xf32>
    %c0_31 = arith.constant 0 : index
    %c0_32 = arith.constant 0 : index
    %124 = vector.load %arg5[%c0_31, %c0_32] : memref<1x256xf32, #tpu.memory_space<vmem>>, vector<1x256xf32>
    %125 = vector.broadcast %124 : vector<1x256xf32> to vector<8x256xf32>
    %126 = arith.mulf %123, %125 : vector<8x256xf32>
    %cst_33 = arith.constant 0.000000e+00 : f32
    %127 = vector.broadcast %cst_33 : f32 to vector<8x26xf32>
    %128 = tpu.concatenate %127, %126, %127 in 1 : vector<8x26xf32>, vector<8x256xf32>, vector<8x26xf32> -> vector<8x308xf32>
    %129 = vector.extract_strided_slice %128 {offsets = [0, 0], sizes = [8, 256], strides = [1, 1]} : vector<8x308xf32> to vector<8x256xf32>
    %130 = vector.extract_strided_slice %128 {offsets = [0, 1], sizes = [8, 256], strides = [1, 1]} : vector<8x308xf32> to vector<8x256xf32>
    %131 = vector.extract_strided_slice %128 {offsets = [0, 2], sizes = [8, 256], strides = [1, 1]} : vector<8x308xf32> to vector<8x256xf32>
    %132 = vector.extract_strided_slice %128 {offsets = [0, 3], sizes = [8, 256], strides = [1, 1]} : vector<8x308xf32> to vector<8x256xf32>
    %133 = vector.extract_strided_slice %128 {offsets = [0, 4], sizes = [8, 256], strides = [1, 1]} : vector<8x308xf32> to vector<8x256xf32>
    %134 = vector.extract_strided_slice %128 {offsets = [0, 12], sizes = [8, 256], strides = [1, 1]} : vector<8x308xf32> to vector<8x256xf32>
    %135 = vector.extract_strided_slice %128 {offsets = [0, 13], sizes = [8, 256], strides = [1, 1]} : vector<8x308xf32> to vector<8x256xf32>
    %136 = vector.extract_strided_slice %128 {offsets = [0, 14], sizes = [8, 256], strides = [1, 1]} : vector<8x308xf32> to vector<8x256xf32>
    %137 = vector.extract_strided_slice %128 {offsets = [0, 15], sizes = [8, 256], strides = [1, 1]} : vector<8x308xf32> to vector<8x256xf32>
    %138 = vector.extract_strided_slice %128 {offsets = [0, 16], sizes = [8, 256], strides = [1, 1]} : vector<8x308xf32> to vector<8x256xf32>
    %139 = vector.extract_strided_slice %128 {offsets = [0, 24], sizes = [8, 256], strides = [1, 1]} : vector<8x308xf32> to vector<8x256xf32>
    %140 = vector.extract_strided_slice %128 {offsets = [0, 25], sizes = [8, 256], strides = [1, 1]} : vector<8x308xf32> to vector<8x256xf32>
    %141 = vector.extract_strided_slice %128 {offsets = [0, 26], sizes = [8, 256], strides = [1, 1]} : vector<8x308xf32> to vector<8x256xf32>
    %142 = vector.extract_strided_slice %128 {offsets = [0, 27], sizes = [8, 256], strides = [1, 1]} : vector<8x308xf32> to vector<8x256xf32>
    %143 = vector.extract_strided_slice %128 {offsets = [0, 28], sizes = [8, 256], strides = [1, 1]} : vector<8x308xf32> to vector<8x256xf32>
    %144 = vector.extract_strided_slice %128 {offsets = [0, 36], sizes = [8, 256], strides = [1, 1]} : vector<8x308xf32> to vector<8x256xf32>
    %145 = vector.extract_strided_slice %128 {offsets = [0, 37], sizes = [8, 256], strides = [1, 1]} : vector<8x308xf32> to vector<8x256xf32>
    %146 = vector.extract_strided_slice %128 {offsets = [0, 38], sizes = [8, 256], strides = [1, 1]} : vector<8x308xf32> to vector<8x256xf32>
    %147 = vector.extract_strided_slice %128 {offsets = [0, 39], sizes = [8, 256], strides = [1, 1]} : vector<8x308xf32> to vector<8x256xf32>
    %148 = vector.extract_strided_slice %128 {offsets = [0, 40], sizes = [8, 256], strides = [1, 1]} : vector<8x308xf32> to vector<8x256xf32>
    %149 = vector.extract_strided_slice %128 {offsets = [0, 48], sizes = [8, 256], strides = [1, 1]} : vector<8x308xf32> to vector<8x256xf32>
    %150 = vector.extract_strided_slice %128 {offsets = [0, 49], sizes = [8, 256], strides = [1, 1]} : vector<8x308xf32> to vector<8x256xf32>
    %151 = vector.extract_strided_slice %128 {offsets = [0, 50], sizes = [8, 256], strides = [1, 1]} : vector<8x308xf32> to vector<8x256xf32>
    %152 = vector.extract_strided_slice %128 {offsets = [0, 51], sizes = [8, 256], strides = [1, 1]} : vector<8x308xf32> to vector<8x256xf32>
    %153 = vector.extract_strided_slice %128 {offsets = [0, 52], sizes = [8, 256], strides = [1, 1]} : vector<8x308xf32> to vector<8x256xf32>
    %154 = tpu.concatenate %129, %130, %131, %132, %133, %134, %135, %136, %137, %138, %139, %140, %141, %142, %143, %144 in 0 : vector<8x256xf32>, vector<8x256xf32>, vector<8x256xf32>, vector<8x256xf32>, vector<8x256xf32>, vector<8x256xf32>, vector<8x256xf32>, vector<8x256xf32>, vector<8x256xf32>, vector<8x256xf32>, vector<8x256xf32>, vector<8x256xf32>, vector<8x256xf32>, vector<8x256xf32>, vector<8x256xf32>, vector<8x256xf32> -> vector<128x256xf32>
    %155 = tpu.concatenate %145, %146, %147, %148, %149, %150, %151, %152, %153 in 0 : vector<8x256xf32>, vector<8x256xf32>, vector<8x256xf32>, vector<8x256xf32>, vector<8x256xf32>, vector<8x256xf32>, vector<8x256xf32>, vector<8x256xf32>, vector<8x256xf32> -> vector<72x256xf32>
    %156 = tpu.concatenate %154, %155 in 0 : vector<128x256xf32>, vector<72x256xf32> -> vector<200x256xf32>
    %c3 = arith.constant 3 : index
    %c0_34 = arith.constant 0 : index
    %c0_35 = arith.constant 0 : index
    %157 = vector.load %arg2[%c3, %c0_34, %c0_35] : memref<4x8x200xf32, #tpu.memory_space<vmem>>, vector<1x8x200xf32>
    %158 = vector.shape_cast %157 : vector<1x8x200xf32> to vector<8x200xf32>
    %cst_36 = arith.constant dense<0.000000e+00> : vector<8x256xf32>
    %159 = tpu.matmul %158, %156, %cst_36 {dimension_numbers = #tpu.dot_dimension_numbers<[1], [0], [0], [1], [0, 0, 1, 1], [], []>} : vector<8x200xf32>, vector<200x256xf32>, vector<8x256xf32> -> vector<8x256xf32>
    %c3_37 = arith.constant 3 : index
    %c0_38 = arith.constant 0 : index
    %c0_39 = arith.constant 0 : index
    %160 = vector.load %arg3[%c3_37, %c0_38, %c0_39] : memref<4x8x1xf32, #tpu.memory_space<vmem>>, vector<1x8x1xf32>
    %161 = vector.shape_cast %160 : vector<1x8x1xf32> to vector<8x1xf32>
    %162 = vector.broadcast %161 : vector<8x1xf32> to vector<8x256xf32>
    %163 = arith.addf %159, %162 : vector<8x256xf32>
    %cst_40 = arith.constant 0.000000e+00 : f32
    %164 = vector.broadcast %cst_40 : f32 to vector<8x256xf32>
    %165 = arith.maximumf %163, %164 : vector<8x256xf32>
    %c0_41 = arith.constant 0 : index
    %c0_42 = arith.constant 0 : index
    %166 = vector.load %arg7[%c0_41, %c0_42] : memref<256x16xf32, #tpu.memory_space<vmem>>, vector<256x16xf32>
    %cst_43 = arith.constant dense<0.000000e+00> : vector<8x16xf32>
    %167 = tpu.matmul %165, %166, %cst_43 {dimension_numbers = #tpu.dot_dimension_numbers<[1], [0], [0], [1], [0, 0, 1, 1], [], []>} : vector<8x256xf32>, vector<256x16xf32>, vector<8x16xf32> -> vector<8x16xf32>
    %168 = vector.extract_strided_slice %167 {offsets = [0, 0], sizes = [3, 16], strides = [1, 1]} : vector<8x16xf32> to vector<3x16xf32>
    %c0_44 = arith.constant 0 : index
    %c0_45 = arith.constant 0 : index
    %c0_46 = arith.constant 0 : index
    %169 = vector.load %arg8[%c0_44, %c0_45, %c0_46] : memref<1x3x16xf32, #tpu.memory_space<vmem>>, vector<1x3x16xf32>
    %170 = vector.shape_cast %169 : vector<1x3x16xf32> to vector<3x16xf32>
    %171 = vector.shape_cast %168 : vector<3x16xf32> to vector<1x3x16xf32>
    tpu.vector_store %arg8[%c0_44, %c0_45, %c0_46], %171 {strides = array<i32>} : memref<1x3x16xf32, #tpu.memory_space<vmem>>, vector<1x3x16xf32>,
    return
  }
  func.func @transform_0(%arg0: i32) -> (i32, i32, i32) {
    %c0_i32 = arith.constant 0 : i32
    %c0_i32_0 = arith.constant 0 : i32
    %c0_i32_1 = arith.constant 0 : i32
    return %arg0, %c0_i32, %c0_i32_0 : i32, i32, i32
  }
  func.func @transform_1(%arg0: i32) -> (i32, i32, i32) {
    %c0_i32 = arith.constant 0 : i32
    %c0_i32_0 = arith.constant 0 : i32
    %c0_i32_1 = arith.constant 0 : i32
    %c0_i32_2 = arith.constant 0 : i32
    return %c0_i32, %c0_i32_0, %c0_i32_1 : i32, i32, i32
  }
  func.func @transform_2(%arg0: i32) -> (i32, i32, i32) {
    %c0_i32 = arith.constant 0 : i32
    %c0_i32_0 = arith.constant 0 : i32
    %c0_i32_1 = arith.constant 0 : i32
    %c0_i32_2 = arith.constant 0 : i32
    return %c0_i32, %c0_i32_0, %c0_i32_1 : i32, i32, i32
  }
  func.func @transform_3(%arg0: i32) -> (i32, i32) {
    %c0_i32 = arith.constant 0 : i32
    %c0_i32_0 = arith.constant 0 : i32
    %c0_i32_1 = arith.constant 0 : i32
    return %c0_i32, %c0_i32_0 : i32, i32
  }
  func.func @transform_4(%arg0: i32) -> (i32, i32) {
    %c0_i32 = arith.constant 0 : i32
    %c0_i32_0 = arith.constant 0 : i32
    %c0_i32_1 = arith.constant 0 : i32
    return %c0_i32, %c0_i32_0 : i32, i32
  }
  func.func @transform_5(%arg0: i32) -> (i32, i32) {
    %c0_i32 = arith.constant 0 : i32
    %c0_i32_0 = arith.constant 0 : i32
    %c0_i32_1 = arith.constant 0 : i32
    return %c0_i32, %c0_i32_0 : i32, i32
  }
  func.func @transform_6(%arg0: i32) -> (i32, i32) {
    %c0_i32 = arith.constant 0 : i32
    %c0_i32_0 = arith.constant 0 : i32
    %c0_i32_1 = arith.constant 0 : i32
    return %c0_i32, %c0_i32_0 : i32, i32
  }
  func.func @transform_7(%arg0: i32) -> (i32, i32, i32) {
    %c0_i32 = arith.constant 0 : i32
    %c0_i32_0 = arith.constant 0 : i32
    %c0_i32_1 = arith.constant 0 : i32
    return %arg0, %c0_i32, %c0_i32_0 : i32, i32, i32
  }
}

</mosaic_0001>

<bundles_post_ra>
// kernel: preprocess_block.1
= control target key start
LH: loop header
LB: loop body
LE: loop exit
PB: predicated region body
PF: predicated region fallthrough
CT: control target
= control target key end

     0   :  { %s4149_s24 = smov 0   ;;  %s5862_s0 = inlined_call_operand.vmem [shape: f32[2,8,512], index: 0, kind: input, shape index: {}]   ;;  %s5863_s1 = inlined_call_operand.vmem [shape: f32[4,8,200], index: 1, kind: input, shape index: {}]   ;;  %s5864_s2 = inlined_call_operand.vmem [shape: f32[4,8,1], index: 2, kind: input, shape index: {}]   ;;  %s5865_s3 = inlined_call_operand.vmem [shape: f32[1,512], index: 3, kind: input, shape index: {}]   ;;  %s5866_s4 = inlined_call_operand.vmem [shape: f32[1,256], index: 4, kind: input, shape index: {}]   ;;  %s5867_s5 = inlined_call_operand.vmem [shape: f32[512,256], index: 5, kind: input, shape index: {}]   ;;  %s5868_s6 = inlined_call_operand.vmem [shape: f32[256,16], index: 6, kind: input, shape index: {}]   ;;  %s5869_s7 = inlined_call_operand.vmem [shape: f32[2,3,16], index: 7, kind: output, shape index: {}]  }
   0x1 LB: > { %s2732_s25 = sadd.s32 4294967295, %s4074_s24   ;;  %p2736_p0 = scmp.ge.s32.totalorder %s4074_s24, 1  ;;  %s4074_s24 = sphi %s4149_s24, %s17_s24  }
   0x2   : > { %p237_p1 = scmp.lt.s32.totalorder %s4074_s24, 3 }
   0x4   : > { %p238_p2 = pnand %p2736_p0, %p237_p1 }
   0x5   : > { %p268_p3 = scmp.lt.s32.totalorder (!%p238_p2), %s2732_s25, 1  ;;  %s4076_s30 = smov (!%p238_p2), 42   ;;  %vm293_vm0 = vcmask (!%p238_p2), 343040   ;;  %vm316_vm1 = vcmask (!%p238_p2), 1039360   ;;  %vm5870_vm3 = vmmov (!%p238_p2), 1   ;;  %vm335_vm5 = vcmask (!%p238_p2), 1031168  }
   0x6   : > { %241 = sbr.rel (%p238_p2) target bundleno = 3046 (0xbe6), region = 48  ;;  %s4077_s8 = smov (!%p238_p2), 127   ;;  %vm2740_vm2 = vmneg (!%p238_p2), %vm293_vm0  ;;  %vm354_vm6 = vcmask (!%p238_p2), 1022976   ;;  %vm601_vm7 = vcmask (!%p238_p2), 891904   ;;  %vm392_vm8 = vcmask (!%p238_p2), 883712   ;;  %vm411_vm9 = vcmask (!%p238_p2), 875520  }
   0x7   : > { %s4078_s9 = smov (!%p238_p2), 126   ;;  %s4079_s10 = smov (!%p238_p2), 125   ;;  %vm4303_vm4 = vmpackc.low (!%p238_p2), %vm5870_vm3, %vm2740_vm2  ;;  %vm430_vm10 = vcmask (!%p238_p2), 867328   ;;  %vm5877_vm11 = vcmask (!%p238_p2), 588800   ;;  %vm449_vm12 = vcmask (!%p238_p2), 859136   ;;  %vm373_vm13 = vcmask (!%p238_p2), 1014784  }
   0x8   : > { %s4080_s11 = smov (!%p238_p2), 108   ;;  %s4081_s12 = smov (!%p238_p2), 109   ;;  %vm5871_vm14 = vcmask (!%p238_p2), 850944   ;;  %vm5873_vm15 = vcmask (!%p238_p2), 719872   ;;  %vm5872_vm2 = vcmask (!%p238_p2), 711680   ;;  %vm525_vm3 = vcmask (!%p238_p2), 703488  }
   0x9   : > { %s4082_s13 = smov (!%p238_p2), 107   ;;  %s4083_s14 = smov (!%p238_p2), 106  }
   0xa   : > { %s4084_s15 = smov (!%p238_p2), 105   ;;  %s4085_s16 = smov (!%p238_p2), 124  }
   0xb   : > { %s4086_s17 = smov (!%p238_p2), 104   ;;  %s4087_s18 = smov (!%p238_p2), 88  }
   0xc   : > { %s4088_s19 = smov (!%p238_p2), 87   ;;  %s4089_s20 = smov (!%p238_p2), 86  }
   0xd   : > { %s5917_s25 = smov (!%p268_p3, %s2732_s25), 1  ;;  %s4090_s21 = smov 85  }
   0xe   : > { %s2765_s26 = sshll.u32 %s5917_s25, 5  ;;  %s4091_s22 = smov 84  }
   0xf   : > { %s272_s29 = scalar_lea.vmem %s5862_s0, %s2765_s26  ;;  %s4092_s23 = smov 68  }
  0x10   : > { %v279_v0 = vld [vmem:[%s272_s29 + $0x10] sm:$0xff]  ;;  %v277_v1 = vld [vmem:[%s272_s29] sm:$0xff]  ;;  %v280_v2 = vld [vmem:[%s272_s29 + $0x18] sm:$0xff]  ;;  %s5875_s26 = smov 67   ;;  %s4102_s28 = smov 102  }
  0x11   : > { %289 = vrot.lane.b32.xlu1 %v279_v0, %s4076_s30  ;;  %285 = vrot.lane.b32.xlu0 %v277_v1, %s4076_s30  ;;  %v278_v3 = vld [vmem:[%s272_s29 + $0x8] sm:$0xff]  ;;  %s4103_s29 = smov 100   ;;  %s4104_s27 = smov 112  }
  0x15   : > { %291 = vrot.lane.b32.xlu1 %v280_v2, %s4076_s30  ;;  %287 = vrot.lane.b32.xlu0 %v278_v3, %s4076_s30 }
  0x83   : > { %v290_v4 = vpop.permute.xlu1 %289  ;;  %v4167_v5 = vpop.permute.xlu0 %285 }
  0x84   : > { %v4193_v14 = vsel %vm293_vm0, 0.0, %v4167_v5 }
  0x87   : > { %v292_v6 = vpop.permute.xlu1 %291  ;;  %v288_v7 = vpop.permute.xlu0 %287 }
  0x88   : > { %v4170_v8 = vsel %vm293_vm0, %v290_v4, %v292_v6  ;;  %v303_v9 = vsel %vm293_vm0, %v292_v6, 0.0  ;;  %v4175_v10 = vsel %vm293_vm0, %v4167_v5, %v288_v7  ;;  %v4178_v11 = vsel %vm293_vm0, %v288_v7, %v290_v4 }
  0x89   : > { %v4181_v12 = vpack.i.bf16 %v303_v9, %v4170_v8  ;;  %v4185_v13 = vpack.i.bf16 %v4178_v11, %v4175_v10 }
  0x8b   : > { %3302 = vrot.lane.b32.xlu1 %v4181_v12, %s4077_s8  ;;  %3297 = vrot.lane.b32.xlu0 %v4185_v13, %s4077_s8 }
  0x8f   : > { %3307 = vrot.lane.b32.xlu1 %v4185_v13, %s4078_s9  ;;  %306 = vrot.lane.b32.xlu0 %v4193_v14, %s4077_s8 }
  0x93   : > { %3317 = vrot.lane.b32.xlu1 %v4185_v13, %s4079_s10  ;;  %3312 = vrot.lane.b32.xlu0 %v4181_v12, %s4078_s9 }
  0x97   : > { %325 = vrot.lane.b32.xlu1 %v4193_v14, %s4078_s9  ;;  %3322 = vrot.lane.b32.xlu0 %v4181_v12, %s4079_s10 }
  0x9b   : > { %3327 = vrot.lane.b32.xlu1 %v4185_v13, %s4080_s11  ;;  %344 = vrot.lane.b32.xlu0 %v4193_v14, %s4079_s10 }
  0x9f   : > { %3337 = vrot.lane.b32.xlu1 %v4185_v13, %s4081_s12  ;;  %3332 = vrot.lane.b32.xlu0 %v4181_v12, %s4080_s11 }
  0xa3   : > { %382 = vrot.lane.b32.xlu1 %v4193_v14, %s4080_s11  ;;  %3342 = vrot.lane.b32.xlu0 %v4181_v12, %s4081_s12 }
  0xa7   : > { %3347 = vrot.lane.b32.xlu1 %v4185_v13, %s4082_s13  ;;  %591 = vrot.lane.b32.xlu0 %v4193_v14, %s4081_s12 }
  0xab   : > { %3357 = vrot.lane.b32.xlu1 %v4185_v13, %s4083_s14  ;;  %3352 = vrot.lane.b32.xlu0 %v4181_v12, %s4082_s13 }
  0xaf   : > { %401 = vrot.lane.b32.xlu1 %v4193_v14, %s4082_s13  ;;  %3362 = vrot.lane.b32.xlu0 %v4181_v12, %s4083_s14 }
  0xb3   : > { %441 = vrot.lane.b32.xlu1 %v4175_v10, %s4084_s15  ;;  %420 = vrot.lane.b32.xlu0 %v4193_v14, %s4083_s14 }
  0xb7   : > { %445 = vrot.lane.b32.xlu1 %v4170_v8, %s4084_s15  ;;  %443 = vrot.lane.b32.xlu0 %v4178_v11, %s4084_s15 }
  0xbb   : > { %439 = vrot.lane.b32.xlu1 %v4193_v14, %s4084_s15  ;;  %447 = vrot.lane.b32.xlu0 %v303_v9, %s4084_s15 }
  0xbf   : > { %3372 = vrot.lane.b32.xlu1 %v4181_v12, %s4085_s16  ;;  %3367 = vrot.lane.b32.xlu0 %v4185_v13, %s4085_s16 }
  0xc3   : > { %3377 = vrot.lane.b32.xlu1 %v4185_v13, %s4086_s17  ;;  %363 = vrot.lane.b32.xlu0 %v4193_v14, %s4085_s16 }
  0xc7   : > { %458 = vrot.lane.b32.xlu1 %v4193_v14, %s4086_s17  ;;  %3382 = vrot.lane.b32.xlu0 %v4181_v12, %s4086_s17 }
  0xcb   : > { %3392 = vrot.lane.b32.xlu1 %v4181_v12, %s4087_s18  ;;  %3387 = vrot.lane.b32.xlu0 %v4185_v13, %s4087_s18 }
  0xcf   : > { %3402 = vrot.lane.b32.xlu1 %v4181_v12, %s4088_s19  ;;  %3397 = vrot.lane.b32.xlu0 %v4185_v13, %s4088_s19 }
  0xd3   : > { %496 = vrot.lane.b32.xlu1 %v4193_v14, %s4088_s19  ;;  %477 = vrot.lane.b32.xlu0 %v4193_v14, %s4087_s18 }
  0xd7   : > { %3412 = vrot.lane.b32.xlu1 %v4181_v12, %s4089_s20  ;;  %3407 = vrot.lane.b32.xlu0 %v4185_v13, %s4089_s20 }
  0xdb   : > { %3422 = vrot.lane.b32.xlu1 %v4181_v12, %s4090_s21  ;;  %3417 = vrot.lane.b32.xlu0 %v4185_v13, %s4090_s21 }
  0xdf   : > { %534 = vrot.lane.b32.xlu1 %v4193_v14, %s4090_s21  ;;  %515 = vrot.lane.b32.xlu0 %v4193_v14, %s4089_s20 }
  0xe3   : > { %3432 = vrot.lane.b32.xlu1 %v4181_v12, %s4091_s22  ;;  %3427 = vrot.lane.b32.xlu0 %v4185_v13, %s4091_s22 }
  0xe7   : > { %3442 = vrot.lane.b32.xlu1 %v4181_v12, %s4092_s23  ;;  %3437 = vrot.lane.b32.xlu0 %v4185_v13, %s4092_s23 }
  0xeb   : > { %572 = vrot.lane.b32.xlu1 %v4193_v14, %s4092_s23  ;;  %553 = vrot.lane.b32.xlu0 %v4193_v14, %s4091_s22 }
  0xef   : > { %3452 = vrot.lane.b32.xlu1 %v4181_v12, %s5875_s26  ;;  %3447 = vrot.lane.b32.xlu0 %v4185_v13, %s5875_s26 }
  0xfd   : > { %v3303_v15 = vpop.permute.xlu1 %3302  ;;  %v3298_v16 = vpop.permute.xlu0 %3297 }
  0xfe   : > { %v3305_v17 = vunpack.i.h.bf16 %v3303_v15  ;;  %v3304_v18 = vunpack.i.l.bf16 %v3303_v15  ;;  %v3300_v19 = vunpack.i.h.bf16 %v3298_v16  ;;  %v3299_v20 = vunpack.i.l.bf16 %v3298_v16 }
 0x100   : > { %v320_v21 = vsel %vm316_vm1, %v3304_v18, %v3305_v17  ;;  %v318_v22 = vsel %vm316_vm1, %v3299_v20, %v3300_v19  ;;  %v319_v23 = vsel %vm316_vm1, %v3300_v19, %v3304_v18 }
 0x101   : > { %v3308_v24 = vpop.permute.xlu1 %3307  ;;  %v307_v25 = vpop.permute.xlu0 %306  ;;  %v3461_v26 = vpack.i.bf16 %v3305_v17, %v320_v21  ;;  %v2850_v27 = vpack.c.bf16 %v320_v21, %v4170_v8  ;;  %v3456_v28 = vpack.i.bf16 %v319_v23, %v318_v22  ;;  %v2801_v29 = vpack.c.bf16 %v318_v22, %v4175_v10 }
 0x102   : > { %v317_v30 = vsel %vm316_vm1, %v307_v25, %v3299_v20  ;;  %v2852_v31 = vpack.c.bf16 %v319_v23, %v4178_v11  ;;  %v3310_v34 = vunpack.i.h.bf16 %v3308_v24  ;;  %v3309_v35 = vunpack.i.l.bf16 %v3308_v24 }
 0x103   : > { %v2803_v33 = vpack.c.bf16 %v317_v30, %v4167_v5  ;;  %2851 = vmatprep.subr.bf16.mxu1 %v2850_v27  ;;  %3462 = vrot.lane.b32.xlu1 %v3461_v26, %s5875_s26  ;;  %v3466_v36 = vpack.i.bf16 %v317_v30, %v4193_v14 }
 0x104   : > { %3457 = vrot.lane.b32.xlu0 %v3456_v28, %s5875_s26  ;;  %2802 = vmatprep.subr.bf16.mxu0 %v2801_v29  ;;  %v337_v43 = vsel %vm335_vm5, %v3309_v35, %v3310_v34 }
 0x105   : > { %2853 = vmatpush1.bf16.msra.mxu1 %v2852_v31  ;;  %v3318_v37 = vpop.permute.xlu1 %3317  ;;  %v3313_v38 = vpop.permute.xlu0 %3312  ;;  %2805 = vmatpush1.bf16.msk.msra.mxu0 %vm4303_vm4, %v2803_v33 }
 0x106   : > { %v3320_v39 = vunpack.i.h.bf16 %v3318_v37  ;;  %v3319_v40 = vunpack.i.l.bf16 %v3318_v37  ;;  %v3315_v41 = vunpack.i.h.bf16 %v3313_v38  ;;  %v3314_v42 = vunpack.i.l.bf16 %v3313_v38 }
 0x108   : > { %3467 = vrot.lane.b32.xlu0 %v3466_v36, %s5875_s26  ;;  %v338_v44 = vsel %vm335_vm5, %v3310_v34, %v3314_v42  ;;  %v339_v45 = vsel %vm335_vm5, %v3314_v42, %v3315_v41  ;;  %v356_v46 = vsel %vm354_vm6, %v3319_v40, %v3320_v39 }
 0x109   : > { %v326_v47 = vpop.permute.xlu1 %325  ;;  %v3323_v48 = vpop.permute.xlu0 %3322  ;;  %v3471_v49 = vpack.i.bf16 %v338_v44, %v337_v43  ;;  %v3476_v50 = vpack.i.bf16 %v3315_v41, %v339_v45  ;;  %v2806_v51 = vpack.c.bf16 %v356_v46, %v337_v43 }
 0x10a   : > { %v3325_v52 = vunpack.i.h.bf16 %v3323_v48  ;;  %v3324_v53 = vunpack.i.l.bf16 %v3323_v48  ;;  %v336_v62 = vsel %vm335_vm5, %v326_v47, %v3309_v35 }
 0x10b   : > { %3472 = vrot.lane.b32.xlu1 %v3471_v49, %s5875_s26  ;;  %2807 = vmatprep.subr.bf16.mxu0 %v2806_v51 }
 0x10c   : > { %3477 = vrot.lane.b32.xlu0 %v3476_v50, %s5875_s26  ;;  %v357_v54 = vsel %vm354_vm6, %v3320_v39, %v3324_v53  ;;  %v358_v55 = vsel %vm354_vm6, %v3324_v53, %v3325_v52 }
 0x10d   : > { %v3328_v56 = vpop.permute.xlu1 %3327  ;;  %v345_v57 = vpop.permute.xlu0 %344  ;;  %v3481_v58 = vpack.i.bf16 %v357_v54, %v356_v46  ;;  %v2854_v59 = vpack.c.bf16 %v358_v55, %v339_v45  ;;  %v3486_v60 = vpack.i.bf16 %v3325_v52, %v358_v55  ;;  %v2856_v61 = vpack.c.bf16 %v357_v54, %v338_v44 }
 0x10e   : > { %v355_v63 = vsel %vm354_vm6, %v345_v57, %v3319_v40  ;;  %v3330_v12 = vunpack.i.h.bf16 %v3328_v56  ;;  %v3329_v13 = vunpack.i.l.bf16 %v3328_v56 }
 0x10f   : > { %v2808_v0 = vpack.c.bf16 %v355_v63, %v336_v62  ;;  %3482 = vrot.lane.b32.xlu1 %v3481_v58, %s5875_s26  ;;  %2855 = vmatprep.subr.bf16.mxu1 %v2854_v59  ;;  %v3491_v1 = vpack.i.bf16 %v355_v63, %v336_v62  ;;  %v770_v59 = vld [vmem:[%s5863_s1 + $0x8] sm:$0xff]  ;;  %v4095_v62 = vmov 0  }
 0x110   : > { %3487 = vrot.lane.b32.xlu0 %v3486_v60, %s5875_s26  ;;  %2857 = vmatpush1.bf16.msra.mxu1 %v2856_v61  ;;  %v4339_v25 = vsel %vm392_vm8, %v3329_v13, %v3330_v12 }
 0x111   : > { %v3338_v2 = vpop.permute.xlu1 %3337  ;;  %v3333_v3 = vpop.permute.xlu0 %3332  ;;  %2809 = vmatpush1.bf16.msra.mxu0 %v2808_v0  ;;  %2743 = vmatprep.mubr.msk.f32.mxu1 %vm5877_vm11, %v770_v59 }
 0x112   : > { %v3340_v4 = vunpack.i.h.bf16 %v3338_v2  ;;  %v3339_v5 = vunpack.i.l.bf16 %v3338_v2  ;;  %v3335_v8 = vunpack.i.h.bf16 %v3333_v3  ;;  %v3334_v9 = vunpack.i.l.bf16 %v3333_v3  ;;  %2742 = vmatprep.mubr.msk.f32.mxu0 %vm5877_vm11, %v770_v59  ;;  %3546 = vset.pattern.permute.xlu1 %v4095_v62 }
 0x113   : > { %3492 = vrot.lane.b32.xlu1 %v3491_v1, %s5875_s26  ;;  %3932 = vset.pattern.permute.xlu0 %v4095_v62 }
 0x114   : > { %v603_v15 = vsel %vm601_vm7, %v3339_v5, %v3340_v4  ;;  %v4331_v21 = vsel %vm392_vm8, %v3334_v9, %v3335_v8  ;;  %v4334_v22 = vsel %vm392_vm8, %v3330_v12, %v3334_v9 }
 0x115   : > { %v383_v6 = vpop.permute.xlu1 %382  ;;  %v3343_v7 = vpop.permute.xlu0 %3342  ;;  %v3511_v28 = vpack.i.bf16 %v3335_v8, %v4331_v21  ;;  %v3506_v29 = vpack.i.bf16 %v4334_v22, %v4339_v25 }
 0x116   : > { %v3345_v10 = vunpack.i.h.bf16 %v3343_v7  ;;  %v3344_v11 = vunpack.i.l.bf16 %v3343_v7  ;;  %v4346_v34 = vsel %vm392_vm8, %v383_v6, %v3329_v13 }
 0x118   : > { %v605_v14 = vsel %vm601_vm7, %v3344_v11, %v3345_v10  ;;  %v604_v16 = vsel %vm601_vm7, %v3340_v4, %v3344_v11 }
 0x119   : > { %v3348_v17 = vpop.permute.xlu1 %3347  ;;  %v592_v18 = vpop.permute.xlu0 %591  ;;  %v3501_v19 = vpack.i.bf16 %v3345_v10, %v605_v14  ;;  %v3496_v20 = vpack.i.bf16 %v604_v16, %v603_v15 }
 0x11a   : > { %v3350_v23 = vunpack.i.h.bf16 %v3348_v17  ;;  %v3349_v24 = vunpack.i.l.bf16 %v3348_v17  ;;  %v602_v30 = vsel %vm601_vm7, %v592_v18, %v3339_v5 }
 0x11b   : > { %3502 = vrot.lane.b32.xlu1 %v3501_v19, %s5875_s26  ;;  %3497 = vrot.lane.b32.xlu0 %v3496_v20, %s5875_s26  ;;  %v3516_v39 = vpack.i.bf16 %v4346_v34, %v602_v30 }
 0x11c   : > { %v4351_v37 = vsel %vm411_vm9, %v3349_v24, %v3350_v23 }
 0x11d   : > { %v3358_v26 = vpop.permute.xlu1 %3357  ;;  %v3353_v27 = vpop.permute.xlu0 %3352 }
 0x11e   : > { %v3355_v31 = vunpack.i.h.bf16 %v3353_v27  ;;  %v3354_v33 = vunpack.i.l.bf16 %v3353_v27  ;;  %v3360_v35 = vunpack.i.h.bf16 %v3358_v26  ;;  %v3359_v36 = vunpack.i.l.bf16 %v3358_v26 }
 0x11f   : > { %3512 = vrot.lane.b32.xlu1 %v3511_v28, %s5875_s26  ;;  %3507 = vrot.lane.b32.xlu0 %v3506_v29, %s5875_s26 }
 0x120   : > { %v4354_v38 = vsel %vm411_vm9, %v3350_v23, %v3354_v33  ;;  %v4360_v45 = vsel %vm411_vm9, %v3354_v33, %v3355_v31  ;;  %v4365_v46 = vsel %vm430_vm10, %v3359_v36, %v3360_v35 }
 0x121   : > { %v402_v40 = vpop.permute.xlu1 %401  ;;  %v3363_v41 = vpop.permute.xlu0 %3362  ;;  %v3521_v42 = vpack.i.bf16 %v4354_v38, %v4351_v37  ;;  %v3526_v51 = vpack.i.bf16 %v3355_v31, %v4360_v45 }
 0x122   : > { %v3365_v43 = vunpack.i.h.bf16 %v3363_v41  ;;  %v3364_v44 = vunpack.i.l.bf16 %v3363_v41  ;;  %v4380_v54 = vsel %vm411_vm9, %v402_v40, %v3349_v24 }
 0x123   : > { %3522 = vrot.lane.b32.xlu1 %v3521_v42, %s5875_s26  ;;  %3517 = vrot.lane.b32.xlu0 %v3516_v39, %s5875_s26 }
 0x124   : > { %v4368_v47 = vsel %vm430_vm10, %v3360_v35, %v3364_v44  ;;  %v434_v53 = vsel %vm430_vm10, %v3364_v44, %v3365_v43 }
 0x125   : > { %v442_v48 = vpop.permute.xlu1 %441  ;;  %v421_v49 = vpop.permute.xlu0 %420  ;;  %v3531_v50 = vpack.i.bf16 %v4368_v47, %v4365_v46  ;;  %v3536_v58 = vpack.i.bf16 %v3365_v43, %v434_v53  ;;  %v2862_v23 = vpack.c.bf16 %v434_v53, %v4360_v45  ;;  %v2864_v29 = vpack.c.bf16 %v4368_v47, %v4354_v38 }
 0x126   : > { %v4374_v52 = vsel %vm430_vm10, %v421_v49, %v3359_v36 }
 0x127   : > { %3532 = vrot.lane.b32.xlu1 %v3531_v50, %s5875_s26  ;;  %3527 = vrot.lane.b32.xlu0 %v3526_v51, %s5875_s26  ;;  %v3541_v55 = vpack.i.bf16 %v4374_v52, %v4380_v54  ;;  %v2816_v30 = vpack.c.bf16 %v4374_v52, %v4380_v54 }
 0x129   : > { %v446_v56 = vpop.permute.xlu1 %445  ;;  %v444_v57 = vpop.permute.xlu0 %443 }
 0x12a   : > { %v4392_v63 = vsel %vm449_vm12, %v444_v57, %v446_v56  ;;  %v451_v0 = vsel %vm449_vm12, %v442_v48, %v444_v57 }
 0x12b   : > { %3542 = vrot.lane.b32.xlu1 %v3541_v55, %s5875_s26  ;;  %3537 = vrot.lane.b32.xlu0 %v3536_v58, %s5875_s26 }
 0x12d   : > { %v440_v60 = vpop.permute.xlu1 %439  ;;  %v448_v61 = vpop.permute.xlu0 %447 }
 0x12e   : > { %v453_v3 = vsel %vm449_vm12, %v446_v56, %v448_v61  ;;  %v450_v19 = vsel %vm449_vm12, %v440_v60, %v442_v48 }
 0x12f   : > { %690 = vrot.lane.b32.xlu1 %v4392_v63, %s5875_s26  ;;  %688 = vrot.lane.b32.xlu0 %v451_v0, %s5875_s26 }
 0x131   : > { %v3373_v1 = vpop.permute.xlu1 %3372  ;;  %v3368_v2 = vpop.permute.xlu0 %3367 }
 0x132   : > { %v3375_v4 = vunpack.i.h.bf16 %v3373_v1  ;;  %v3374_v5 = vunpack.i.l.bf16 %v3373_v1  ;;  %v3370_v6 = vunpack.i.h.bf16 %v3368_v2  ;;  %v3369_v7 = vunpack.i.l.bf16 %v3368_v2 }
 0x133   : > { %694 = vrot.lane.b32.xlu1 %v448_v61, %s5875_s26  ;;  %692 = vrot.lane.b32.xlu0 %v453_v3, %s5875_s26 }
 0x134   : > { %v377_v8 = vsel %vm373_vm13, %v3374_v5, %v3375_v4  ;;  %v375_v9 = vsel %vm373_vm13, %v3369_v7, %v3370_v6  ;;  %v376_v10 = vsel %vm373_vm13, %v3370_v6, %v3374_v5 }
 0x135   : > { %v3378_v11 = vpop.permute.xlu1 %3377  ;;  %v364_v12 = vpop.permute.xlu0 %363  ;;  %v2858_v13 = vpack.c.bf16 %v4331_v21, %v377_v8  ;;  %v2810_v14 = vpack.c.bf16 %v4339_v25, %v375_v9  ;;  %v2860_v15 = vpack.c.bf16 %v4334_v22, %v376_v10  ;;  %v771_v21 = vld [vmem:[%s5864_s2] sm:$0xff]  ;;  %v2814_v22 = vpack.c.bf16 %v4365_v46, %v4351_v37 }
 0x136   : > { %v3380_v16 = vunpack.i.h.bf16 %v3378_v11  ;;  %v3379_v17 = vunpack.i.l.bf16 %v3378_v11  ;;  %v374_v18 = vsel %vm373_vm13, %v364_v12, %v3369_v7 }
 0x137   : > { %v2812_v20 = vpack.c.bf16 %v4346_v34, %v374_v18  ;;  %2859 = vmatprep.subr.bf16.mxu1 %v2858_v13  ;;  %686 = vrot.lane.b32.xlu0 %v450_v19, %s5875_s26  ;;  %s4101_s26 = smov 114  }
 0x138   : > { %2811 = vmatprep.subr.bf16.mxu0 %v2810_v14  ;;  %2861 = vmatpush1.bf16.msra.mxu1 %v2860_v15  ;;  %v470_v26 = vsel %vm5871_vm14, %v3379_v17, %v3380_v16 }
 0x139   : > { %v459_v24 = vpop.permute.xlu1 %458  ;;  %v3383_v25 = vpop.permute.xlu0 %3382  ;;  %2813 = vmatpush1.bf16.msra.mxu0 %v2812_v20  ;;  %2863 = vmatprep.subr.bf16.mxu1 %v2862_v23  ;;  %v2818_v33 = vpack.c.bf16 %v470_v26, %v451_v0 }
 0x13a   : > { %v3385_v27 = vunpack.i.h.bf16 %v3383_v25  ;;  %v3384_v28 = vunpack.i.l.bf16 %v3383_v25  ;;  %2815 = vmatprep.subr.bf16.mxu0 %v2814_v22  ;;  %774 = vperm.xlu1 %3546, %v771_v21   ;;  %v469_v31 = vsel %vm5871_vm14, %v459_v24, %v3379_v17 }
 0x13b   : > { %v2820_v41 = vpack.c.bf16 %v469_v31, %v450_v19 }
 0x13c   : > { %2865 = vmatpush1.bf16.msra.mxu1 %v2864_v29  ;;  %v472_v34 = vsel %vm5871_vm14, %v3384_v28, %v3385_v27  ;;  %v471_v35 = vsel %vm5871_vm14, %v3380_v16, %v3384_v28  ;;  %vm5874_vm14 = vcmask 695296  }
 0x13d   : > { %v3393_v36 = vpop.permute.xlu1 %3392  ;;  %v3388_v37 = vpop.permute.xlu0 %3387  ;;  %2817 = vmatpush1.bf16.msra.mxu0 %v2816_v30  ;;  %v2866_v39 = vpack.c.bf16 %v472_v34, %v453_v3  ;;  %v2868_v40 = vpack.c.bf16 %v471_v35, %v4392_v63 }
 0x13e   : > { %2819 = vmatprep.subr.bf16.mxu0 %v2818_v33  ;;  %v3395_v38 = vunpack.i.h.bf16 %v3393_v36  ;;  %v3394_v42 = vunpack.i.l.bf16 %v3393_v36  ;;  %v3390_v43 = vunpack.i.h.bf16 %v3388_v37  ;;  %v3389_v44 = vunpack.i.l.bf16 %v3388_v37 }
 0x13f   : > { %2867 = vmatprep.subr.bf16.mxu1 %v2866_v39 }
 0x140   : > { %2869 = vmatpush1.bf16.msra.mxu1 %v2868_v40  ;;  %v489_v51 = vsel %vm5873_vm15, %v3389_v44, %v3390_v43  ;;  %v491_v52 = vsel %vm5873_vm15, %v3394_v42, %v3395_v38  ;;  %v490_v55 = vsel %vm5873_vm15, %v3390_v43, %v3394_v42 }
 0x141   : > { %v3403_v45 = vpop.permute.xlu1 %3402  ;;  %v3398_v46 = vpop.permute.xlu0 %3397  ;;  %2821 = vmatpush1.bf16.msra.mxu0 %v2820_v41 }
 0x142   : > { %v3405_v47 = vunpack.i.h.bf16 %v3403_v45  ;;  %v3404_v48 = vunpack.i.l.bf16 %v3403_v45  ;;  %v3400_v49 = vunpack.i.h.bf16 %v3398_v46  ;;  %v3399_v50 = vunpack.i.l.bf16 %v3398_v46 }
 0x144   : > { %v508_v53 = vsel %vm5872_vm2, %v3399_v50, %v3400_v49  ;;  %v510_v54 = vsel %vm5872_vm2, %v3404_v48, %v3405_v47  ;;  %v509_v56 = vsel %vm5872_vm2, %v3400_v49, %v3404_v48 }
 0x145   : > { %v497_v57 = vpop.permute.xlu1 %496  ;;  %v478_v58 = vpop.permute.xlu0 %477  ;;  %v2822_v59 = vpack.c.bf16 %v508_v53, %v489_v51  ;;  %v2870_v60 = vpack.c.bf16 %v510_v54, %v491_v52  ;;  %v2872_v61 = vpack.c.bf16 %v509_v56, %v490_v55 }
 0x146   : > { %v507_v62 = vsel %vm5872_vm2, %v497_v57, %v3399_v50  ;;  %v488_v63 = vsel %vm5873_vm15, %v478_v58, %v3389_v44  ;;  %vm563_vm2 = vcmask 687104   ;;  %vm582_vm15 = vcmask 556032  }
 0x147   : > { %v2824_v0 = vpack.c.bf16 %v507_v62, %v488_v63  ;;  %2823 = vmatprep.subr.bf16.mxu0 %v2822_v59  ;;  %2871 = vmatprep.subr.bf16.mxu1 %v2870_v60 }
 0x148   : > { %2873 = vmatpush1.bf16.msra.mxu1 %v2872_v61 }
 0x149   : > { %v3413_v1 = vpop.permute.xlu1 %3412  ;;  %v3408_v2 = vpop.permute.xlu0 %3407  ;;  %2825 = vmatpush1.bf16.msra.mxu0 %v2824_v0 }
 0x14a   : > { %v3415_v3 = vunpack.i.h.bf16 %v3413_v1  ;;  %v3414_v4 = vunpack.i.l.bf16 %v3413_v1  ;;  %v3410_v5 = vunpack.i.h.bf16 %v3408_v2  ;;  %v3409_v6 = vunpack.i.l.bf16 %v3408_v2 }
 0x14c   : > { %v527_v13 = vsel %vm525_vm3, %v3409_v6, %v3410_v5  ;;  %v529_v14 = vsel %vm525_vm3, %v3414_v4, %v3415_v3  ;;  %v528_v17 = vsel %vm525_vm3, %v3410_v5, %v3414_v4 }
 0x14d   : > { %v3423_v7 = vpop.permute.xlu1 %3422  ;;  %v3418_v8 = vpop.permute.xlu0 %3417 }
 0x14e   : > { %v3425_v9 = vunpack.i.h.bf16 %v3423_v7  ;;  %v3424_v10 = vunpack.i.l.bf16 %v3423_v7  ;;  %v3420_v11 = vunpack.i.h.bf16 %v3418_v8  ;;  %v3419_v12 = vunpack.i.l.bf16 %v3418_v8 }
 0x150   : > { %v546_v15 = vsel %vm5874_vm14, %v3419_v12, %v3420_v11  ;;  %v548_v16 = vsel %vm5874_vm14, %v3424_v10, %v3425_v9  ;;  %v547_v18 = vsel %vm5874_vm14, %v3420_v11, %v3424_v10 }
 0x151   : > { %v535_v19 = vpop.permute.xlu1 %534  ;;  %v516_v20 = vpop.permute.xlu0 %515  ;;  %v2826_v23 = vpack.c.bf16 %v546_v15, %v527_v13  ;;  %v2874_v21 = vpack.c.bf16 %v548_v16, %v529_v14  ;;  %v2876_v22 = vpack.c.bf16 %v547_v18, %v528_v17 }
 0x152   : > { %v545_v24 = vsel %vm5874_vm14, %v535_v19, %v3419_v12  ;;  %v526_v25 = vsel %vm525_vm3, %v516_v20, %v3409_v6  ;;  %vm696_vm14 = vcmask 547840  }
 0x153   : > { %v2828_v26 = vpack.c.bf16 %v545_v24, %v526_v25  ;;  %2827 = vmatprep.subr.bf16.mxu0 %v2826_v23  ;;  %2875 = vmatprep.subr.bf16.mxu1 %v2874_v21 }
 0x154   : > { %2877 = vmatpush1.bf16.msra.mxu1 %v2876_v22 }
 0x155   : > { %v3433_v27 = vpop.permute.xlu1 %3432  ;;  %v3428_v28 = vpop.permute.xlu0 %3427  ;;  %2829 = vmatpush1.bf16.msra.mxu0 %v2828_v26 }
 0x156   : > { %v3435_v29 = vunpack.i.h.bf16 %v3433_v27  ;;  %v3434_v30 = vunpack.i.l.bf16 %v3433_v27  ;;  %v3430_v31 = vunpack.i.h.bf16 %v3428_v28  ;;  %v3429_v33 = vunpack.i.l.bf16 %v3428_v28 }
 0x158   : > { %v565_v41 = vsel %vm563_vm2, %v3429_v33, %v3430_v31  ;;  %v567_v38 = vsel %vm563_vm2, %v3434_v30, %v3435_v29  ;;  %v566_v44 = vsel %vm563_vm2, %v3430_v31, %v3434_v30 }
 0x159   : > { %v3443_v34 = vpop.permute.xlu1 %3442  ;;  %v3438_v35 = vpop.permute.xlu0 %3437 }
 0x15a   : > { %v3445_v36 = vunpack.i.h.bf16 %v3443_v34  ;;  %v3444_v37 = vunpack.i.l.bf16 %v3443_v34  ;;  %v3440_v39 = vunpack.i.h.bf16 %v3438_v35  ;;  %v3439_v40 = vunpack.i.l.bf16 %v3438_v35 }
 0x15c   : > { %v584_v42 = vsel %vm582_vm15, %v3439_v40, %v3440_v39  ;;  %v586_v43 = vsel %vm582_vm15, %v3444_v37, %v3445_v36  ;;  %v585_v45 = vsel %vm582_vm15, %v3440_v39, %v3444_v37 }
 0x15d   : > { %v573_v46 = vpop.permute.xlu1 %572  ;;  %v554_v47 = vpop.permute.xlu0 %553  ;;  %v2830_v48 = vpack.c.bf16 %v584_v42, %v565_v41  ;;  %v2878_v49 = vpack.c.bf16 %v586_v43, %v567_v38  ;;  %v2880_v50 = vpack.c.bf16 %v585_v45, %v566_v44 }
 0x15e   : > { %v583_v51 = vsel %vm582_vm15, %v573_v46, %v3439_v40  ;;  %v564_v52 = vsel %vm563_vm2, %v554_v47, %v3429_v33 }
 0x15f   : > { %v2832_v53 = vpack.c.bf16 %v583_v51, %v564_v52  ;;  %2831 = vmatprep.subr.bf16.mxu0 %v2830_v48  ;;  %2879 = vmatprep.subr.bf16.mxu1 %v2878_v49 }
 0x160   : > { %2881 = vmatpush1.bf16.msra.mxu1 %v2880_v50 }
 0x161   : > { %2833 = vmatpush1.bf16.msra.mxu0 %v2832_v53  ;;  %v3453_v54 = vpop.permute.xlu1 %3452  ;;  %v3448_v55 = vpop.permute.xlu0 %3447 }
 0x162   : > { %v3455_v56 = vunpack.i.h.bf16 %v3453_v54  ;;  %v3454_v57 = vunpack.i.l.bf16 %v3453_v54  ;;  %v3450_v58 = vunpack.i.h.bf16 %v3448_v55  ;;  %v3449_v59 = vunpack.i.l.bf16 %v3448_v55 }
 0x164   : > { %v698_v2 = vsel %vm696_vm14, %v3449_v59, %v3450_v58  ;;  %v700_v3 = vsel %vm696_vm14, %v3454_v57, %v3455_v56  ;;  %v699_v7 = vsel %vm696_vm14, %v3450_v58, %v3454_v57 }
 0x175   : > { %v3463_v60 = vpop.permute.xlu1 %3462 }
 0x176   : > { %v3465_v61 = vunpack.i.h.bf16 %v3463_v60  ;;  %v3464_v62 = vunpack.i.l.bf16 %v3463_v60  ;;  %v3458_v63 = vpop.permute.xlu0 %3457 }
 0x177   : > { %v3460_v0 = vunpack.i.h.bf16 %v3458_v63  ;;  %v3459_v1 = vunpack.i.l.bf16 %v3458_v63 }
 0x178   : > { %v704_v4 = vsel %vm696_vm14, %v3464_v62, %v3465_v61 }
 0x179   : > { %v702_v5 = vsel %vm696_vm14, %v3459_v1, %v3460_v0  ;;  %v2882_v6 = vpack.c.bf16 %v704_v4, %v700_v3  ;;  %v703_v8 = vsel %vm696_vm14, %v3460_v0, %v3464_v62 }
 0x17a   : > { %v3468_v9 = vpop.permute.xlu0 %3467  ;;  %v2834_v10 = vpack.c.bf16 %v702_v5, %v698_v2  ;;  %v2884_v11 = vpack.c.bf16 %v703_v8, %v699_v7 }
 0x17b   : > { %v3470_v12 = vunpack.i.h.bf16 %v3468_v9  ;;  %v3469_v13 = vunpack.i.l.bf16 %v3468_v9  ;;  %2883 = vmatprep.subr.bf16.mxu1 %v2882_v6 }
 0x17c   : > { %2835 = vmatprep.subr.bf16.mxu0 %v2834_v10  ;;  %2885 = vmatpush1.bf16.msra.mxu1 %v2884_v11 }
 0x17d   : > { %v3473_v14 = vpop.permute.xlu1 %3472  ;;  %v697_v15 = vsel %vm696_vm14, %v3469_v13, %v3449_v59  ;;  %v701_v16 = vsel %vm696_vm14, %v3470_v12, %v3459_v1 }
 0x17e   : > { %v3478_v17 = vpop.permute.xlu0 %3477  ;;  %v2836_v18 = vpack.c.bf16 %v701_v16, %v697_v15  ;;  %v3475_v19 = vunpack.i.h.bf16 %v3473_v14  ;;  %v3474_v20 = vunpack.i.l.bf16 %v3473_v14 }
 0x17f   : > { %v3480_v23 = vunpack.i.h.bf16 %v3478_v17  ;;  %v3479_v21 = vunpack.i.l.bf16 %v3478_v17 }
 0x180   : > { %2837 = vmatpush1.bf16.msra.mxu0 %v2836_v18  ;;  %v706_v29 = vsel %vm696_vm14, %v3474_v20, %v3475_v19 }
 0x181   : > { %v3483_v22 = vpop.permute.xlu1 %3482  ;;  %v708_v31 = vsel %vm696_vm14, %v3479_v21, %v3480_v23  ;;  %v707_v36 = vsel %vm696_vm14, %v3475_v19, %v3479_v21 }
 0x182   : > { %v3485_v24 = vunpack.i.h.bf16 %v3483_v22  ;;  %v3484_v25 = vunpack.i.l.bf16 %v3483_v22  ;;  %v3488_v26 = vpop.permute.xlu0 %3487 }
 0x183   : > { %v3490_v27 = vunpack.i.h.bf16 %v3488_v26  ;;  %v3489_v28 = vunpack.i.l.bf16 %v3488_v26 }
 0x184   : > { %v710_v30 = vsel %vm696_vm14, %v3484_v25, %v3485_v24 }
 0x185   : > { %v3493_v33 = vpop.permute.xlu1 %3492  ;;  %v2838_v34 = vpack.c.bf16 %v710_v30, %v706_v29  ;;  %v712_v35 = vsel %vm696_vm14, %v3489_v28, %v3490_v27  ;;  %v711_v37 = vsel %vm696_vm14, %v3485_v24, %v3489_v28 }
 0x186   : > { %v3495_v39 = vunpack.i.h.bf16 %v3493_v33  ;;  %v3494_v40 = vunpack.i.l.bf16 %v3493_v33  ;;  %v2886_v41 = vpack.c.bf16 %v712_v35, %v708_v31  ;;  %v2888_v38 = vpack.c.bf16 %v711_v37, %v707_v36 }
 0x187   : > { %2839 = vmatprep.subr.bf16.mxu0 %v2838_v34 }
 0x188   : > { %2887 = vmatprep.subr.bf16.mxu1 %v2886_v41  ;;  %v705_v42 = vsel %vm696_vm14, %v3494_v40, %v3474_v20  ;;  %v709_v43 = vsel %vm696_vm14, %v3495_v39, %v3484_v25 }
 0x189   : > { %2889 = vmatpush1.bf16.msra.mxu1 %v2888_v38  ;;  %v2840_v44 = vpack.c.bf16 %v709_v43, %v705_v42  ;;  %v769_v43 = vld [vmem:[%s5863_s1] sm:$0xff] }
 0x18b   : > { %2841 = vmatpush1.bf16.msra.mxu0 %v2840_v44 }
 0x18d   : > { %v3503_v45 = vpop.permute.xlu1 %3502  ;;  %v3498_v46 = vpop.permute.xlu0 %3497 }
 0x18e   : > { %v3505_v47 = vunpack.i.h.bf16 %v3503_v45  ;;  %v3504_v48 = vunpack.i.l.bf16 %v3503_v45  ;;  %v3500_v49 = vunpack.i.h.bf16 %v3498_v46  ;;  %v3499_v50 = vunpack.i.l.bf16 %v3498_v46 }
 0x18f   : > { %v929_v46 = vlaneseq }
 0x190   : > { %v714_v57 = vsel %vm696_vm14, %v3499_v50, %v3500_v49  ;;  %v716_v58 = vsel %vm696_vm14, %v3504_v48, %v3505_v47  ;;  %v715_v61 = vsel %vm696_vm14, %v3500_v49, %v3504_v48 }
 0x191   : > { %v3513_v51 = vpop.permute.xlu1 %3512  ;;  %v3508_v52 = vpop.permute.xlu0 %3507  ;;  %v4489_v47 = vshrl.u32 %v929_v46, 7 }
 0x192   : > { %v3515_v53 = vunpack.i.h.bf16 %v3513_v51  ;;  %v3514_v54 = vunpack.i.l.bf16 %v3513_v51  ;;  %v3510_v55 = vunpack.i.h.bf16 %v3508_v52  ;;  %v3509_v56 = vunpack.i.l.bf16 %v3508_v52  ;;  %v927_v51 = vld [vmem:[%s5865_s3] sm:$0xf] }
 0x193   : > { %v931_v49 = vsub.s32 0, %v4489_v47 }
 0x194   : > { %v718_v59 = vsel %vm696_vm14, %v3509_v56, %v3510_v55  ;;  %v720_v60 = vsel %vm696_vm14, %v3514_v54, %v3515_v53  ;;  %v719_v62 = vsel %vm696_vm14, %v3510_v55, %v3514_v54  ;;  %v5878_v53 = vsub.s32 1, %v4489_v47 }
 0x195   : > { %v3523_v63 = vpop.permute.xlu1 %3522  ;;  %v3518_v0 = vpop.permute.xlu0 %3517  ;;  %v2842_v1 = vpack.c.bf16 %v718_v59, %v714_v57  ;;  %v2890_v2 = vpack.c.bf16 %v720_v60, %v716_v58  ;;  %v2892_v3 = vpack.c.bf16 %v719_v62, %v715_v61  ;;  %v939_v59 = vsub.s32 2, %v4489_v47 }
 0x196   : > { %v3520_v4 = vunpack.i.h.bf16 %v3518_v0  ;;  %v3519_v5 = vunpack.i.l.bf16 %v3518_v0  ;;  %v3525_v6 = vunpack.i.h.bf16 %v3523_v63  ;;  %v3524_v7 = vunpack.i.l.bf16 %v3523_v63 }
 0x197   : > { %2843 = vmatprep.subr.bf16.mxu0 %v2842_v1  ;;  %2891 = vmatprep.subr.bf16.mxu1 %v2890_v2  ;;  %v943_v61 = vsub.s32 3, %v4489_v47  ;;  %v936_v63 = vrot.slane %v927_v51, %v5878_v53 }
 0x198   : > { %2893 = vmatpush1.bf16.msra.mxu1 %v2892_v3  ;;  %v713_v8 = vsel %vm696_vm14, %v3519_v5, %v3499_v50  ;;  %v717_v9 = vsel %vm696_vm14, %v3520_v4, %v3509_v56  ;;  %v722_v17 = vsel %vm696_vm14, %v3524_v7, %v3525_v6  ;;  %v932_v56 = vrot.slane %v927_v51, %v931_v49 }
 0x199   : > { %v3533_v10 = vpop.permute.xlu1 %3532  ;;  %v3528_v11 = vpop.permute.xlu0 %3527  ;;  %v2844_v12 = vpack.c.bf16 %v717_v9, %v713_v8  ;;  %v940_v4 = vrot.slane %v927_v51, %v939_v59 }
 0x19a   : > { %v3535_v13 = vunpack.i.h.bf16 %v3533_v10  ;;  %v3534_v14 = vunpack.i.l.bf16 %v3533_v10  ;;  %v3530_v15 = vunpack.i.h.bf16 %v3528_v11  ;;  %v3529_v16 = vunpack.i.l.bf16 %v3528_v11 }
 0x19b   : > { %2845 = vmatpush1.bf16.msra.mxu0 %v2844_v12 }
 0x19c   : > { %v726_v18 = vsel %vm696_vm14, %v3534_v14, %v3535_v13  ;;  %v724_v26 = vsel %vm696_vm14, %v3529_v16, %v3530_v15  ;;  %v723_v27 = vsel %vm696_vm14, %v3525_v6, %v3529_v16  ;;  %v944_v6 = vrot.slane %v927_v51, %v943_v61 }
 0x19d   : > { %v3543_v19 = vpop.permute.xlu1 %3542  ;;  %v3538_v20 = vpop.permute.xlu0 %3537  ;;  %v2846_v23 = vpack.c.bf16 %v726_v18, %v722_v17 }
 0x19e   : > { %v3545_v21 = vunpack.i.h.bf16 %v3543_v19  ;;  %v3544_v22 = vunpack.i.l.bf16 %v3543_v19  ;;  %v3540_v24 = vunpack.i.h.bf16 %v3538_v20  ;;  %v3539_v25 = vunpack.i.l.bf16 %v3538_v20 }
 0x19f   : > { %2847 = vmatprep.subr.bf16.mxu0 %v2846_v23 }
 0x1a0   : > { %v721_v28 = vsel %vm696_vm14, %v3544_v22, %v3524_v7  ;;  %v725_v29 = vsel %vm696_vm14, %v3545_v21, %v3534_v14  ;;  %v728_v30 = vsel %vm696_vm14, %v3539_v25, %v3540_v24  ;;  %v727_v31 = vsel %vm696_vm14, %v3535_v13, %v3539_v25 }
 0x1a1   : > { %v691_v33 = vpop.permute.xlu1 %690  ;;  %v689_v34 = vpop.permute.xlu0 %688  ;;  %v2848_v35 = vpack.c.bf16 %v725_v29, %v721_v28  ;;  %v2894_v36 = vpack.c.bf16 %v728_v30, %v724_v26  ;;  %v2896_v37 = vpack.c.bf16 %v727_v31, %v723_v27 }
 0x1a2   : > { %v730_v39 = vsel %vm696_vm14, %v689_v34, %v691_v33 }
 0x1a3   : > { %2849 = vmatpush1.bf16.msra.mxu0 %v2848_v35  ;;  %2895 = vmatprep.subr.bf16.mxu1 %v2894_v36 }
 0x1a4   : > { %829 = vmatprep.subr.mxu0 %v730_v39  ;;  %2897 = vmatpush1.bf16.msra.mxu1 %v2896_v37 }
 0x1a5   : > { %v695_v40 = vpop.permute.xlu1 %694  ;;  %v693_v41 = vpop.permute.xlu0 %692 }
 0x1a6   : > { %v732_v38 = vsel %vm696_vm14, %v693_v41, %v695_v40  ;;  %v731_v42 = vsel %vm696_vm14, %v691_v33, %v693_v41 }
 0x1a7   : > { %900 = vmatprep.subr.mxu1 %v732_v38 }
 0x1a8   : > { %901 = vmatpush1.msra.mxu1 %v731_v42 }
 0x1a9   : > { %v687_v44 = vpop.permute.xlu0 %686  ;;  %917 = vmatmul.mubr.f32.vlgmr.msra.gmra.mrb[0].mxu1 %v769_v43 }
 0x1aa   : > { %v729_v45 = vsel %vm696_vm14, %v687_v44, %v689_v34 }
 0x1ab   : > { %830 = vmatpush1.msra.mxu0 %v729_v45 }
 0x1ac   : > { %846 = vmatmul.mubr.f32.vlgmr.msra.gmra.mrb[0].mxu0 %v769_v43 }
 0x1b9   : > { %v775_v50 = vpop.permute.xlu1 %774 }
 0x27c   : > { %v918_v48 = vpop.f32.mrb[0].mxu1 }
 0x27d   : > { %v920_v52 = vpop.f32.mrb[1].mxu1  ;;  %v919_v58 = vadd.f32 %v918_v48, %v775_v50 }
 0x27e   : > { %v921_v60 = vadd.f32 %v920_v52, %v775_v50 }
 0x27f   : > { %v847_v54 = vpop.f32.mrb[0].mxu0  ;;  %v925_v3 = vmax.f32 %v919_v58, 0.0 }
 0x280   : > { %v848_v55 = vadd.f32 %v847_v54, %v775_v50  ;;  %v849_v57 = vpop.f32.mrb[1].mxu0  ;;  %v926_v5 = vmax.f32 %v921_v60, 0.0 }
 0x281   : > { %v850_v62 = vadd.f32 %v849_v57, %v775_v50  ;;  %v951_v8 = vmul.f32 %v940_v4, %v925_v3 }
 0x282   : > { %v923_v0 = vmax.f32 %v848_v55, 0.0  ;;  %v952_v9 = vmul.f32 %v944_v6, %v926_v5 }
 0x283   : > { %v924_v1 = vmax.f32 %v850_v62, 0.0 }
 0x284   : > { %v949_v2 = vmul.f32 %v932_v56, %v923_v0 }
 0x285   : > { %v950_v7 = vmul.f32 %v936_v63, %v924_v1 }
 0x286   : > { %957 = vrot.lane.b32.xlu0 %v949_v2, %s4076_s30 }
 0x287   : > { %959 = vrot.lane.b32.xlu1 %v950_v7, %s4076_s30 }
 0x28a   : > { %961 = vrot.lane.b32.xlu0 %v951_v8, %s4076_s30 }
 0x28b   : > { %963 = vrot.lane.b32.xlu1 %v952_v9, %s4076_s30  ;;  %s5885_s30 = smov 67  }
 0x2f8   : > { %v4506_v10 = vpop.permute.xlu0 %957 }
 0x2f9   : > { %v4510_v11 = vsel %vm293_vm0, 0.0, %v4506_v10  ;;  %v960_v12 = vpop.permute.xlu1 %959 }
 0x2fa   : > { %1139 = vrot.lane.b32.xlu0 %v4510_v11, %s4087_s18  ;;  %1103 = vrot.lane.b32.xlu1 %v4510_v11, %s4084_s15  ;;  %v965_v15 = vsel %vm293_vm0, %v4506_v10, %v960_v12 }
 0x2fc   : > { %v962_v13 = vpop.permute.xlu0 %961 }
 0x2fd   : > { %v4517_v14 = vsel %vm293_vm0, %v960_v12, %v962_v13  ;;  %v964_v17 = vpop.permute.xlu1 %963 }
 0x2fe   : > { %1175 = vrot.lane.b32.xlu0 %v4510_v11, %s4089_s20  ;;  %1031 = vrot.lane.b32.xlu1 %v4510_v11, %s4085_s16  ;;  %v3547_v16 = vpack.i.bf16 %v4517_v14, %v965_v15  ;;  %v4530_v18 = vsel %vm293_vm0, %v962_v13, %v964_v17  ;;  %v4569_v20 = vsel %vm293_vm0, %v964_v17, 0.0  ;;  %vm5886_vm0 = vcmask 850944  }
 0x2ff   : > { %v3552_v19 = vpack.i.bf16 %v4510_v11, %v4530_v18 }
 0x302   : > { %1121 = vrot.lane.b32.xlu1 %v4510_v11, %s4086_s17  ;;  %3548 = vrot.lane.b32.xlu0 %v3547_v16, %s4077_s8 }
 0x306   : > { %1157 = vrot.lane.b32.xlu1 %v4510_v11, %s4088_s19  ;;  %3558 = vrot.lane.b32.xlu0 %v3547_v16, %s4078_s9 }
 0x30a   : > { %3553 = vrot.lane.b32.xlu1 %v3552_v19, %s4077_s8  ;;  %3568 = vrot.lane.b32.xlu0 %v3547_v16, %s4079_s10 }
 0x30e   : > { %3563 = vrot.lane.b32.xlu1 %v3552_v19, %s4078_s9  ;;  %3578 = vrot.lane.b32.xlu0 %v3547_v16, %s4080_s11 }
 0x312   : > { %3573 = vrot.lane.b32.xlu1 %v3552_v19, %s4079_s10  ;;  %3588 = vrot.lane.b32.xlu0 %v3547_v16, %s4081_s12 }
 0x316   : > { %3583 = vrot.lane.b32.xlu1 %v3552_v19, %s4080_s11  ;;  %3598 = vrot.lane.b32.xlu0 %v3547_v16, %s4082_s13 }
 0x31a   : > { %3593 = vrot.lane.b32.xlu1 %v3552_v19, %s4081_s12  ;;  %3608 = vrot.lane.b32.xlu0 %v3547_v16, %s4083_s14 }
 0x31e   : > { %3603 = vrot.lane.b32.xlu1 %v3552_v19, %s4082_s13  ;;  %1211 = vrot.lane.b32.xlu0 %v4510_v11, %s4091_s22 }
 0x322   : > { %3613 = vrot.lane.b32.xlu1 %v3552_v19, %s4083_s14  ;;  %1105 = vrot.lane.b32.xlu0 %v965_v15, %s4084_s15 }
 0x326   : > { %1193 = vrot.lane.b32.xlu1 %v4510_v11, %s4090_s21  ;;  %1109 = vrot.lane.b32.xlu0 %v4530_v18, %s4084_s15 }
 0x32a   : > { %1107 = vrot.lane.b32.xlu1 %v4517_v14, %s4084_s15  ;;  %3618 = vrot.lane.b32.xlu0 %v3547_v16, %s4085_s16 }
 0x32e   : > { %1229 = vrot.lane.b32.xlu1 %v4510_v11, %s4092_s23  ;;  %3623 = vrot.lane.b32.xlu0 %v3547_v16, %s4086_s17 }
 0x332   : > { %3633 = vrot.lane.b32.xlu1 %v3547_v16, %s4088_s19  ;;  %3628 = vrot.lane.b32.xlu0 %v3547_v16, %s4087_s18 }
 0x336   : > { %3643 = vrot.lane.b32.xlu1 %v3547_v16, %s4090_s21  ;;  %3638 = vrot.lane.b32.xlu0 %v3547_v16, %s4089_s20 }
 0x33a   : > { %3653 = vrot.lane.b32.xlu1 %v3547_v16, %s4092_s23  ;;  %3648 = vrot.lane.b32.xlu0 %v3547_v16, %s4091_s22 }
 0x33e   : > { %985 = vrot.lane.b32.xlu1 %v4569_v20, %s4077_s8  ;;  %3658 = vrot.lane.b32.xlu0 %v3547_v16, %s5885_s30 }
 0x342   : > { %1003 = vrot.lane.b32.xlu1 %v4569_v20, %s4078_s9  ;;  %1021 = vrot.lane.b32.xlu0 %v4569_v20, %s4079_s10 }
 0x346   : > { %1255 = vrot.lane.b32.xlu1 %v4569_v20, %s4081_s12  ;;  %1057 = vrot.lane.b32.xlu0 %v4569_v20, %s4080_s11  ;;  %s4106_s11 = smov 101   ;;  %s4107_s12 = smov 92  }
 0x34a   : > { %1075 = vrot.lane.b32.xlu1 %v4569_v20, %s4082_s13  ;;  %s5881_s13 = smov 91  }
 0x36c   : > { %v4584_v23 = vpop.permute.xlu1 %1103  ;;  %v4586_v21 = vpop.permute.xlu0 %1139 }
 0x370   : > { %v4588_v22 = vpop.permute.xlu1 %1031  ;;  %v4590_v24 = vpop.permute.xlu0 %1175 }
 0x374   : > { %v4592_v25 = vpop.permute.xlu1 %1121  ;;  %v3549_v26 = vpop.permute.xlu0 %3548 }
 0x375   : > { %v3551_v27 = vunpack.i.h.bf16 %v3549_v26  ;;  %v3550_v28 = vunpack.i.l.bf16 %v3549_v26 }
 0x377   : > { %v988_v29 = vsel %vm316_vm1, %v3550_v28, %v3551_v27 }
 0x378   : > { %v4595_v30 = vpop.permute.xlu1 %1157  ;;  %v3559_v31 = vpop.permute.xlu0 %3558  ;;  %v2898_v33 = vpack.c.bf16 %v988_v29, %v965_v15 }
 0x379   : > { %v3561_v34 = vunpack.i.h.bf16 %v3559_v31  ;;  %v3560_v35 = vunpack.i.l.bf16 %v3559_v31 }
 0x37a   : > { %2899 = vmatprep.subr.bf16.mxu0 %v2898_v33 }
 0x37b   : > { %v1006_v44 = vsel %vm335_vm5, %v3560_v35, %v3561_v34 }
 0x37c   : > { %v4597_v36 = vpop.permute.xlu1 %3553  ;;  %v3569_v37 = vpop.permute.xlu0 %3568 }
 0x37d   : > { %v3556_v39 = vunpack.i.h.bf16 %v4597_v36  ;;  %v3555_v40 = vunpack.i.l.bf16 %v4597_v36  ;;  %v3571_v41 = vunpack.i.h.bf16 %v3569_v37  ;;  %v3570_v38 = vunpack.i.l.bf16 %v3569_v37 }
 0x37f   : > { %v987_v42 = vsel %vm316_vm1, %v3556_v39, %v3550_v28  ;;  %v4605_v43 = vsel %vm316_vm1, %v3551_v27, %v3555_v40  ;;  %v1024_v45 = vsel %vm354_vm6, %v3570_v38, %v3571_v41 }
 0x380   : > { %v2900_v46 = vpack.c.bf16 %v987_v42, %v4506_v10  ;;  %v4610_v48 = vpop.permute.xlu1 %3563  ;;  %v3579_v50 = vpop.permute.xlu0 %3578  ;;  %v3662_v51 = vpack.i.bf16 %v4605_v43, %v988_v29  ;;  %v3667_v52 = vpack.i.bf16 %v987_v42, %v4510_v11  ;;  %v2903_v54 = vpack.c.bf16 %v1024_v45, %v1006_v44 }
 0x381   : > { %v3565_v55 = vunpack.i.l.bf16 %v4610_v48  ;;  %v3566_v56 = vunpack.i.h.bf16 %v4610_v48  ;;  %v3581_v63 = vunpack.i.h.bf16 %v3579_v50  ;;  %v3580_v0 = vunpack.i.l.bf16 %v3579_v50 }
 0x382   : > { %3663 = vrot.lane.b32.xlu1 %v3662_v51, %s5885_s30  ;;  %3668 = vrot.lane.b32.xlu0 %v3667_v52, %s5885_s30  ;;  %v2949_v36 = vpack.c.bf16 %v4605_v43, %v4517_v14 }
 0x383   : > { %2902 = vmatpush1.bf16.msk.msra.mxu0 %vm4303_vm4, %v2900_v46  ;;  %v4623_v57 = vsel %vm335_vm5, %v3561_v34, %v3565_v55  ;;  %v1005_v32 = vsel %vm335_vm5, %v3566_v56, %v3560_v35  ;;  %v4645_v9 = vsel %vm392_vm8, %v3580_v0, %v3581_v63  ;;  %vm5887_vm4 = vmmov %vm5886_vm0 }
 0x384   : > { %v3672_v58 = vpack.i.bf16 %v4623_v57, %v1006_v44  ;;  %2904 = vmatprep.subr.bf16.mxu0 %v2903_v54  ;;  %v4626_v59 = vpop.permute.xlu1 %3573  ;;  %v3589_v60 = vpop.permute.xlu0 %3588 }
 0x385   : > { %v3576_v61 = vunpack.i.h.bf16 %v4626_v59  ;;  %v3575_v62 = vunpack.i.l.bf16 %v4626_v59  ;;  %v3591_v10 = vunpack.i.h.bf16 %v3589_v60  ;;  %v3590_v11 = vunpack.i.l.bf16 %v3589_v60 }
 0x386   : > { %3673 = vrot.lane.b32.xlu0 %v3672_v58, %s5885_s30 }
 0x387   : > { %v1023_v1 = vsel %vm354_vm6, %v3576_v61, %v3570_v38  ;;  %v4636_v2 = vsel %vm354_vm6, %v3571_v41, %v3575_v62  ;;  %v1258_v29 = vsel %vm601_vm7, %v3590_v11, %v3591_v10 }
 0x388   : > { %v4638_v3 = vpop.permute.xlu1 %3583  ;;  %v3599_v4 = vpop.permute.xlu0 %3598  ;;  %v3677_v5 = vpack.i.bf16 %v4636_v2, %v1024_v45  ;;  %v3682_v6 = vpack.i.bf16 %v1023_v1, %v1005_v32  ;;  %v2905_v7 = vpack.c.bf16 %v1023_v1, %v1005_v32  ;;  %v2953_v43 = vpack.c.bf16 %v4636_v2, %v4623_v57 }
 0x389   : > { %v3585_v8 = vunpack.i.l.bf16 %v4638_v3  ;;  %v3586_v26 = vunpack.i.h.bf16 %v4638_v3  ;;  %v3601_v27 = vunpack.i.h.bf16 %v3599_v4  ;;  %v3600_v28 = vunpack.i.l.bf16 %v3599_v4 }
 0x38a   : > { %3678 = vrot.lane.b32.xlu1 %v3677_v5, %s5885_s30  ;;  %3683 = vrot.lane.b32.xlu0 %v3682_v6, %s5885_s30 }
 0x38b   : > { %v4650_v12 = vsel %vm392_vm8, %v3581_v63, %v3585_v8  ;;  %2906 = vmatpush1.bf16.msra.mxu0 %v2905_v7  ;;  %v1059_v41 = vsel %vm392_vm8, %v3586_v26, %v3580_v0  ;;  %v1078_v38 = vsel %vm411_vm9, %v3600_v28, %v3601_v27  ;;  %v2745_v0 = vld [vmem:[%s5863_s1 + $0x18] sm:$0xff] }
 0x38c   : > { %v4652_v13 = vpop.permute.xlu1 %3593  ;;  %v3609_v15 = vpop.permute.xlu0 %3608  ;;  %v3692_v16 = vpack.i.bf16 %v4650_v12, %v4645_v9  ;;  %2749 = vmatprep.mubr.msk.f32.mxu0 %vm5877_vm11, %v2745_v0  ;;  %2750 = vmatprep.mubr.msk.f32.mxu1 %vm5877_vm11, %v2745_v0  ;;  %vm5889_vm11 = vcmask 711680  }
 0x38d   : > { %v3596_v17 = vunpack.i.h.bf16 %v4652_v13  ;;  %v3595_v19 = vunpack.i.l.bf16 %v4652_v13  ;;  %v3611_v42 = vunpack.i.h.bf16 %v3609_v15  ;;  %v3610_v44 = vunpack.i.l.bf16 %v3609_v15 }
 0x38e   : > { %3693 = vrot.lane.b32.xlu0 %v3692_v16, %s5885_s30 }
 0x38f   : > { %v1259_v31 = vsel %vm601_vm7, %v3591_v10, %v3595_v19  ;;  %v1257_v37 = vsel %vm601_vm7, %v3596_v17, %v3590_v11  ;;  %v1096_v60 = vsel %vm430_vm10, %v3610_v44, %v3611_v42 }
 0x390   : > { %v4664_v33 = vpop.permute.xlu1 %3603  ;;  %v4666_v34 = vpop.permute.xlu0 %1211  ;;  %v3687_v35 = vpack.i.bf16 %v1259_v31, %v1258_v29  ;;  %v3697_v52 = vpack.i.bf16 %v1059_v41, %v1257_v37 }
 0x391   : > { %v3605_v39 = vunpack.i.l.bf16 %v4664_v33  ;;  %v3606_v45 = vunpack.i.h.bf16 %v4664_v33 }
 0x392   : > { %3688 = vrot.lane.b32.xlu1 %v3687_v35, %s5885_s30 }
 0x393   : > { %v4677_v46 = vsel %vm411_vm9, %v3601_v27, %v3605_v39  ;;  %v1077_v61 = vsel %vm411_vm9, %v3606_v45, %v3600_v28  ;;  %v2911_v45 = vpack.c.bf16 %v1096_v60, %v1078_v38 }
 0x394   : > { %v4679_v50 = vpop.permute.xlu1 %3613  ;;  %v1106_v51 = vpop.permute.xlu0 %1105  ;;  %v3702_v54 = vpack.i.bf16 %v4677_v46, %v1078_v38 }
 0x395   : > { %v3616_v56 = vunpack.i.h.bf16 %v4679_v50  ;;  %v3615_v58 = vunpack.i.l.bf16 %v4679_v50 }
 0x396   : > { %3698 = vrot.lane.b32.xlu1 %v3697_v52, %s5885_s30  ;;  %3703 = vrot.lane.b32.xlu0 %v3702_v54, %s5885_s30  ;;  %v4743_v52 = vpack.i.bf16 %v4569_v20, %v4530_v18 }
 0x397   : > { %v1095_v63 = vsel %vm430_vm10, %v3616_v56, %v3610_v44  ;;  %v4692_v32 = vsel %vm430_vm10, %v3611_v42, %v3615_v58  ;;  %v1113_v44 = vsel %vm449_vm12, %v4584_v23, %v1106_v51 }
 0x398   : > { %v4697_v1 = vpop.permute.xlu1 %1193  ;;  %v4699_v4 = vpop.permute.xlu0 %1109  ;;  %v3707_v5 = vpack.i.bf16 %v4692_v32, %v1096_v60  ;;  %v3712_v6 = vpack.i.bf16 %v1095_v63, %v1077_v61  ;;  %v2961_v7 = vpack.c.bf16 %v4692_v32, %v4677_v46  ;;  %v2913_v60 = vpack.c.bf16 %v1095_v63, %v1077_v61 }
 0x39a   : > { %3708 = vrot.lane.b32.xlu1 %v3707_v5, %s5885_s30  ;;  %3713 = vrot.lane.b32.xlu0 %v3712_v6, %s5885_s30 }
 0x39c   : > { %v1108_v10 = vpop.permute.xlu1 %1107  ;;  %v4708_v11 = vpop.permute.xlu0 %3618 }
 0x39d   : > { %v3621_v15 = vunpack.i.h.bf16 %v4708_v11  ;;  %v3620_v16 = vunpack.i.l.bf16 %v4708_v11  ;;  %v1114_v17 = vsel %vm449_vm12, %v1106_v51, %v1108_v10  ;;  %v1583_v11 = vld [vmem:[%s5867_s5 + $0x8] sm:$0xff] }
 0x39e   : > { %1343 = vrot.lane.b32.xlu1 %v1114_v17, %s5885_s30  ;;  %1093 = vrot.lane.b32.xlu0 %v4569_v20, %s4083_s14 }
 0x39f   : > { %v1041_v26 = vsel %vm373_vm13, %v4588_v22, %v3620_v16  ;;  %v1042_v27 = vsel %vm373_vm13, %v3620_v16, %v3621_v15  ;;  %v4732_v22 = vsel %vm449_vm12, %v1108_v10, %v4699_v4 }
 0x3a0   : > { %v4721_v28 = vpop.permute.xlu1 %1229  ;;  %v4723_v29 = vpop.permute.xlu0 %3623  ;;  %v2907_v31 = vpack.c.bf16 %v4645_v9, %v1042_v27  ;;  %v2909_v35 = vpack.c.bf16 %v1059_v41, %v1041_v26 }
 0x3a1   : > { %v3626_v37 = vunpack.i.h.bf16 %v4723_v29  ;;  %v3625_v42 = vunpack.i.l.bf16 %v4723_v29  ;;  %v1592_v29 = vld [vmem:[%s5867_s5 + $0x50] sm:$0xff] }
 0x3a2   : > { %1341 = vrot.lane.b32.xlu1 %v1113_v44, %s5885_s30  ;;  %1345 = vrot.lane.b32.xlu0 %v4732_v22, %s5885_s30 }
 0x3a3   : > { %2908 = vmatprep.subr.bf16.mxu0 %v2907_v31  ;;  %v1132_v23 = vsel %vm5886_vm0, %v3625_v42, %v3626_v37  ;;  %v1131_v0 = vsel %vm5887_vm4, %v4592_v25, %v3625_v42  ;;  %vm5888_vm0 = vcmask 719872   ;;  %vm5890_vm4 = vmmov %vm5889_vm11 }
 0x3a4   : > { %2910 = vmatpush1.bf16.msra.mxu0 %v2909_v35  ;;  %v4737_v9 = vpop.permute.xlu1 %3633  ;;  %v4739_v41 = vpop.permute.xlu0 %3628  ;;  %v2915_v5 = vpack.c.bf16 %v1132_v23, %v1114_v17  ;;  %v2917_v17 = vpack.c.bf16 %v1131_v0, %v1113_v44 }
 0x3a5   : > { %v3636_v51 = vunpack.i.h.bf16 %v4737_v9  ;;  %v3635_v54 = vunpack.i.l.bf16 %v4737_v9  ;;  %v3631_v56 = vunpack.i.h.bf16 %v4739_v41  ;;  %v3630_v38 = vunpack.i.l.bf16 %v4739_v41  ;;  %2912 = vmatprep.subr.bf16.mxu0 %v2911_v45 }
 0x3a6   : > { %3718 = vrot.lane.b32.xlu1 %v4743_v52, %s4085_s16  ;;  %1111 = vrot.lane.b32.xlu0 %v4569_v20, %s4084_s15 }
 0x3a7   : > { %v1150_v16 = vsel %vm5888_vm0, %v3630_v38, %v3631_v56  ;;  %v1168_v26 = vsel %vm5889_vm11, %v3635_v54, %v3636_v51  ;;  %v1167_v27 = vsel %vm5890_vm4, %v4595_v30, %v3635_v54  ;;  %vm5891_vm11 = vmmov %vm5888_vm0  ;;  %vm5892_vm0 = vcmask 695296  }
 0x3a8   : > { %2914 = vmatpush1.bf16.msra.mxu0 %v2913_v60  ;;  %v4758_v6 = vpop.permute.xlu1 %3643  ;;  %v4760_v10 = vpop.permute.xlu0 %3638  ;;  %v1149_v31 = vsel %vm5891_vm11, %v4586_v21, %v3630_v38  ;;  %v2919_v35 = vpack.c.bf16 %v1168_v26, %v1150_v16  ;;  %vm5893_vm4 = vmmov %vm5892_vm0 }
 0x3a9   : > { %v3646_v20 = vunpack.i.h.bf16 %v4758_v6  ;;  %v3645_v61 = vunpack.i.l.bf16 %v4758_v6  ;;  %v3641_v25 = vunpack.i.h.bf16 %v4760_v10  ;;  %v3640_v63 = vunpack.i.l.bf16 %v4760_v10  ;;  %2916 = vmatprep.subr.bf16.mxu0 %v2915_v5  ;;  %v1605_v10 = vld [vmem:[%s5867_s5 + $0xb8] sm:$0xff] }
 0x3aa   : > { %3728 = vrot.lane.b32.xlu1 %v4743_v52, %s4087_s18  ;;  %3723 = vrot.lane.b32.xlu0 %v4743_v52, %s4086_s17  ;;  %v2921_v38 = vpack.c.bf16 %v1167_v27, %v1149_v31 }
 0x3ab   : > { %v1186_v44 = vsel %vm525_vm3, %v3640_v63, %v3641_v25  ;;  %v1204_v23 = vsel %vm5892_vm0, %v3645_v61, %v3646_v20  ;;  %v1203_v0 = vsel %vm5893_vm4, %v4697_v1, %v3645_v61  ;;  %v1185_v5 = vsel %vm525_vm3, %v4590_v24, %v3640_v63  ;;  %vm5900_vm4 = vmmov %vm5892_vm0 }
 0x3ac   : > { %2918 = vmatpush1.bf16.msra.mxu0 %v2917_v17  ;;  %v4780_v42 = vpop.permute.xlu1 %3653  ;;  %v4782_v45 = vpop.permute.xlu0 %3648  ;;  %v2923_v16 = vpack.c.bf16 %v1204_v23, %v1186_v44  ;;  %v2925_v24 = vpack.c.bf16 %v1203_v0, %v1185_v5 }
 0x3ad   : > { %v3656_v60 = vunpack.i.h.bf16 %v4780_v42  ;;  %v3655_v30 = vunpack.i.l.bf16 %v4780_v42  ;;  %v3651_v21 = vunpack.i.h.bf16 %v4782_v45  ;;  %v3650_v54 = vunpack.i.l.bf16 %v4782_v45  ;;  %2920 = vmatprep.subr.bf16.mxu0 %v2919_v35  ;;  %v1607_v45 = vld [vmem:[%s5867_s5 + $0xc8] sm:$0xff] }
 0x3ae   : > { %3738 = vrot.lane.b32.xlu1 %v4743_v52, %s4089_s20  ;;  %3733 = vrot.lane.b32.xlu0 %v4743_v52, %s4088_s19  ;;  %s4096_s19 = smov 26   ;;  %s4097_s20 = smov 116  }
 0x3af   : > { %v1222_v35 = vsel %vm563_vm2, %v3650_v54, %v3651_v21  ;;  %v1240_v53 = vsel %vm582_vm15, %v3655_v30, %v3656_v60  ;;  %v1239_v63 = vsel %vm582_vm15, %v4721_v28, %v3655_v30  ;;  %v1221_v27 = vsel %vm563_vm2, %v4666_v34, %v3650_v54 }
 0x3b0   : > { %2922 = vmatpush1.bf16.msra.mxu0 %v2921_v38  ;;  %v986_v26 = vpop.permute.xlu1 %985  ;;  %v4802_v17 = vpop.permute.xlu0 %3658  ;;  %v2927_v31 = vpack.c.bf16 %v1240_v53, %v1222_v35  ;;  %v2929_v53 = vpack.c.bf16 %v1239_v63, %v1221_v27 }
 0x3b1   : > { %v990_v1 = vsel %vm316_vm1, %v3555_v40, %v986_v26  ;;  %2924 = vmatprep.subr.bf16.mxu0 %v2923_v16  ;;  %v3661_v3 = vunpack.i.h.bf16 %v4802_v17 }
 0x3b2   : > { %3748 = vrot.lane.b32.xlu1 %v4743_v52, %s4091_s22  ;;  %3743 = vrot.lane.b32.xlu0 %v4743_v52, %s4090_s21  ;;  %v2947_v61 = vpack.c.bf16 %v990_v1, %v4530_v18  ;;  %v3762_v48 = vpack.i.bf16 %v986_v26, %v990_v1  ;;  %s4098_s21 = smov 115   ;;  %s4099_s22 = smov 117  }
 0x3b4   : > { %2926 = vmatpush1.bf16.msra.mxu0 %v2925_v24  ;;  %2948 = vmatprep.subr.bf16.mxu1 %v2947_v61  ;;  %v1004_v40 = vpop.permute.xlu1 %1003  ;;  %v1022_v44 = vpop.permute.xlu0 %1021 }
 0x3b5   : > { %v1008_v23 = vsel %vm335_vm5, %v3565_v55, %v1004_v40  ;;  %v1026_v18 = vsel %vm354_vm6, %v3575_v62, %v1022_v44  ;;  %2928 = vmatprep.subr.bf16.mxu0 %v2927_v31  ;;  %2950 = vmatpush1.bf16.msra.mxu1 %v2949_v36 }
 0x3b6   : > { %3758 = vrot.lane.b32.xlu1 %v4743_v52, %s5885_s30  ;;  %3753 = vrot.lane.b32.xlu0 %v4743_v52, %s4092_s23  ;;  %v2951_v14 = vpack.c.bf16 %v1026_v18, %v1008_v23  ;;  %v3767_v34 = vpack.i.bf16 %v1004_v40, %v1008_v23  ;;  %v3772_v28 = vpack.i.bf16 %v1022_v44, %v1026_v18  ;;  %s4100_s23 = smov 113  }
 0x3b8   : > { %2930 = vmatpush1.bf16.msra.mxu0 %v2929_v53  ;;  %v1256_v55 = vpop.permute.xlu1 %1255  ;;  %2952 = vmatprep.subr.bf16.mxu1 %v2951_v14  ;;  %v1058_v62 = vpop.permute.xlu0 %1057 }
 0x3b9   : > { %v1260_v59 = vsel %vm601_vm7, %v3595_v19, %v1256_v55  ;;  %2954 = vmatpush1.bf16.msra.mxu1 %v2953_v43  ;;  %v4844_v57 = vsel %vm392_vm8, %v3585_v8, %v1058_v62  ;;  %v3660_v8 = vunpack.i.l.bf16 %v4802_v17  ;;  %vm5894_vm7 = vcmask 850944  }
 0x3ba   : > { %3768 = vrot.lane.b32.xlu1 %v3767_v34, %s5885_s30  ;;  %3763 = vrot.lane.b32.xlu0 %v3762_v48, %s5885_s30  ;;  %v3777_v52 = vpack.i.bf16 %v1256_v55, %v1260_v59  ;;  %v3782_v13 = vpack.i.bf16 %v1058_v62, %v4844_v57  ;;  %vm5895_vm8 = vmmov %vm5894_vm7 }
 0x3bb   : > { %v1352_v35 = vsel %vm696_vm14, %v3660_v8, %v3661_v3 }
 0x3bc   : > { %v1076_v30 = vpop.permute.xlu1 %1075 }
 0x3bd   : > { %v4849_v2 = vsel %vm411_vm9, %v3605_v39, %v1076_v30  ;;  %vm5896_vm9 = vcmask 711680  }
 0x3be   : > { %3778 = vrot.lane.b32.xlu1 %v3777_v52, %s5885_s30  ;;  %3773 = vrot.lane.b32.xlu0 %v3772_v28, %s5885_s30  ;;  %v3787_v19 = vpack.i.bf16 %v1076_v30, %v4849_v2 }
 0x3c2   : > { %3788 = vrot.lane.b32.xlu1 %v3787_v19, %s5885_s30  ;;  %3783 = vrot.lane.b32.xlu0 %v3782_v13, %s5885_s30 }
 0x3f4   : > { %v4859_v33 = vpop.permute.xlu1 %3663  ;;  %v3669_v39 = vpop.permute.xlu0 %3668 }
 0x3f5   : > { %v3666_v54 = vunpack.i.h.bf16 %v4859_v33  ;;  %v3665_v38 = vunpack.i.l.bf16 %v4859_v33  ;;  %v3671_v0 = vunpack.i.h.bf16 %v3669_v39  ;;  %v3670_v5 = vunpack.i.l.bf16 %v3669_v39 }
 0x3f7   : > { %v1355_v16 = vsel %vm696_vm14, %v3671_v0, %v3665_v38  ;;  %v1351_v26 = vsel %vm696_vm14, %v3670_v5, %v3660_v8  ;;  %v1356_v1 = vsel %vm696_vm14, %v3665_v38, %v3666_v54 }
 0x3f8   : > { %v4871_v24 = vpop.permute.xlu0 %3673  ;;  %v2931_v61 = vpack.c.bf16 %v1356_v1, %v1352_v35  ;;  %v2933_v63 = vpack.c.bf16 %v1355_v16, %v1351_v26 }
 0x3f9   : > { %v3676_v27 = vunpack.i.h.bf16 %v4871_v24  ;;  %v3675_v31 = vunpack.i.l.bf16 %v4871_v24 }
 0x3fa   : > { %2932 = vmatprep.subr.bf16.mxu0 %v2931_v61 }
 0x3fb   : > { %2934 = vmatpush1.bf16.msra.mxu0 %v2933_v63  ;;  %v1360_v48 = vsel %vm696_vm14, %v3675_v31, %v3676_v27 }
 0x3fc   : > { %v4875_v36 = vpop.permute.xlu1 %3678  ;;  %v3684_v40 = vpop.permute.xlu0 %3683 }
 0x3fd   : > { %v3681_v44 = vunpack.i.h.bf16 %v4875_v36  ;;  %v3680_v23 = vunpack.i.l.bf16 %v4875_v36  ;;  %v3686_v18 = vunpack.i.h.bf16 %v3684_v40  ;;  %v3685_v53 = vunpack.i.l.bf16 %v3684_v40 }
 0x3ff   : > { %v1363_v14 = vsel %vm696_vm14, %v3686_v18, %v3680_v23  ;;  %v1359_v43 = vsel %vm696_vm14, %v3685_v53, %v3675_v31  ;;  %v1364_v34 = vsel %vm696_vm14, %v3680_v23, %v3681_v44 }
 0x400   : > { %v4887_v55 = vpop.permute.xlu0 %3693  ;;  %v2935_v59 = vpack.c.bf16 %v1364_v34, %v1360_v48  ;;  %v2937_v62 = vpack.c.bf16 %v1363_v14, %v1359_v43 }
 0x401   : > { %v3696_v28 = vunpack.i.h.bf16 %v4887_v55  ;;  %v3695_v52 = vunpack.i.l.bf16 %v4887_v55 }
 0x402   : > { %2936 = vmatprep.subr.bf16.mxu0 %v2935_v59 }
 0x403   : > { %2938 = vmatpush1.bf16.msra.mxu0 %v2937_v62  ;;  %v1372_v39 = vsel %vm696_vm14, %v3695_v52, %v3696_v28 }
 0x404   : > { %v4891_v30 = vpop.permute.xlu1 %3688 }
 0x405   : > { %v3691_v13 = vunpack.i.h.bf16 %v4891_v30  ;;  %v3690_v19 = vunpack.i.l.bf16 %v4891_v30  ;;  %v1618_v30 = vld [vmem:[%s5867_s5 + $0x120] sm:$0xff] }
 0x407   : > { %v1368_v8 = vsel %vm696_vm14, %v3690_v19, %v3691_v13 }
 0x408   : > { %v3699_v38 = vpop.permute.xlu1 %3698  ;;  %v4901_v0 = vpop.permute.xlu0 %3703  ;;  %v2939_v5 = vpack.c.bf16 %v1372_v39, %v1368_v8 }
 0x409   : > { %v3701_v16 = vunpack.i.h.bf16 %v3699_v38  ;;  %v3700_v26 = vunpack.i.l.bf16 %v3699_v38  ;;  %v3706_v61 = vunpack.i.h.bf16 %v4901_v0  ;;  %v3705_v63 = vunpack.i.l.bf16 %v4901_v0 }
 0x40a   : > { %2940 = vmatprep.subr.bf16.mxu0 %v2939_v5 }
 0x40b   : > { %v1367_v35 = vsel %vm696_vm14, %v3700_v26, %v3690_v19  ;;  %v1371_v1 = vsel %vm696_vm14, %v3701_v16, %v3695_v52  ;;  %v1376_v59 = vsel %vm696_vm14, %v3705_v63, %v3706_v61 }
 0x40c   : > { %v4907_v31 = vpop.permute.xlu1 %3708  ;;  %v3714_v40 = vpop.permute.xlu0 %3713  ;;  %v2941_v23 = vpack.c.bf16 %v1371_v1, %v1367_v35 }
 0x40d   : > { %v3711_v18 = vunpack.i.h.bf16 %v4907_v31  ;;  %v3710_v53 = vunpack.i.l.bf16 %v4907_v31  ;;  %v3716_v14 = vunpack.i.h.bf16 %v3714_v40  ;;  %v3715_v43 = vunpack.i.l.bf16 %v3714_v40 }
 0x40e   : > { %2942 = vmatpush1.bf16.msra.mxu0 %v2941_v23 }
 0x40f   : > { %v1379_v48 = vsel %vm696_vm14, %v3716_v14, %v3710_v53  ;;  %v1375_v34 = vsel %vm696_vm14, %v3715_v43, %v3705_v63  ;;  %v1380_v62 = vsel %vm696_vm14, %v3710_v53, %v3711_v18  ;;  %v4931_v63 = vld [vmem:[%s5863_s1 + $0x10] sm:$0xff] }
 0x410   : > { %v1344_v52 = vpop.permute.xlu1 %1343  ;;  %v1094_v19 = vpop.permute.xlu0 %1093  ;;  %v2943_v8 = vpack.c.bf16 %v1380_v62, %v1376_v59  ;;  %v2945_v39 = vpack.c.bf16 %v1379_v48, %v1375_v34  ;;  %v2746_v48 = vld [vmem:[%s5864_s2 + $0x8] sm:$0xff] }
 0x411   : > { %v1098_v38 = vsel %vm430_vm10, %v3615_v58, %v1094_v19  ;;  %vm5897_vm10 = vmmov %vm5891_vm11 }
 0x412   : > { %v3792_v5 = vpack.i.bf16 %v1094_v19, %v1098_v38  ;;  %2944 = vmatprep.subr.bf16.mxu0 %v2943_v8  ;;  %v1582_v8 = vld [vmem:[%s5867_s5] sm:$0xff]  ;;  %vm5899_vm11 = vmmov %vm5897_vm10 }
 0x413   : > { %2946 = vmatpush1.bf16.msra.mxu0 %v2945_v39 }
 0x414   : > { %v1342_v16 = vpop.permute.xlu1 %1341  ;;  %3793 = vrot.lane.b32.xlu0 %v3792_v5, %s5885_s30  ;;  %v4923_v26 = vpop.permute.xlu0 %1345  ;;  %v1587_v5 = vld [vmem:[%s5867_s5 + $0x28] sm:$0xff] }
 0x415   : > { %v1383_v35 = vsel %vm696_vm14, %v1342_v16, %v1344_v52  ;;  %v1384_v1 = vsel %vm696_vm14, %v1344_v52, %v4923_v26 }
 0x416   : > { %1484 = vmatprep.subr.mxu0 %v1384_v1 }
 0x417   : > { %1485 = vmatpush1.msra.mxu0 %v1383_v35  ;;  %v1589_v35 = vld [vmem:[%s5867_s5 + $0x38] sm:$0xff] }
 0x418   : > { %v3719_v50 = vpop.permute.xlu1 %3718  ;;  %v1112_v58 = vpop.permute.xlu0 %1111  ;;  %1501 = vmatmul.mubr.f32.vlgmr.msra.gmra.mrb[2].mxu0 %v4931_v63 }
 0x419   : > { %v3721_v40 = vunpack.i.h.bf16 %v3719_v50  ;;  %v3720_v23 = vunpack.i.l.bf16 %v3719_v50  ;;  %1349 = vrot.lane.b32.xlu0 %v1112_v58, %s5885_s30  ;;  %v1116_v53 = vsel %vm449_vm12, %v4699_v4, %v1112_v58  ;;  %vm5898_vm12 = vmmov %vm5896_vm9 }
 0x41a   : > { %1347 = vrot.lane.b32.xlu1 %v1116_v53, %s5885_s30  ;;  %s4105_s30 = smov 103  }
 0x41b   : > { %v1043_v14 = vsel %vm373_vm13, %v3621_v15, %v3720_v23  ;;  %v1044_v43 = vsel %vm373_vm13, %v3720_v23, %v3721_v40  ;;  %v1585_v15 = vld [vmem:[%s5867_s5 + $0x18] sm:$0xff] }
 0x41c   : > { %v3729_v34 = vpop.permute.xlu1 %3728  ;;  %v3724_v59 = vpop.permute.xlu0 %3723  ;;  %v2955_v62 = vpack.c.bf16 %v4844_v57, %v1044_v43  ;;  %v2957_v52 = vpack.c.bf16 %v4650_v12, %v1043_v14  ;;  %v2959_v57 = vpack.c.bf16 %v1098_v38, %v4849_v2  ;;  %v2995_v39 = vpack.c.bf16 %v1585_v15, %v1583_v11  ;;  %v1584_v12 = vld [vmem:[%s5867_s5 + $0x10] sm:$0xff]  ;;  %v1586_v2 = vld [vmem:[%s5867_s5 + $0x20] sm:$0xff] }
 0x41d   : > { %v3726_v19 = vunpack.i.h.bf16 %v3724_v59  ;;  %v3725_v4 = vunpack.i.l.bf16 %v3724_v59  ;;  %v1588_v38 = vld [vmem:[%s5867_s5 + $0x30] sm:$0xff]  ;;  %v3731_v1 = vunpack.i.h.bf16 %v3729_v34  ;;  %v3730_v50 = vunpack.i.l.bf16 %v3729_v34  ;;  %v1593_v59 = vld [vmem:[%s5867_s5 + $0x58] sm:$0xff]  ;;  %v1590_v15 = vld [vmem:[%s5867_s5 + $0x40] sm:$0xff] }
 0x41e   : > { %2956 = vmatprep.subr.bf16.mxu1 %v2955_v62  ;;  %1430 = vperm.xlu1 %3546, %v2746_v48   ;;  %v2997_v23 = vpack.c.bf16 %v1584_v12, %v1582_v8  ;;  %v1591_v48 = vld [vmem:[%s5867_s5 + $0x48] sm:$0xff] }
 0x41f   : > { %2958 = vmatpush1.bf16.msra.mxu1 %v2957_v52  ;;  %v1134_v16 = vsel %vm5894_vm7, %v3725_v4, %v3726_v19  ;;  %2996 = vmatprep.subr.bf16.mxu0 %v2995_v39  ;;  %v1133_v34 = vsel %vm5895_vm8, %v3626_v37, %v3725_v4  ;;  %v2999_v52 = vpack.c.bf16 %v1589_v35, %v1587_v5  ;;  %v1595_v5 = vld [vmem:[%s5867_s5 + $0x68] sm:$0xff]  ;;  %vm2033_vm7 = vcmask 957440  }
 0x420   : > { %v4973_v58 = vpop.permute.xlu1 %3738  ;;  %2960 = vmatprep.subr.bf16.mxu1 %v2959_v57  ;;  %v3734_v40 = vpop.permute.xlu0 %3733  ;;  %v2963_v62 = vpack.c.bf16 %v1134_v16, %v1116_v53  ;;  %2998 = vmatpush1.bf16.msra.mxu0 %v2997_v23  ;;  %v3001_v19 = vpack.c.bf16 %v1588_v38, %v1586_v2  ;;  %v1152_v46 = vsel %vm5897_vm10, %v3730_v50, %v3731_v1  ;;  %v1597_v16 = vld [vmem:[%s5867_s5 + $0x78] sm:$0xff]  ;;  %v1596_v38 = vld [vmem:[%s5867_s5 + $0x70] sm:$0xff]  ;;  %vm1913_vm8 = vcmask 949248  }
 0x421   : > { %v3736_v14 = vunpack.i.h.bf16 %v3734_v40  ;;  %v3735_v43 = vunpack.i.l.bf16 %v3734_v40  ;;  %v3741_v37 = vunpack.i.h.bf16 %v4973_v58  ;;  %v3740_v53 = vunpack.i.l.bf16 %v4973_v58  ;;  %3000 = vmatprep.subr.bf16.mxu0 %v2999_v52 }
 0x422   : > { %v3003_v32 = vpack.c.bf16 %v1593_v59, %v1591_v48  ;;  %v2965_v12 = vpack.c.bf16 %v1133_v34, %v4732_v22  ;;  %v3005_v2 = vpack.c.bf16 %v1592_v29, %v1590_v15  ;;  %v1151_v9 = vsel %vm5899_vm11, %v3631_v56, %v3730_v50  ;;  %v1594_v22 = vld [vmem:[%s5867_s5 + $0x60] sm:$0xff]  ;;  %v1599_v48 = vld [vmem:[%s5867_s5 + $0x88] sm:$0xff]  ;;  %v1601_v59 = vld [vmem:[%s5867_s5 + $0x98] sm:$0xff] }
 0x423   : > { %2962 = vmatpush1.bf16.msra.mxu1 %v2961_v7  ;;  %v1170_v11 = vsel %vm5896_vm9, %v3735_v43, %v3736_v14  ;;  %v1169_v7 = vsel %vm5898_vm12, %v3636_v51, %v3735_v43  ;;  %v1188_v41 = vsel %vm525_vm3, %v3740_v53, %v3741_v37  ;;  %v3007_v56 = vpack.c.bf16 %v1597_v16, %v1595_v5  ;;  %v1600_v15 = vld [vmem:[%s5867_s5 + $0x90] sm:$0xff] }
 0x424   : > { %v4996_v4 = vpop.permute.xlu1 %3748  ;;  %v3744_v8 = vpop.permute.xlu0 %3743  ;;  %2964 = vmatprep.subr.bf16.mxu1 %v2963_v62  ;;  %v2967_v35 = vpack.c.bf16 %v1170_v11, %v1152_v46  ;;  %3002 = vmatpush1.bf16.msra.mxu0 %v3001_v19  ;;  %v2969_v40 = vpack.c.bf16 %v1169_v7, %v1151_v9  ;;  %v3009_v52 = vpack.c.bf16 %v1596_v38, %v1594_v22  ;;  %v1598_v11 = vld [vmem:[%s5867_s5 + $0x80] sm:$0xff]  ;;  %v1603_v46 = vld [vmem:[%s5867_s5 + $0xa8] sm:$0xff]  ;;  %vm1935_vm9 = vcmask 932864  }
 0x425   : > { %v3746_v57 = vunpack.i.h.bf16 %v3744_v8  ;;  %v3745_v39 = vunpack.i.l.bf16 %v3744_v8  ;;  %3004 = vmatprep.subr.bf16.mxu0 %v3003_v32  ;;  %v3751_v50 = vunpack.i.h.bf16 %v4996_v4  ;;  %v3750_v23 = vunpack.i.l.bf16 %v4996_v4 }
 0x426   : > { %v1187_v6 = vsel %vm525_vm3, %v3641_v25, %v3740_v53  ;;  %v3011_v8 = vpack.c.bf16 %v1601_v59, %v1599_v48  ;;  %v3015_v16 = vpack.c.bf16 %v1605_v10, %v1603_v46  ;;  %v1617_v46 = vld [vmem:[%s5867_s5 + $0x118] sm:$0xff]  ;;  %vm1858_vm3 = vcmask 211968  }
 0x427   : > { %2966 = vmatpush1.bf16.msra.mxu1 %v2965_v12  ;;  %v1206_v51 = vsel %vm5892_vm0, %v3745_v39, %v3746_v57  ;;  %v1205_v34 = vsel %vm5900_vm4, %v3646_v20, %v3745_v39  ;;  %v1224_v7 = vsel %vm563_vm2, %v3750_v23, %v3751_v50  ;;  %v3013_v12 = vpack.c.bf16 %v1600_v15, %v1598_v11 }
 0x428   : > { %v5019_v1 = vpop.permute.xlu1 %3758  ;;  %v3754_v58 = vpop.permute.xlu0 %3753  ;;  %2968 = vmatprep.subr.bf16.mxu1 %v2967_v35  ;;  %v2971_v62 = vpack.c.bf16 %v1206_v51, %v1188_v41  ;;  %3006 = vmatpush1.bf16.msra.mxu0 %v3005_v2  ;;  %v2973_v53 = vpack.c.bf16 %v1205_v34, %v1187_v6  ;;  %v1602_v35 = vld [vmem:[%s5867_s5 + $0xa0] sm:$0xff]  ;;  %v1604_v2 = vld [vmem:[%s5867_s5 + $0xb0] sm:$0xff]  ;;  %v1223_v42 = vsel %vm563_vm2, %v3651_v21, %v3750_v23  ;;  %v1609_v21 = vld [vmem:[%s5867_s5 + $0xd8] sm:$0xff]  ;;  %vm1924_vm10 = vcmask 941056  }
 0x429   : > { %v3756_v14 = vunpack.i.h.bf16 %v3754_v58  ;;  %v3755_v43 = vunpack.i.l.bf16 %v3754_v58  ;;  %v3761_v20 = vunpack.i.h.bf16 %v5019_v1  ;;  %v3760_v29 = vunpack.i.l.bf16 %v5019_v1  ;;  %3008 = vmatprep.subr.bf16.mxu0 %v3007_v56  ;;  %v1606_v23 = vld [vmem:[%s5867_s5 + $0xc0] sm:$0xff]  ;;  %v1613_v34 = vld [vmem:[%s5867_s5 + $0xf8] sm:$0xff] }
 0x42a   : > { %v3017_v50 = vpack.c.bf16 %v1604_v2, %v1602_v35  ;;  %v3019_v17 = vpack.c.bf16 %v1609_v21, %v1607_v45  ;;  %v1623_v35 = vld [vmem:[%s5867_s5 + $0x148] sm:$0xff]  ;;  %v1625_v2 = vld [vmem:[%s5867_s5 + $0x158] sm:$0xff]  ;;  %v1628_v45 = vld [vmem:[%s5867_s5 + $0x170] sm:$0xff]  ;;  %vm1946_vm12 = vcmask 924672   ;;  %vm5904_vm11 = vcmask 588800  }
 0x42b   : > { %2970 = vmatpush1.bf16.msra.mxu1 %v2969_v40  ;;  %v1242_v19 = vsel %vm582_vm15, %v3755_v43, %v3756_v14  ;;  %v1241_v57 = vsel %vm582_vm15, %v3656_v60, %v3755_v43  ;;  %v1354_v22 = vsel %vm696_vm14, %v3760_v29, %v3761_v20  ;;  %v1353_v33 = vsel %vm696_vm14, %v3661_v3, %v3760_v29  ;;  %v1608_v14 = vld [vmem:[%s5867_s5 + $0xd0] sm:$0xff]  ;;  %v1611_v3 = vld [vmem:[%s5867_s5 + $0xe8] sm:$0xff] }
 0x42c   : > { %v5045_v37 = vpop.permute.xlu1 %3768  ;;  %v3764_v4 = vpop.permute.xlu0 %3763  ;;  %2972 = vmatprep.subr.bf16.mxu1 %v2971_v62  ;;  %v2975_v39 = vpack.c.bf16 %v1242_v19, %v1224_v7  ;;  %3010 = vmatpush1.bf16.msra.mxu0 %v3009_v52  ;;  %v2977_v40 = vpack.c.bf16 %v1241_v57, %v1223_v42  ;;  %v3021_v20 = vpack.c.bf16 %v1608_v14, %v1606_v23  ;;  %v1614_v7 = vld [vmem:[%s5867_s5 + $0x100] sm:$0xff]  ;;  %v1616_v57 = vld [vmem:[%s5867_s5 + $0x110] sm:$0xff]  ;;  %v1631_v21 = vld [vmem:[%s5867_s5 + $0x188] sm:$0xff]  ;;  %vm5901_vm15 = vmmov 1  }
 0x42d   : > { %v3766_v32 = vunpack.i.h.bf16 %v3764_v4  ;;  %v3765_v25 = vunpack.i.l.bf16 %v3764_v4  ;;  %v3771_v60 = vunpack.i.h.bf16 %v5045_v37  ;;  %v3770_v9 = vunpack.i.l.bf16 %v5045_v37  ;;  %3012 = vmatprep.subr.bf16.mxu0 %v3011_v8  ;;  %v1610_v4 = vld [vmem:[%s5867_s5 + $0xe0] sm:$0xff]  ;;  %v1612_v8 = vld [vmem:[%s5867_s5 + $0xf0] sm:$0xff]  ;;  %v1635_v23 = vld [vmem:[%s5867_s5 + $0x1a8] sm:$0xff] }
 0x42e   : > { %v3023_v37 = vpack.c.bf16 %v1613_v34, %v1611_v3  ;;  %v1637_v14 = vld [vmem:[%s5867_s5 + $0x1b8] sm:$0xff]  ;;  %v1639_v3 = vld [vmem:[%s5867_s5 + $0x1c8] sm:$0xff]  ;;  %vm5879_vm0 = vcmask 916480   ;;  %vm1978_vm4 = vcmask 842752  }
 0x42f   : > { %2974 = vmatpush1.bf16.msra.mxu1 %v2973_v53  ;;  %v1358_v5 = vsel %vm696_vm14, %v3765_v25, %v3766_v32  ;;  %v1357_v38 = vsel %vm696_vm14, %v3666_v54, %v3765_v25  ;;  %v1362_v59 = vsel %vm696_vm14, %v3770_v9, %v3771_v60  ;;  %v1361_v36 = vsel %vm696_vm14, %v3676_v27, %v3770_v9  ;;  %v1622_v9 = vld [vmem:[%s5867_s5 + $0x140] sm:$0xff]  ;;  %v1641_v34 = vld [vmem:[%s5867_s5 + $0x1d8] sm:$0xff] }
 0x430   : > { %v3774_v51 = vpop.permute.xlu0 %3773  ;;  %2976 = vmatprep.subr.bf16.mxu1 %v2975_v39  ;;  %v3779_v41 = vpop.permute.xlu1 %3778  ;;  %v2979_v56 = vpack.c.bf16 %v1358_v5, %v1354_v22  ;;  %3014 = vmatpush1.bf16.msra.mxu0 %v3013_v12  ;;  %v2981_v48 = vpack.c.bf16 %v1357_v38, %v1353_v33  ;;  %v3025_v27 = vpack.c.bf16 %v1612_v8, %v1610_v4  ;;  %v1621_v39 = vld [vmem:[%s5867_s5 + $0x138] sm:$0xff]  ;;  %v1627_v22 = vld [vmem:[%s5867_s5 + $0x168] sm:$0xff]  ;;  %v1630_v33 = vld [vmem:[%s5867_s5 + $0x180] sm:$0xff] }
 0x431   : > { %v3776_v1 = vunpack.i.h.bf16 %v3774_v51  ;;  %v3775_v58 = vunpack.i.l.bf16 %v3774_v51  ;;  %3016 = vmatprep.subr.bf16.mxu0 %v3015_v16  ;;  %v3781_v62 = vunpack.i.h.bf16 %v3779_v41  ;;  %v3780_v52 = vunpack.i.l.bf16 %v3779_v41  ;;  %v1624_v51 = vld [vmem:[%s5867_s5 + $0x150] sm:$0xff]  ;;  %v1629_v38 = vld [vmem:[%s5867_s5 + $0x178] sm:$0xff] }
 0x432   : > { %v3029_v5 = vpack.c.bf16 %v1616_v57, %v1614_v7  ;;  %v3035_v60 = vpack.c.bf16 %v1625_v2, %v1623_v35  ;;  %v1633_v41 = vld [vmem:[%s5867_s5 + $0x198] sm:$0xff]  ;;  %v1644_v4 = vld [vmem:[%s5867_s5 + $0x1f0] sm:$0xff]  ;;  %v1646_v35 = vld [vmem:[%s5867_s5 + $0x200] sm:$0xff] }
 0x433   : > { %2978 = vmatpush1.bf16.msra.mxu1 %v2977_v40  ;;  %v1366_v54 = vsel %vm696_vm14, %v3775_v58, %v3776_v1  ;;  %v1365_v15 = vsel %vm696_vm14, %v3681_v44, %v3775_v58  ;;  %v1615_v44 = vld [vmem:[%s5867_s5 + $0x108] sm:$0xff]  ;;  %v1370_v32 = vsel %vm696_vm14, %v3780_v52, %v3781_v62  ;;  %v1369_v55 = vsel %vm696_vm14, %v3691_v13, %v3780_v52  ;;  %v1620_v13 = vld [vmem:[%s5867_s5 + $0x130] sm:$0xff]  ;;  %v1626_v40 = vld [vmem:[%s5867_s5 + $0x160] sm:$0xff] }
 0x434   : > { %v3784_v43 = vpop.permute.xlu0 %3783  ;;  %2980 = vmatprep.subr.bf16.mxu1 %v2979_v56  ;;  %v2983_v6 = vpack.c.bf16 %v1366_v54, %v1362_v59  ;;  %3018 = vmatpush1.bf16.msra.mxu0 %v3017_v50  ;;  %v2985_v10 = vpack.c.bf16 %v1365_v15, %v1361_v36  ;;  %v3027_v53 = vpack.c.bf16 %v1617_v46, %v1615_v44  ;;  %v1632_v54 = vld [vmem:[%s5867_s5 + $0x190] sm:$0xff]  ;;  %v1634_v59 = vld [vmem:[%s5867_s5 + $0x1a0] sm:$0xff]  ;;  %v1647_v36 = vld [vmem:[%s5867_s5 + $0x208] sm:$0xff] }
 0x435   : > { %v3786_v19 = vunpack.i.h.bf16 %v3784_v43  ;;  %v3785_v11 = vunpack.i.l.bf16 %v3784_v43  ;;  %3020 = vmatprep.subr.bf16.mxu0 %v3019_v17  ;;  %v3033_v42 = vpack.c.bf16 %v1620_v13, %v1618_v30  ;;  %v3037_v1 = vpack.c.bf16 %v1624_v51, %v1622_v9  ;;  %v1636_v17 = vld [vmem:[%s5867_s5 + $0x1b0] sm:$0xff]  ;;  %v1649_v44 = vld [vmem:[%s5867_s5 + $0x218] sm:$0xff] }
 0x436   : > { %v3039_v58 = vpack.c.bf16 %v1629_v38, %v1627_v22  ;;  %v3041_v56 = vpack.c.bf16 %v1628_v45, %v1626_v40  ;;  %v3043_v50 = vpack.c.bf16 %v1633_v41, %v1631_v21  ;;  %v3045_v43 = vpack.c.bf16 %v1632_v54, %v1630_v33  ;;  %v1648_v2 = vld [vmem:[%s5867_s5 + $0x210] sm:$0xff]  ;;  %v1650_v38 = vld [vmem:[%s5867_s5 + $0x220] sm:$0xff]  ;;  %v1657_v40 = vld [vmem:[%s5867_s5 + $0x258] sm:$0xff] }
 0x437   : > { %2982 = vmatpush1.bf16.msra.mxu1 %v2981_v48  ;;  %v1374_v29 = vsel %vm696_vm14, %v3785_v11, %v3786_v19  ;;  %v1373_v25 = vsel %vm696_vm14, %v3696_v28, %v3785_v11  ;;  %v1619_v28 = vld [vmem:[%s5867_s5 + $0x128] sm:$0xff]  ;;  %v3047_v48 = vpack.c.bf16 %v1637_v14, %v1635_v23  ;;  %v3049_v62 = vpack.c.bf16 %v1636_v17, %v1634_v59  ;;  %v1638_v19 = vld [vmem:[%s5867_s5 + $0x1c0] sm:$0xff]  ;;  %v1640_v11 = vld [vmem:[%s5867_s5 + $0x1d0] sm:$0xff] }
 0x438   : > { %2984 = vmatprep.subr.bf16.mxu1 %v2983_v6  ;;  %v2987_v24 = vpack.c.bf16 %v1374_v29, %v1370_v32  ;;  %3022 = vmatpush1.bf16.msra.mxu0 %v3021_v20  ;;  %v2989_v12 = vpack.c.bf16 %v1373_v25, %v1369_v55  ;;  %v3031_v16 = vpack.c.bf16 %v1621_v39, %v1619_v28  ;;  %v1643_v6 = vld [vmem:[%s5867_s5 + $0x1e8] sm:$0xff]  ;;  %v1645_v20 = vld [vmem:[%s5867_s5 + $0x1f8] sm:$0xff]  ;;  %v1642_v29 = vld [vmem:[%s5867_s5 + $0x1e0] sm:$0xff] }
 0x439   : > { %3024 = vmatprep.subr.bf16.mxu0 %v3023_v37  ;;  %v3051_v52 = vpack.c.bf16 %v1641_v34, %v1639_v3  ;;  %v3053_v15 = vpack.c.bf16 %v1640_v11, %v1638_v19  ;;  %v3055_v37 = vpack.c.bf16 %v1645_v20, %v1643_v6  ;;  %v3057_v8 = vpack.c.bf16 %v1644_v4, %v1642_v29  ;;  %v1654_v41 = vld [vmem:[%s5867_s5 + $0x240] sm:$0xff]  ;;  %v1661_v33 = vld [vmem:[%s5867_s5 + $0x278] sm:$0xff]  ;;  %v1668_v20 = vld [vmem:[%s5867_s5 + $0x2b0] sm:$0xff] }
 0x43a   : > { %v3059_v46 = vpack.c.bf16 %v1649_v44, %v1647_v36  ;;  %v3061_v9 = vpack.c.bf16 %v1648_v2, %v1646_v35  ;;  %v1658_v14 = vld [vmem:[%s5867_s5 + $0x260] sm:$0xff]  ;;  %v1665_v59 = vld [vmem:[%s5867_s5 + $0x298] sm:$0xff]  ;;  %v1671_v29 = vld [vmem:[%s5867_s5 + $0x2c8] sm:$0xff] }
 0x43b   : > { %2986 = vmatpush1.bf16.msra.mxu1 %v2985_v10  ;;  %v3789_v10 = vpop.permute.xlu1 %3788  ;;  %v1662_v34 = vld [vmem:[%s5867_s5 + $0x280] sm:$0xff]  ;;  %v1669_v19 = vld [vmem:[%s5867_s5 + $0x2b8] sm:$0xff]  ;;  %v1672_v44 = vld [vmem:[%s5867_s5 + $0x2d0] sm:$0xff] }
 0x43c   : > { %2988 = vmatprep.subr.bf16.mxu1 %v2987_v24  ;;  %3026 = vmatpush1.bf16.msra.mxu0 %v3025_v27  ;;  %v3791_v32 = vunpack.i.h.bf16 %v3789_v10  ;;  %v3790_v25 = vunpack.i.l.bf16 %v3789_v10  ;;  %v1666_v6 = vld [vmem:[%s5867_s5 + $0x2a0] sm:$0xff]  ;;  %v1677_v10 = vld [vmem:[%s5867_s5 + $0x2f8] sm:$0xff] }
 0x43d   : > { %3028 = vmatprep.subr.bf16.mxu0 %v3027_v53  ;;  %v3081_v4 = vpack.c.bf16 %v1668_v20, %v1666_v6  ;;  %v1670_v36 = vld [vmem:[%s5867_s5 + $0x2c0] sm:$0xff]  ;;  %v1708_v6 = vld [vmem:[%s5867_s5 + $0x3f0] sm:$0xff] }
 0x43e   : > { %v1377_v7 = vsel %vm696_vm14, %v3706_v61, %v3790_v25  ;;  %v1378_v55 = vsel %vm696_vm14, %v3790_v25, %v3791_v32  ;;  %v3085_v32 = vpack.c.bf16 %v1672_v44, %v1670_v36 }
 0x43f   : > { %2990 = vmatpush1.bf16.msra.mxu1 %v2989_v12 }
 0x440   : > { %3030 = vmatpush1.bf16.msra.mxu0 %v3029_v5 }
 0x441   : > { %3032 = vmatprep.subr.bf16.mxu0 %v3031_v16 }
 0x444   : > { %3034 = vmatpush1.bf16.msra.mxu0 %v3033_v42 }
 0x445   : > { %3036 = vmatprep.subr.bf16.mxu0 %v3035_v60 }
 0x448   : > { %3038 = vmatpush1.bf16.msra.mxu0 %v3037_v1  ;;  %v1652_v1 = vld [vmem:[%s5867_s5 + $0x230] sm:$0xff] }
 0x449   : > { %3040 = vmatprep.subr.bf16.mxu0 %v3039_v58  ;;  %v1655_v58 = vld [vmem:[%s5867_s5 + $0x248] sm:$0xff]  ;;  %v3065_v45 = vpack.c.bf16 %v1652_v1, %v1650_v38  ;;  %v1692_v38 = vld [vmem:[%s5867_s5 + $0x370] sm:$0xff] }
 0x44a   : > { %v3067_v21 = vpack.c.bf16 %v1657_v40, %v1655_v58  ;;  %v1695_v1 = vld [vmem:[%s5867_s5 + $0x388] sm:$0xff]  ;;  %v1697_v58 = vld [vmem:[%s5867_s5 + $0x398] sm:$0xff] }
 0x44c   : > { %3042 = vmatpush1.bf16.msra.mxu0 %v3041_v56  ;;  %v1656_v56 = vld [vmem:[%s5867_s5 + $0x250] sm:$0xff] }
 0x44d   : > { %3044 = vmatprep.subr.bf16.mxu0 %v3043_v50  ;;  %v1659_v50 = vld [vmem:[%s5867_s5 + $0x268] sm:$0xff]  ;;  %v3069_v54 = vpack.c.bf16 %v1656_v56, %v1654_v41  ;;  %v1696_v41 = vld [vmem:[%s5867_s5 + $0x390] sm:$0xff] }
 0x44e   : > { %v3071_v23 = vpack.c.bf16 %v1661_v33, %v1659_v50  ;;  %v1699_v56 = vld [vmem:[%s5867_s5 + $0x3a8] sm:$0xff]  ;;  %v1701_v50 = vld [vmem:[%s5867_s5 + $0x3b8] sm:$0xff] }
 0x450   : > { %3046 = vmatpush1.bf16.msra.mxu0 %v3045_v43  ;;  %v1660_v43 = vld [vmem:[%s5867_s5 + $0x270] sm:$0xff] }
 0x451   : > { %3048 = vmatprep.subr.bf16.mxu0 %v3047_v48  ;;  %v1663_v48 = vld [vmem:[%s5867_s5 + $0x288] sm:$0xff]  ;;  %v3073_v17 = vpack.c.bf16 %v1660_v43, %v1658_v14  ;;  %v1700_v14 = vld [vmem:[%s5867_s5 + $0x3b0] sm:$0xff] }
 0x452   : > { %v3075_v3 = vpack.c.bf16 %v1665_v59, %v1663_v48  ;;  %v1703_v43 = vld [vmem:[%s5867_s5 + $0x3c8] sm:$0xff]  ;;  %v1705_v48 = vld [vmem:[%s5867_s5 + $0x3d8] sm:$0xff] }
 0x454   : > { %3050 = vmatpush1.bf16.msra.mxu0 %v3049_v62  ;;  %v1664_v62 = vld [vmem:[%s5867_s5 + $0x290] sm:$0xff] }
 0x455   : > { %3052 = vmatprep.subr.bf16.mxu0 %v3051_v52  ;;  %v1667_v52 = vld [vmem:[%s5867_s5 + $0x2a8] sm:$0xff]  ;;  %v3077_v11 = vpack.c.bf16 %v1664_v62, %v1662_v34  ;;  %v1704_v34 = vld [vmem:[%s5867_s5 + $0x3d0] sm:$0xff] }
 0x456   : > { %v1707_v62 = vld [vmem:[%s5867_s5 + $0x3e8] sm:$0xff] }
 0x458   : > { %3054 = vmatpush1.bf16.msra.mxu0 %v3053_v15  ;;  %v3079_v15 = vpack.c.bf16 %v1669_v19, %v1667_v52  ;;  %v1709_v52 = vld [vmem:[%s5867_s5 + $0x3f8] sm:$0xff] }
 0x459   : > { %3056 = vmatprep.subr.bf16.mxu0 %v3055_v37  ;;  %v1673_v37 = vld [vmem:[%s5867_s5 + $0x2d8] sm:$0xff] }
 0x45c   : > { %3058 = vmatpush1.bf16.msra.mxu0 %v3057_v8  ;;  %v3083_v8 = vpack.c.bf16 %v1673_v37, %v1671_v29 }
 0x45d   : > { %3060 = vmatprep.subr.bf16.mxu0 %v3059_v46  ;;  %v1675_v46 = vld [vmem:[%s5867_s5 + $0x2e8] sm:$0xff] }
 0x45e   : > { %v3087_v25 = vpack.c.bf16 %v1677_v10, %v1675_v46 }
 0x486   : > { %v3794_v24 = vpop.permute.xlu0 %3793 }
 0x487   : > { %v3796_v27 = vunpack.i.h.bf16 %v3794_v24  ;;  %v3795_v53 = vunpack.i.l.bf16 %v3794_v24  ;;  %v1674_v24 = vld [vmem:[%s5867_s5 + $0x2e0] sm:$0xff] }
 0x489   : > { %v1381_v57 = vsel %vm696_vm14, %v3711_v18, %v3795_v53  ;;  %v1382_v28 = vsel %vm696_vm14, %v3795_v53, %v3796_v27  ;;  %v1676_v27 = vld [vmem:[%s5867_s5 + $0x2f0] sm:$0xff]  ;;  %v1679_v53 = vld [vmem:[%s5867_s5 + $0x308] sm:$0xff] }
 0x48a   : > { %v2991_v39 = vpack.c.bf16 %v1382_v28, %v1378_v55  ;;  %v2993_v12 = vpack.c.bf16 %v1381_v57, %v1377_v7  ;;  %v1681_v7 = vld [vmem:[%s5867_s5 + $0x318] sm:$0xff]  ;;  %v3089_v57 = vpack.c.bf16 %v1676_v27, %v1674_v24  ;;  %v1678_v28 = vld [vmem:[%s5867_s5 + $0x300] sm:$0xff] }
 0x48b   : > { %v1350_v5 = vpop.permute.xlu0 %1349  ;;  %v3091_v55 = vpack.c.bf16 %v1681_v7, %v1679_v53 }
 0x48c   : > { %v1348_v16 = vpop.permute.xlu1 %1347  ;;  %2992 = vmatprep.subr.bf16.mxu1 %v2991_v39  ;;  %v1680_v39 = vld [vmem:[%s5867_s5 + $0x310] sm:$0xff] }
 0x48d   : > { %2994 = vmatpush1.bf16.msra.mxu1 %v2993_v12  ;;  %v1386_v30 = vsel %vm696_vm14, %v1348_v16, %v1350_v5  ;;  %v1385_v0 = vsel %vm696_vm14, %v4923_v26, %v1348_v16  ;;  %v1651_v26 = vld [vmem:[%s5867_s5 + $0x228] sm:$0xff]  ;;  %v1685_v5 = vld [vmem:[%s5867_s5 + $0x338] sm:$0xff]  ;;  %v3093_v16 = vpack.c.bf16 %v1680_v39, %v1678_v28  ;;  %vm2754_vm14 = vmneg %vm1858_vm3 }
 0x48e   : > { %1555 = vmatprep.subr.mxu1 %v1386_v30  ;;  %v1683_v12 = vld [vmem:[%s5867_s5 + $0x328] sm:$0xff]  ;;  %vm5500_vm2 = vmpackc.low %vm5901_vm15, %vm2754_vm14  ;;  %vm1989_vm14 = vcmask 834560   ;;  %vm5905_vm15 = vcmask 850944  }
 0x48f   : > { %v3095_v30 = vpack.c.bf16 %v1685_v5, %v1683_v12 }
 0x491   : > { %1556 = vmatpush1.msra.mxu1 %v1385_v0  ;;  %v1682_v0 = vld [vmem:[%s5867_s5 + $0x320] sm:$0xff] }
 0x492   : > { %1572 = vmatmul.mubr.f32.vlgmr.msra.gmra.mrb[2].mxu1 %v4931_v63  ;;  %v1653_v63 = vld [vmem:[%s5867_s5 + $0x238] sm:$0xff] }
 0x493   : > { %v3063_v22 = vpack.c.bf16 %v1653_v63, %v1651_v26  ;;  %v1688_v26 = vld [vmem:[%s5867_s5 + $0x350] sm:$0xff]  ;;  %v1691_v63 = vld [vmem:[%s5867_s5 + $0x368] sm:$0xff] }
 0x49d   : > { %v5230_v61 = vpop.permute.xlu1 %1430 }
 0x4eb   : > { %v1502_v31 = vpop.f32.mrb[2].mxu0 }
 0x4ec   : > { %v1503_v18 = vadd.f32 %v1502_v31, %v5230_v61  ;;  %v1504_v13 = vpop.f32.mrb[3].mxu0  ;;  %v1684_v31 = vld [vmem:[%s5867_s5 + $0x330] sm:$0xff] }
 0x4ed   : > { %v1505_v42 = vadd.f32 %v1504_v13, %v5230_v61  ;;  %v1689_v13 = vld [vmem:[%s5867_s5 + $0x358] sm:$0xff]  ;;  %v3097_v35 = vpack.c.bf16 %v1684_v31, %v1682_v0 }
 0x4ee   : > { %v1578_v51 = vmax.f32 %v1503_v18, 0.0  ;;  %v1687_v18 = vld [vmem:[%s5867_s5 + $0x348] sm:$0xff] }
 0x4ef   : > { %v1579_v60 = vmax.f32 %v1505_v42, 0.0  ;;  %v3099_v2 = vpack.c.bf16 %v1689_v13, %v1687_v18  ;;  %v1686_v42 = vld [vmem:[%s5867_s5 + $0x340] sm:$0xff] }
 0x4f1   : > { %1774 = vmatprep.mubr.f32.mxu0 %v1579_v60  ;;  %v1693_v60 = vld [vmem:[%s5867_s5 + $0x378] sm:$0xff] }
 0x4f2   : > { %1775 = vmatmul.mubr.f32.vlgmr.msra.gmra.mrb[4].mxu0 %v1578_v51  ;;  %v3103_v51 = vpack.c.bf16 %v1693_v60, %v1691_v63 }
 0x4f3   : > { %3062 = vmatpush1.bf16.msra.mxu0 %v3061_v9  ;;  %v3101_v9 = vpack.c.bf16 %v1688_v26, %v1686_v42 }
 0x4f4   : > { %3064 = vmatprep.subr.bf16.mxu0 %v3063_v22  ;;  %v1690_v22 = vld [vmem:[%s5867_s5 + $0x360] sm:$0xff] }
 0x4f5   : > { %v3105_v40 = vpack.c.bf16 %v1692_v38, %v1690_v22 }
 0x4f7   : > { %3066 = vmatpush1.bf16.msra.mxu0 %v3065_v45  ;;  %v3107_v45 = vpack.c.bf16 %v1697_v58, %v1695_v1 }
 0x4f8   : > { %3068 = vmatprep.subr.bf16.mxu0 %v3067_v21  ;;  %v1694_v21 = vld [vmem:[%s5867_s5 + $0x380] sm:$0xff] }
 0x4f9   : > { %v3109_v33 = vpack.c.bf16 %v1696_v41, %v1694_v21 }
 0x4fb   : > { %3070 = vmatpush1.bf16.msra.mxu0 %v3069_v54  ;;  %v3111_v54 = vpack.c.bf16 %v1701_v50, %v1699_v56 }
 0x4fc   : > { %3072 = vmatprep.subr.bf16.mxu0 %v3071_v23  ;;  %v1698_v23 = vld [vmem:[%s5867_s5 + $0x3a0] sm:$0xff] }
 0x4fd   : > { %v3113_v59 = vpack.c.bf16 %v1700_v14, %v1698_v23 }
 0x4ff   : > { %3074 = vmatpush1.bf16.msra.mxu0 %v3073_v17  ;;  %v3115_v17 = vpack.c.bf16 %v1705_v48, %v1703_v43 }
 0x500   : > { %3076 = vmatprep.subr.bf16.mxu0 %v3075_v3  ;;  %v1702_v3 = vld [vmem:[%s5867_s5 + $0x3c0] sm:$0xff] }
 0x501   : > { %v3117_v19 = vpack.c.bf16 %v1704_v34, %v1702_v3 }
 0x503   : > { %3078 = vmatpush1.bf16.msra.mxu0 %v3077_v11  ;;  %v3119_v11 = vpack.c.bf16 %v1709_v52, %v1707_v62 }
 0x504   : > { %3080 = vmatprep.subr.bf16.mxu0 %v3079_v15  ;;  %v1706_v15 = vld [vmem:[%s5867_s5 + $0x3e0] sm:$0xff] }
 0x505   : > { %v3121_v20 = vpack.c.bf16 %v1708_v6, %v1706_v15 }
 0x507   : > { %3082 = vmatpush1.bf16.msra.mxu0 %v3081_v4 }
 0x508   : > { %3084 = vmatprep.subr.bf16.mxu0 %v3083_v8 }
 0x50b   : > { %3086 = vmatpush1.bf16.msra.mxu0 %v3085_v32 }
 0x50c   : > { %3088 = vmatprep.subr.bf16.mxu0 %v3087_v25 }
 0x50f   : > { %3090 = vmatpush1.bf16.msra.mxu0 %v3089_v57 }
 0x510   : > { %3092 = vmatprep.subr.bf16.mxu0 %v3091_v55 }
 0x513   : > { %3094 = vmatpush1.bf16.msra.mxu0 %v3093_v16 }
 0x514   : > { %3096 = vmatprep.subr.bf16.mxu0 %v3095_v30 }
 0x517   : > { %3098 = vmatpush1.bf16.msra.mxu0 %v3097_v35 }
 0x518   : > { %3100 = vmatprep.subr.bf16.mxu0 %v3099_v2 }
 0x51b   : > { %3102 = vmatpush1.bf16.msra.mxu0 %v3101_v9 }
 0x51c   : > { %3104 = vmatprep.subr.bf16.mxu0 %v3103_v51 }
 0x51f   : > { %3106 = vmatpush1.bf16.msra.mxu0 %v3105_v40 }
 0x520   : > { %3108 = vmatprep.subr.bf16.mxu0 %v3107_v45 }
 0x523   : > { %3110 = vmatpush1.bf16.msra.mxu0 %v3109_v33 }
 0x524   : > { %3112 = vmatprep.subr.bf16.mxu0 %v3111_v54 }
 0x527   : > { %3114 = vmatpush1.bf16.msra.mxu0 %v3113_v59 }
 0x528   : > { %3116 = vmatprep.subr.bf16.mxu0 %v3115_v17 }
 0x52b   : > { %3118 = vmatpush1.bf16.msra.mxu0 %v3117_v19 }
 0x52c   : > { %3120 = vmatprep.subr.bf16.mxu0 %v3119_v11 }
 0x52f   : > { %3122 = vmatpush1.bf16.msra.mxu0 %v3121_v20 }
 0x565   : > { %v1573_v29 = vpop.f32.mrb[2].mxu1 }
 0x566   : > { %v1574_v37 = vadd.f32 %v1573_v29, %v5230_v61  ;;  %v1575_v4 = vpop.f32.mrb[3].mxu1 }
 0x567   : > { %v1576_v8 = vadd.f32 %v1575_v4, %v5230_v61 }
 0x568   : > { %v1580_v44 = vmax.f32 %v1574_v37, 0.0 }
 0x569   : > { %v1581_v36 = vmax.f32 %v1576_v8, 0.0 }
 0x56b   : > { %1845 = vmatprep.mubr.f32.mxu0 %v1581_v36 }
 0x56c   : > { %1846 = vmatmul.mubr.f32.vlgmr.msra.gmra.mrb[4].mxu0 %v1580_v44 }
 0x63f   : > { %v1847_v46 = vpop.f32.mrb[4].mxu0 }
 0x640   : > { %1854 = vrot.lane.b32.xlu0 %v1847_v46, %s4096_s19  ;;  %v1849_v10 = vpop.f32.mrb[5].mxu0 }
 0x641   : > { %1856 = vrot.lane.b32.xlu1 %v1849_v10, %s4096_s19 }
 0x6b2   : > { %v5424_v32 = vpop.permute.xlu0 %1854 }
 0x6b3   : > { %v5428_v25 = vsel %vm1858_vm3, 0.0, %v5424_v32  ;;  %v1857_v61 = vpop.permute.xlu1 %1856 }
 0x6b4   : > { %1877 = vrot.lane.b32.xlu0 %v5428_v25, %s4078_s9  ;;  %1867 = vrot.lane.b32.xlu1 %v5428_v25, %s4077_s8  ;;  %v5444_v24 = vsel %vm1858_vm3, %v5424_v32, %v1857_v61  ;;  %v1864_v27 = vsel %vm1858_vm3, %v1857_v61, 0.0 }
 0x6b5   : > { %v3807_v53 = vpack.i.bf16 %v1864_v27, %v5444_v24 }
 0x6b8   : > { %1907 = vrot.lane.b32.xlu0 %v5428_v25, %s4097_s20  ;;  %1887 = vrot.lane.b32.xlu1 %v5428_v25, %s4079_s10 }
 0x6bc   : > { %1918 = vrot.lane.b32.xlu0 %v5428_v25, %s4098_s21  ;;  %2027 = vrot.lane.b32.xlu1 %v5428_v25, %s4099_s22 }
 0x6c0   : > { %1940 = vrot.lane.b32.xlu0 %v5428_v25, %s4100_s23  ;;  %1929 = vrot.lane.b32.xlu1 %v5428_v25, %s4101_s26 }
 0x6c4   : > { %3808 = vrot.lane.b32.xlu1 %v3807_v53, %s4079_s10  ;;  %3798 = vrot.lane.b32.xlu0 %v3807_v53, %s4077_s8 }
 0x6c8   : > { %3818 = vrot.lane.b32.xlu1 %v3807_v53, %s4099_s22  ;;  %3803 = vrot.lane.b32.xlu0 %v3807_v53, %s4078_s9 }
 0x6cc   : > { %3828 = vrot.lane.b32.xlu1 %v3807_v53, %s4101_s26  ;;  %3813 = vrot.lane.b32.xlu0 %v3807_v53, %s4097_s20 }
 0x6d0   : > { %1962 = vrot.lane.b32.xlu1 %v5428_v25, %s4086_s17  ;;  %3823 = vrot.lane.b32.xlu0 %v3807_v53, %s4098_s21 }
 0x6d4   : > { %1944 = vrot.lane.b32.xlu1 %v1864_v27, %s4100_s23  ;;  %1942 = vrot.lane.b32.xlu0 %v5444_v24, %s4100_s23 }
 0x6d8   : > { %1983 = vrot.lane.b32.xlu1 %v5428_v25, %s4102_s28  ;;  %1897 = vrot.lane.b32.xlu0 %v5428_v25, %s4085_s16 }
 0x6dc   : > { %2005 = vrot.lane.b32.xlu1 %v5428_v25, %s4103_s29  ;;  %1951 = vrot.lane.b32.xlu0 %v5428_v25, %s4104_s27 }
 0x6e0   : > { %3833 = vrot.lane.b32.xlu1 %v3807_v53, %s4085_s16  ;;  %1972 = vrot.lane.b32.xlu0 %v5428_v25, %s4105_s30 }
 0x6e4   : > { %3838 = vrot.lane.b32.xlu1 %v3807_v53, %s4104_s27  ;;  %1994 = vrot.lane.b32.xlu0 %v5428_v25, %s4106_s11 }
 0x6e8   : > { %3843 = vrot.lane.b32.xlu1 %v3807_v53, %s4086_s17  ;;  %2016 = vrot.lane.b32.xlu0 %v5428_v25, %s4107_s12 }
 0x6ec   : > { %3853 = vrot.lane.b32.xlu1 %v3807_v53, %s4102_s28  ;;  %3848 = vrot.lane.b32.xlu0 %v3807_v53, %s4105_s30 }
 0x6f0   : > { %3863 = vrot.lane.b32.xlu1 %v3807_v53, %s4103_s29  ;;  %3858 = vrot.lane.b32.xlu0 %v3807_v53, %s4106_s11 }
 0x6f4   : > { %3873 = vrot.lane.b32.xlu1 %v3807_v53, %s5881_s13  ;;  %3868 = vrot.lane.b32.xlu0 %v3807_v53, %s4107_s12 }
 0x726   : > { %v1878_v7 = vpop.permute.xlu0 %1877  ;;  %v1868_v57 = vpop.permute.xlu1 %1867 }
 0x72a   : > { %v1908_v55 = vpop.permute.xlu0 %1907  ;;  %v1888_v28 = vpop.permute.xlu1 %1887 }
 0x72e   : > { %v5487_v39 = vpop.permute.xlu0 %1918  ;;  %v2028_v12 = vpop.permute.xlu1 %2027 }
 0x732   : > { %v5489_v5 = vpop.permute.xlu0 %1940  ;;  %v5491_v16 = vpop.permute.xlu1 %1929 }
 0x736   : > { %v3799_v30 = vpop.permute.xlu0 %3798  ;;  %v3809_v0 = vpop.permute.xlu1 %3808 }
 0x737   : > { %v3801_v31 = vunpack.i.h.bf16 %v3799_v30  ;;  %v3800_v18 = vunpack.i.l.bf16 %v3799_v30  ;;  %v3811_v13 = vunpack.i.h.bf16 %v3809_v0  ;;  %v3810_v35 = vunpack.i.l.bf16 %v3809_v0 }
 0x739   : > { %v1874_v2 = vsel %vm316_vm1, %v3800_v18, %v3801_v31  ;;  %v1873_v42 = vsel %vm316_vm1, %v1868_v57, %v3800_v18  ;;  %v1894_v9 = vsel %vm354_vm6, %v3810_v35, %v3811_v13  ;;  %v1893_v33 = vsel %vm354_vm6, %v1888_v28, %v3810_v35 }
 0x73a   : > { %v3877_v26 = vpack.i.bf16 %v3801_v31, %v1874_v2  ;;  %v3882_v63 = vpack.i.bf16 %v1873_v42, %v5428_v25  ;;  %v3125_v60 = vpack.c.bf16 %v1873_v42, %v5424_v32  ;;  %v3804_v51 = vpop.permute.xlu0 %3803  ;;  %v3819_v22 = vpop.permute.xlu1 %3818  ;;  %v3123_v21 = vpack.c.bf16 %v1874_v2, %v5444_v24  ;;  %v2753_v2 = vld [vmem:[%s5864_s2 + $0x10] sm:$0xff] }
 0x73b   : > { %v3806_v38 = vunpack.i.h.bf16 %v3804_v51  ;;  %v3805_v1 = vunpack.i.l.bf16 %v3804_v51  ;;  %v3821_v58 = vunpack.i.h.bf16 %v3819_v22  ;;  %v3820_v40 = vunpack.i.l.bf16 %v3819_v22 }
 0x73c   : > { %3878 = vrot.lane.b32.xlu0 %v3877_v26, %s5881_s13  ;;  %3883 = vrot.lane.b32.xlu1 %v3882_v63, %s5881_s13  ;;  %v3892_v50 = vpack.i.bf16 %v3811_v13, %v1894_v9 }
 0x73d   : > { %v1884_v41 = vsel %vm335_vm5, %v3805_v1, %v3806_v38  ;;  %v1883_v56 = vsel %vm335_vm5, %v1878_v7, %v3805_v1  ;;  %3124 = vmatprep.subr.bf16.mxu1 %v3123_v21  ;;  %v2035_v48 = vsel %vm2033_vm7, %v3820_v40, %v3821_v58  ;;  %v2034_v4 = vsel %vm2033_vm7, %v2028_v12, %v3820_v40  ;;  %v2752_v7 = vld [vmem:[%s5863_s1 + $0x28] sm:$0xff] }
 0x73e   : > { %v3887_v54 = vpack.i.bf16 %v3806_v38, %v1884_v41  ;;  %v3814_v23 = vpop.permute.xlu0 %3813  ;;  %v3829_v14 = vpop.permute.xlu1 %3828  ;;  %v3130_v43 = vpack.c.bf16 %v1893_v33, %v1883_v56  ;;  %3127 = vmatpush1.bf16.msk.msra.mxu1 %vm5500_vm2, %v3125_v60  ;;  %v3128_v3 = vpack.c.bf16 %v1894_v9, %v1884_v41  ;;  %v3897_v34 = vpack.i.bf16 %v1893_v33, %v1883_v56 }
 0x73f   : > { %v3816_v59 = vunpack.i.h.bf16 %v3814_v23  ;;  %v3815_v17 = vunpack.i.l.bf16 %v3814_v23  ;;  %v3902_v62 = vpack.i.bf16 %v3821_v58, %v2035_v48  ;;  %v3831_v52 = vunpack.i.h.bf16 %v3829_v14  ;;  %2756 = vmatprep.mubr.msk.f32.mxu1 %vm5904_vm11, %v2752_v7  ;;  %vm5906_vm11 = vmmov %vm5905_vm15 }
 0x740   : > { %3888 = vrot.lane.b32.xlu0 %v3887_v54, %s5881_s13  ;;  %3893 = vrot.lane.b32.xlu1 %v3892_v50, %s5881_s13  ;;  %v3830_v19 = vunpack.i.l.bf16 %v3829_v14 }
 0x741   : > { %3129 = vmatprep.subr.bf16.mxu1 %v3128_v3  ;;  %v1915_v6 = vsel %vm1913_vm8, %v3815_v17, %v3816_v59  ;;  %v1914_v20 = vsel %vm1913_vm8, %v1908_v55, %v3815_v17 }
 0x742   : > { %v3824_v11 = vpop.permute.xlu0 %3823  ;;  %v5515_v15 = vpop.permute.xlu1 %1962  ;;  %3131 = vmatpush1.bf16.msra.mxu1 %v3130_v43  ;;  %v3907_v8 = vpack.i.bf16 %v3816_v59, %v1915_v6  ;;  %v3912_v36 = vpack.i.bf16 %v1914_v20, %v2034_v4  ;;  %v1937_v10 = vsel %vm1935_vm9, %v3830_v19, %v3831_v52  ;;  %v1936_v57 = vsel %vm1935_vm9, %v5491_v16, %v3830_v19 }
 0x743   : > { %v3826_v29 = vunpack.i.h.bf16 %v3824_v11  ;;  %v3825_v37 = vunpack.i.l.bf16 %v3824_v11  ;;  %v3922_v25 = vpack.i.bf16 %v3831_v52, %v1937_v10 }
 0x744   : > { %3903 = vrot.lane.b32.xlu1 %v3902_v62, %s5881_s13  ;;  %3898 = vrot.lane.b32.xlu0 %v3897_v34, %s5881_s13 }
 0x745   : > { %v1926_v32 = vsel %vm1924_vm10, %v3825_v37, %v3826_v29  ;;  %v1925_v53 = vsel %vm1924_vm10, %v5487_v39, %v3825_v37 }
 0x746   : > { %v1943_v44 = vpop.permute.xlu0 %1942  ;;  %v1945_v46 = vpop.permute.xlu1 %1944  ;;  %v3917_v61 = vpack.i.bf16 %v3826_v29, %v1926_v32  ;;  %v3927_v55 = vpack.i.bf16 %v1936_v57, %v1925_v53  ;;  %v3136_v51 = vpack.c.bf16 %v1937_v10, %v1926_v32  ;;  %v3138_v58 = vpack.c.bf16 %v1936_v57, %v1925_v53 }
 0x747   : > { %v1948_v39 = vsel %vm1946_vm12, %v1943_v44, %v1945_v46  ;;  %v1947_v31 = vsel %vm1946_vm12, %v5489_v5, %v1943_v44 }
 0x748   : > { %3913 = vrot.lane.b32.xlu1 %v3912_v36, %s5881_s13  ;;  %3908 = vrot.lane.b32.xlu0 %v3907_v8, %s5881_s13 }
 0x74a   : > { %v1898_v24 = vpop.permute.xlu0 %1897  ;;  %v5526_v27 = vpop.permute.xlu1 %1983 }
 0x74c   : > { %3923 = vrot.lane.b32.xlu1 %v3922_v25, %s5881_s13  ;;  %3918 = vrot.lane.b32.xlu0 %v3917_v61, %s5881_s13 }
 0x74e   : > { %v1952_v28 = vpop.permute.xlu0 %1951  ;;  %v5538_v12 = vpop.permute.xlu1 %2005 }
 0x750   : > { %2086 = vrot.lane.b32.xlu1 %v1948_v39, %s5881_s13  ;;  %3928 = vrot.lane.b32.xlu0 %v3927_v55, %s5881_s13 }
 0x752   : > { %v1973_v30 = vpop.permute.xlu0 %1972  ;;  %v3834_v0 = vpop.permute.xlu1 %3833 }
 0x753   : > { %v3836_v18 = vunpack.i.h.bf16 %v3834_v0  ;;  %v3835_v13 = vunpack.i.l.bf16 %v3834_v0 }
 0x754   : > { %2084 = vrot.lane.b32.xlu1 %v1947_v31, %s5881_s13  ;;  %2088 = vrot.lane.b32.xlu0 %v1945_v46, %s5881_s13 }
 0x755   : > { %v1903_v16 = vsel %vm373_vm13, %v1898_v24, %v3835_v13  ;;  %v1904_v35 = vsel %vm373_vm13, %v3835_v13, %v3836_v18 }
 0x756   : > { %v3134_v42 = vpack.c.bf16 %v1914_v20, %v1903_v16  ;;  %v1995_v26 = vpop.permute.xlu0 %1994  ;;  %v3839_v63 = vpop.permute.xlu1 %3838  ;;  %v3132_v60 = vpack.c.bf16 %v1915_v6, %v1904_v35 }
 0x757   : > { %v3841_v5 = vunpack.i.h.bf16 %v3839_v63  ;;  %v3840_v9 = vunpack.i.l.bf16 %v3839_v63 }
 0x758   : > { %3133 = vmatprep.subr.bf16.mxu1 %v3132_v60  ;;  %2134 = vperm.xlu0 %3932, %v2753_v2  }
 0x759   : > { %3135 = vmatpush1.bf16.msra.mxu1 %v3134_v42  ;;  %v1959_v22 = vsel %vm5879_vm0, %v3840_v9, %v3841_v5  ;;  %v1958_v40 = vsel %vm5879_vm0, %v1952_v28, %v3840_v9  ;;  %vm5880_vm0 = vcmask 826368  }
 0x75a   : > { %v2017_v38 = vpop.permute.xlu0 %2016  ;;  %v3844_v1 = vpop.permute.xlu1 %3843  ;;  %3137 = vmatprep.subr.bf16.mxu1 %v3136_v51  ;;  %v3140_v21 = vpack.c.bf16 %v1959_v22, %v1948_v39  ;;  %v3142_v54 = vpack.c.bf16 %v1958_v40, %v1947_v31 }
 0x75b   : > { %v3846_v41 = vunpack.i.h.bf16 %v3844_v1  ;;  %v3845_v56 = vunpack.i.l.bf16 %v3844_v1 }
 0x75d   : > { %3139 = vmatpush1.bf16.msra.mxu1 %v3138_v58  ;;  %v1968_v59 = vsel %vm5905_vm15, %v5515_v15, %v3845_v56  ;;  %v1969_v3 = vsel %vm5906_vm11, %v3845_v56, %v3846_v41  ;;  %vm2011_vm15 = vcmask 818176   ;;  %vm2022_vm11 = vcmask 752640  }
 0x75e   : > { %v3849_v50 = vpop.permute.xlu0 %3848  ;;  %v3854_v33 = vpop.permute.xlu1 %3853  ;;  %3141 = vmatprep.subr.bf16.mxu1 %v3140_v21 }
 0x75f   : > { %v3851_v23 = vunpack.i.h.bf16 %v3849_v50  ;;  %v3850_v14 = vunpack.i.l.bf16 %v3849_v50  ;;  %v3856_v43 = vunpack.i.h.bf16 %v3854_v33  ;;  %v3855_v48 = vunpack.i.l.bf16 %v3854_v33 }
 0x761   : > { %v1979_v17 = vsel %vm1978_vm4, %v1973_v30, %v3850_v14  ;;  %3143 = vmatpush1.bf16.msra.mxu1 %v3142_v54  ;;  %v1980_v34 = vsel %vm1978_vm4, %v3850_v14, %v3851_v23  ;;  %v1990_v29 = vsel %vm1989_vm14, %v5526_v27, %v3855_v48  ;;  %v1991_v15 = vsel %vm1989_vm14, %v3855_v48, %v3856_v43 }
 0x762   : > { %v3146_v62 = vpack.c.bf16 %v1979_v17, %v1968_v59  ;;  %v3859_v52 = vpop.permute.xlu0 %3858  ;;  %v3864_v19 = vpop.permute.xlu1 %3863  ;;  %v3144_v11 = vpack.c.bf16 %v1980_v34, %v1969_v3 }
 0x763   : > { %v3861_v6 = vunpack.i.h.bf16 %v3859_v52  ;;  %v3860_v20 = vunpack.i.l.bf16 %v3859_v52  ;;  %v3866_v4 = vunpack.i.h.bf16 %v3864_v19  ;;  %v3865_v8 = vunpack.i.l.bf16 %v3864_v19 }
 0x764   : > { %3145 = vmatprep.subr.bf16.mxu1 %v3144_v11 }
 0x765   : > { %v2001_v37 = vsel %vm5880_vm0, %v1995_v26, %v3860_v20  ;;  %3147 = vmatpush1.bf16.msra.mxu1 %v3146_v62  ;;  %v2002_v36 = vsel %vm5880_vm0, %v3860_v20, %v3861_v6  ;;  %v2012_v61 = vsel %vm2011_vm15, %v5538_v12, %v3865_v8  ;;  %v2013_v27 = vsel %vm2011_vm15, %v3865_v8, %v3866_v4 }
 0x766   : > { %v3150_v44 = vpack.c.bf16 %v2001_v37, %v1990_v29  ;;  %v3869_v46 = vpop.permute.xlu0 %3868  ;;  %v3148_v10 = vpack.c.bf16 %v2002_v36, %v1991_v15  ;;  %v3874_v55 = vpop.permute.xlu1 %3873  ;;  %vm2090_vm0 = vcmask 744448  }
 0x767   : > { %v3871_v32 = vunpack.i.h.bf16 %v3869_v46  ;;  %v3870_v25 = vunpack.i.l.bf16 %v3869_v46  ;;  %v3876_v28 = vunpack.i.h.bf16 %v3874_v55  ;;  %v3875_v39 = vunpack.i.l.bf16 %v3874_v55 }
 0x768   : > { %3149 = vmatprep.subr.bf16.mxu1 %v3148_v10 }
 0x769   : > { %v2023_v24 = vsel %vm2022_vm11, %v2017_v38, %v3870_v25  ;;  %3151 = vmatpush1.bf16.msra.mxu1 %v3150_v44  ;;  %v2024_v53 = vsel %vm2022_vm11, %v3870_v25, %v3871_v32  ;;  %v2092_v2 = vsel %vm2090_vm0, %v3875_v39, %v3876_v28 }
 0x76a   : > { %v3154_v7 = vpack.c.bf16 %v2023_v24, %v2012_v61  ;;  %v3152_v57 = vpack.c.bf16 %v2024_v53, %v2013_v27 }
 0x76c   : > { %3153 = vmatprep.subr.bf16.mxu1 %v3152_v57 }
 0x76d   : > { %3155 = vmatpush1.bf16.msra.mxu1 %v3154_v7 }
 0x7ae   : > { %v3879_v30 = vpop.permute.xlu0 %3878  ;;  %v3884_v0 = vpop.permute.xlu1 %3883 }
 0x7af   : > { %v3881_v31 = vunpack.i.h.bf16 %v3879_v30  ;;  %v3880_v18 = vunpack.i.l.bf16 %v3879_v30  ;;  %v3886_v12 = vunpack.i.h.bf16 %v3884_v0  ;;  %v3885_v13 = vunpack.i.l.bf16 %v3884_v0  ;;  %v2751_v30 = vld [vmem:[%s5863_s1 + $0x20] sm:$0xff] }
 0x7b1   : > { %v2093_v16 = vsel %vm2090_vm0, %v3886_v12, %v3880_v18  ;;  %v2091_v35 = vsel %vm2090_vm0, %v3885_v13, %v3875_v39  ;;  %v2094_v42 = vsel %vm2090_vm0, %v3880_v18, %v3881_v31  ;;  %v2213_v18 = vld [vmem:[%s5866_s4] sm:$0x3] }
 0x7b2   : > { %v3158_v26 = vpack.c.bf16 %v2093_v16, %v2091_v35  ;;  %v3889_v63 = vpop.permute.xlu0 %3888  ;;  %v3894_v60 = vpop.permute.xlu1 %3893  ;;  %v3156_v5 = vpack.c.bf16 %v2094_v42, %v2092_v2  ;;  %v2218_v16 = vrot.slane %v2213_v18, %v931_v49 }
 0x7b3   : > { %v3891_v9 = vunpack.i.h.bf16 %v3889_v63  ;;  %v3890_v51 = vunpack.i.l.bf16 %v3889_v63  ;;  %v3896_v22 = vunpack.i.h.bf16 %v3894_v60  ;;  %v3895_v38 = vunpack.i.l.bf16 %v3894_v60 }
 0x7b4   : > { %3157 = vmatprep.subr.bf16.mxu1 %v3156_v5  ;;  %v5907_v60 = vsub.s32 1, %v4489_v47 }
 0x7b5   : > { %3159 = vmatpush1.bf16.msra.mxu1 %v3158_v26  ;;  %v2096_v1 = vsel %vm2090_vm0, %v3890_v51, %v3891_v9  ;;  %v2098_v58 = vsel %vm2090_vm0, %v3895_v38, %v3896_v22 }
 0x7b6   : > { %v3904_v40 = vpop.permute.xlu1 %3903  ;;  %v3899_v21 = vpop.permute.xlu0 %3898  ;;  %v3160_v41 = vpack.c.bf16 %v2098_v58, %v2096_v1  ;;  %v2222_v5 = vrot.slane %v2213_v18, %v5907_v60 }
 0x7b7   : > { %v3901_v56 = vunpack.i.h.bf16 %v3899_v21  ;;  %v3900_v50 = vunpack.i.l.bf16 %v3899_v21  ;;  %v3906_v33 = vunpack.i.h.bf16 %v3904_v40  ;;  %v3905_v54 = vunpack.i.l.bf16 %v3904_v40 }
 0x7b8   : > { %3161 = vmatprep.subr.bf16.mxu1 %v3160_v41 }
 0x7b9   : > { %v2097_v23 = vsel %vm2090_vm0, %v3901_v56, %v3895_v38  ;;  %v2095_v14 = vsel %vm2090_vm0, %v3900_v50, %v3890_v51  ;;  %v2100_v11 = vsel %vm2090_vm0, %v3905_v54, %v3906_v33 }
 0x7ba   : > { %v3162_v43 = vpack.c.bf16 %v2097_v23, %v2095_v14  ;;  %v3914_v48 = vpop.permute.xlu1 %3913  ;;  %v3909_v59 = vpop.permute.xlu0 %3908 }
 0x7bb   : > { %v3916_v17 = vunpack.i.h.bf16 %v3914_v48  ;;  %v3915_v3 = vunpack.i.l.bf16 %v3914_v48  ;;  %v3911_v34 = vunpack.i.h.bf16 %v3909_v59  ;;  %v3910_v62 = vunpack.i.l.bf16 %v3909_v59 }
 0x7bc   : > { %3163 = vmatpush1.bf16.msra.mxu1 %v3162_v43 }
 0x7bd   : > { %v2099_v52 = vsel %vm2090_vm0, %v3915_v3, %v3905_v54  ;;  %v2101_v19 = vsel %vm2090_vm0, %v3916_v17, %v3910_v62  ;;  %v2102_v6 = vsel %vm2090_vm0, %v3910_v62, %v3911_v34 }
 0x7be   : > { %v3166_v20 = vpack.c.bf16 %v2101_v19, %v2099_v52  ;;  %v3924_v29 = vpop.permute.xlu1 %3923  ;;  %v3919_v15 = vpop.permute.xlu0 %3918  ;;  %v3164_v37 = vpack.c.bf16 %v2102_v6, %v2100_v11 }
 0x7bf   : > { %v3926_v4 = vunpack.i.h.bf16 %v3924_v29  ;;  %v3925_v8 = vunpack.i.l.bf16 %v3924_v29  ;;  %v3921_v36 = vunpack.i.h.bf16 %v3919_v15  ;;  %v3920_v44 = vunpack.i.l.bf16 %v3919_v15 }
 0x7c0   : > { %3165 = vmatprep.subr.bf16.mxu1 %v3164_v37 }
 0x7c1   : > { %3167 = vmatpush1.bf16.msra.mxu1 %v3166_v20  ;;  %v2104_v46 = vsel %vm2090_vm0, %v3920_v44, %v3921_v36  ;;  %v2106_v10 = vsel %vm2090_vm0, %v3925_v8, %v3926_v4 }
 0x7c2   : > { %v2087_v32 = vpop.permute.xlu1 %2086  ;;  %v3929_v25 = vpop.permute.xlu0 %3928  ;;  %v3168_v61 = vpack.c.bf16 %v2106_v10, %v2104_v46 }
 0x7c3   : > { %v3931_v24 = vunpack.i.h.bf16 %v3929_v25  ;;  %v3930_v27 = vunpack.i.l.bf16 %v3929_v25 }
 0x7c4   : > { %3169 = vmatprep.subr.bf16.mxu1 %v3168_v61 }
 0x7c5   : > { %v2105_v53 = vsel %vm2090_vm0, %v3931_v24, %v3925_v8  ;;  %v2103_v7 = vsel %vm2090_vm0, %v3930_v27, %v3920_v44 }
 0x7c6   : > { %v3170_v57 = vpack.c.bf16 %v2105_v53, %v2103_v7  ;;  %v2089_v55 = vpop.permute.xlu0 %2088  ;;  %v2085_v39 = vpop.permute.xlu1 %2084 }
 0x7c7   : > { %v2108_v28 = vsel %vm2090_vm0, %v2087_v32, %v2089_v55  ;;  %v2107_v0 = vsel %vm2090_vm0, %v2085_v39, %v2087_v32 }
 0x7c8   : > { %3171 = vmatpush1.bf16.msra.mxu1 %v3170_v57 }
 0x7c9   : > { %2188 = vmatprep.subr.mxu1 %v2108_v28 }
 0x7cc   : > { %2189 = vmatpush1.msra.mxu1 %v2107_v0 }
 0x7cd   : > { %2205 = vmatmul.mubr.f32.vlgmr.msra.gmra.mrb[4].mxu1 %v2751_v30 }
 0x7d7   : > { %v2135_v31 = vpop.permute.xlu0 %2134 }
 0x8a0   : > { %v2206_v12 = vpop.f32.mrb[4].mxu1 }
 0x8a1   : > { %v2207_v13 = vadd.f32 %v2206_v12, %v2135_v31  ;;  %v2208_v35 = vpop.f32.mrb[5].mxu1 }
 0x8a2   : > { %v2209_v2 = vadd.f32 %v2208_v35, %v2135_v31 }
 0x8a3   : > { %v2211_v42 = vmax.f32 %v2207_v13, 0.0 }
 0x8a4   : > { %v2212_v63 = vmax.f32 %v2209_v2, 0.0 }
 0x8a5   : > { %v2225_v26 = vmul.f32 %v2218_v16, %v2211_v42 }
 0x8a6   : > { %v2226_v9 = vmul.f32 %v2222_v5, %v2212_v63 }
 0x8a7   : > { %2229 = vrot.lane.b32.xlu1 %v2225_v26, %s4096_s19 }
 0x8ab   : > { %2231 = vrot.lane.b32.xlu1 %v2226_v9, %s4096_s19 }
 0x919   : > { %v5599_v51 = vpop.permute.xlu1 %2229 }
 0x91a   : > { %v5603_v22 = vsel %vm1858_vm3, 0.0, %v5599_v51 }
 0x91b   : > { %2251 = vrot.lane.b32.xlu0 %v5603_v22, %s4078_s9  ;;  %2241 = vrot.lane.b32.xlu1 %v5603_v22, %s4077_s8 }
 0x91d   : > { %v2232_v47 = vpop.permute.xlu1 %2231 }
 0x91e   : > { %v5619_v49 = vsel %vm1858_vm3, %v5599_v51, %v2232_v47  ;;  %v2238_v38 = vsel %vm1858_vm3, %v2232_v47, 0.0 }
 0x91f   : > { %2281 = vrot.lane.b32.xlu0 %v5603_v22, %s4097_s20  ;;  %2261 = vrot.lane.b32.xlu1 %v5603_v22, %s4079_s10  ;;  %v3943_v1 = vpack.i.bf16 %v2238_v38, %v5619_v49 }
 0x923   : > { %2291 = vrot.lane.b32.xlu0 %v5603_v22, %s4098_s21  ;;  %2391 = vrot.lane.b32.xlu1 %v5603_v22, %s4099_s22 }
 0x927   : > { %2311 = vrot.lane.b32.xlu0 %v5603_v22, %s4100_s23  ;;  %2301 = vrot.lane.b32.xlu1 %v5603_v22, %s4101_s26 }
 0x92b   : > { %3944 = vrot.lane.b32.xlu1 %v3943_v1, %s4079_s10  ;;  %3934 = vrot.lane.b32.xlu0 %v3943_v1, %s4077_s8  ;;  %s5908_s8 = smov 91  }
 0x92f   : > { %3954 = vrot.lane.b32.xlu1 %v3943_v1, %s4099_s22  ;;  %3939 = vrot.lane.b32.xlu0 %v3943_v1, %s4078_s9  ;;  %s2739_s22 = sshll.u32 %s5917_s25, 2 }
 0x933   : > { %3964 = vrot.lane.b32.xlu1 %v3943_v1, %s4101_s26  ;;  %3949 = vrot.lane.b32.xlu0 %v3943_v1, %s4097_s20 }
 0x937   : > { %2331 = vrot.lane.b32.xlu1 %v5603_v22, %s4086_s17  ;;  %3959 = vrot.lane.b32.xlu0 %v3943_v1, %s4098_s21 }
 0x93b   : > { %2315 = vrot.lane.b32.xlu1 %v2238_v38, %s4100_s23  ;;  %2313 = vrot.lane.b32.xlu0 %v5619_v49, %s4100_s23 }
 0x93f   : > { %2351 = vrot.lane.b32.xlu1 %v5603_v22, %s4102_s28  ;;  %2271 = vrot.lane.b32.xlu0 %v5603_v22, %s4085_s16 }
 0x943   : > { %2371 = vrot.lane.b32.xlu1 %v5603_v22, %s4103_s29  ;;  %2321 = vrot.lane.b32.xlu0 %v5603_v22, %s4104_s27 }
 0x947   : > { %3969 = vrot.lane.b32.xlu1 %v3943_v1, %s4085_s16  ;;  %2341 = vrot.lane.b32.xlu0 %v5603_v22, %s4105_s30 }
 0x94b   : > { %3974 = vrot.lane.b32.xlu1 %v3943_v1, %s4104_s27  ;;  %2361 = vrot.lane.b32.xlu0 %v5603_v22, %s4106_s11 }
 0x94f   : > { %3979 = vrot.lane.b32.xlu1 %v3943_v1, %s4086_s17  ;;  %2381 = vrot.lane.b32.xlu0 %v5603_v22, %s4107_s12 }
 0x953   : > { %3989 = vrot.lane.b32.xlu1 %v3943_v1, %s4102_s28  ;;  %3984 = vrot.lane.b32.xlu0 %v3943_v1, %s4105_s30  ;;  %s276_s28 = scalar_lea.vmem %s5869_s7, %s2739_s22 }
 0x957   : > { %3999 = vrot.lane.b32.xlu1 %v3943_v1, %s4103_s29  ;;  %3994 = vrot.lane.b32.xlu0 %v3943_v1, %s4106_s11 }
 0x95b   : > { %4009 = vrot.lane.b32.xlu1 %v3943_v1, %s5908_s8  ;;  %4004 = vrot.lane.b32.xlu0 %v3943_v1, %s4107_s12 }
 0x98d   : > { %v2252_v58 = vpop.permute.xlu0 %2251  ;;  %v2242_v40 = vpop.permute.xlu1 %2241 }
 0x991   : > { %v2282_v21 = vpop.permute.xlu0 %2281  ;;  %v2262_v41 = vpop.permute.xlu1 %2261 }
 0x995   : > { %v5662_v56 = vpop.permute.xlu0 %2291  ;;  %v2392_v50 = vpop.permute.xlu1 %2391 }
 0x999   : > { %v5664_v33 = vpop.permute.xlu0 %2311  ;;  %v5666_v54 = vpop.permute.xlu1 %2301 }
 0x99d   : > { %v3935_v23 = vpop.permute.xlu0 %3934  ;;  %v3945_v14 = vpop.permute.xlu1 %3944 }
 0x99e   : > { %v3937_v43 = vunpack.i.h.bf16 %v3935_v23  ;;  %v3936_v48 = vunpack.i.l.bf16 %v3935_v23  ;;  %v3947_v59 = vunpack.i.h.bf16 %v3945_v14  ;;  %v3946_v17 = vunpack.i.l.bf16 %v3945_v14 }
 0x9a0   : > { %v2248_v3 = vsel %vm316_vm1, %v3936_v48, %v3937_v43  ;;  %v2247_v34 = vsel %vm316_vm1, %v2242_v40, %v3936_v48  ;;  %v2268_v11 = vsel %vm354_vm6, %v3946_v17, %v3947_v59  ;;  %v2267_v10 = vsel %vm354_vm6, %v2262_v41, %v3946_v17 }
 0x9a1   : > { %v4013_v62 = vpack.i.bf16 %v3937_v43, %v2248_v3  ;;  %v4018_v52 = vpack.i.bf16 %v2247_v34, %v5603_v22  ;;  %v3174_v19 = vpack.c.bf16 %v2247_v34, %v5599_v51  ;;  %v3940_v6 = vpop.permute.xlu0 %3939  ;;  %v3955_v20 = vpop.permute.xlu1 %3954  ;;  %v3172_v8 = vpack.c.bf16 %v2248_v3, %v5619_v49  ;;  %v2758_v49 = vld [vmem:[%s5863_s1 + $0x38] sm:$0xff] }
 0x9a2   : > { %v3942_v29 = vunpack.i.h.bf16 %v3940_v6  ;;  %v3941_v15 = vunpack.i.l.bf16 %v3940_v6  ;;  %v3957_v37 = vunpack.i.h.bf16 %v3955_v20  ;;  %v3956_v4 = vunpack.i.l.bf16 %v3955_v20  ;;  %v2759_v43 = vld [vmem:[%s5864_s2 + $0x18] sm:$0xff] }
 0x9a3   : > { %4014 = vrot.lane.b32.xlu0 %v4013_v62, %s5908_s8  ;;  %4019 = vrot.lane.b32.xlu1 %v4018_v52, %s5908_s8  ;;  %v4028_v46 = vpack.i.bf16 %v3947_v59, %v2268_v11  ;;  %vm5909_vm1 = vcmask 588800  }
 0x9a4   : > { %v2258_v36 = vsel %vm335_vm5, %v3941_v15, %v3942_v29  ;;  %v2257_v44 = vsel %vm335_vm5, %v2252_v58, %v3941_v15  ;;  %3173 = vmatprep.subr.bf16.mxu1 %v3172_v8  ;;  %v2398_v27 = vsel %vm2033_vm7, %v3956_v4, %v3957_v37  ;;  %v2397_v16 = vsel %vm2033_vm7, %v2392_v50, %v3956_v4 }
 0x9a5   : > { %v4023_v32 = vpack.i.bf16 %v3942_v29, %v2258_v36  ;;  %v3950_v25 = vpop.permute.xlu0 %3949  ;;  %v3965_v61 = vpop.permute.xlu1 %3964  ;;  %v3179_v24 = vpack.c.bf16 %v2267_v10, %v2257_v44  ;;  %3176 = vmatpush1.bf16.msk.msra.mxu1 %vm5500_vm2, %v3174_v19  ;;  %v3177_v57 = vpack.c.bf16 %v2268_v11, %v2258_v36  ;;  %v4033_v55 = vpack.i.bf16 %v2267_v10, %v2257_v44 }
 0x9a6   : > { %v3952_v53 = vunpack.i.h.bf16 %v3950_v25  ;;  %v3951_v7 = vunpack.i.l.bf16 %v3950_v25  ;;  %v4038_v28 = vpack.i.bf16 %v3957_v37, %v2398_v27  ;;  %v3967_v39 = vunpack.i.h.bf16 %v3965_v61  ;;  %2762 = vmatprep.mubr.msk.f32.mxu1 %vm5909_vm1, %v2758_v49 }
 0x9a7   : > { %4024 = vrot.lane.b32.xlu0 %v4023_v32, %s5908_s8  ;;  %4029 = vrot.lane.b32.xlu1 %v4028_v46, %s5908_s8  ;;  %v3966_v30 = vunpack.i.l.bf16 %v3965_v61  ;;  %vm5910_vm5 = vcmask 916480   ;;  %vm5914_vm2 = vcmask 826368  }
 0x9a8   : > { %3178 = vmatprep.subr.bf16.mxu1 %v3177_v57  ;;  %v2288_v18 = vsel %vm1913_vm8, %v3951_v7, %v3952_v53  ;;  %v2287_v45 = vsel %vm1913_vm8, %v2282_v21, %v3951_v7  ;;  %vm5911_vm6 = vmmov %vm5910_vm5  ;;  %vm2677_vm8 = vcmask 124928  }
 0x9a9   : > { %v3960_v0 = vpop.permute.xlu0 %3959  ;;  %v5684_v31 = vpop.permute.xlu1 %2331  ;;  %3180 = vmatpush1.bf16.msra.mxu1 %v3179_v24  ;;  %v4043_v35 = vpack.i.bf16 %v3952_v53, %v2288_v18  ;;  %v4048_v2 = vpack.i.bf16 %v2287_v45, %v2397_v16  ;;  %v2308_v63 = vsel %vm1935_vm9, %v3966_v30, %v3967_v39  ;;  %v2307_v38 = vsel %vm1935_vm9, %v5666_v54, %v3966_v30  ;;  %vm5915_vm7 = vmmov %vm5914_vm2 }
 0x9aa   : > { %v3962_v12 = vunpack.i.h.bf16 %v3960_v0  ;;  %v3961_v13 = vunpack.i.l.bf16 %v3960_v0  ;;  %v4058_v5 = vpack.i.bf16 %v3967_v39, %v2308_v63 }
 0x9ab   : > { %4039 = vrot.lane.b32.xlu1 %v4038_v28, %s5908_s8  ;;  %4034 = vrot.lane.b32.xlu0 %v4033_v55, %s5908_s8 }
 0x9ac   : > { %v2298_v60 = vsel %vm1924_vm10, %v3961_v13, %v3962_v12  ;;  %v2297_v47 = vsel %vm1924_vm10, %v5662_v56, %v3961_v13 }
 0x9ad   : > { %v2314_v42 = vpop.permute.xlu0 %2313  ;;  %v2316_v26 = vpop.permute.xlu1 %2315  ;;  %v4053_v9 = vpack.i.bf16 %v3962_v12, %v2298_v60  ;;  %v4063_v1 = vpack.i.bf16 %v2307_v38, %v2297_v47  ;;  %v3185_v52 = vpack.c.bf16 %v2308_v63, %v2298_v60  ;;  %v3187_v20 = vpack.c.bf16 %v2307_v38, %v2297_v47 }
 0x9ae   : > { %v2318_v21 = vsel %vm1946_vm12, %v2314_v42, %v2316_v26  ;;  %v2317_v50 = vsel %vm1946_vm12, %v5664_v33, %v2314_v42 }
 0x9af   : > { %4049 = vrot.lane.b32.xlu1 %v4048_v2, %s5908_s8  ;;  %4044 = vrot.lane.b32.xlu0 %v4043_v35, %s5908_s8 }
 0x9b1   : > { %v2272_v51 = vpop.permute.xlu0 %2271  ;;  %v5695_v22 = vpop.permute.xlu1 %2351 }
 0x9b3   : > { %4059 = vrot.lane.b32.xlu1 %v4058_v5, %s5908_s8  ;;  %4054 = vrot.lane.b32.xlu0 %v4053_v9, %s5908_s8 }
 0x9b5   : > { %v2322_v58 = vpop.permute.xlu0 %2321  ;;  %v5707_v40 = vpop.permute.xlu1 %2371 }
 0x9b7   : > { %2449 = vrot.lane.b32.xlu1 %v2318_v21, %s5908_s8  ;;  %4064 = vrot.lane.b32.xlu0 %v4063_v1, %s5908_s8 }
 0x9b9   : > { %v2342_v41 = vpop.permute.xlu0 %2341  ;;  %v3970_v56 = vpop.permute.xlu1 %3969 }
 0x9ba   : > { %v3972_v23 = vunpack.i.h.bf16 %v3970_v56  ;;  %v3971_v14 = vunpack.i.l.bf16 %v3970_v56 }
 0x9bb   : > { %2447 = vrot.lane.b32.xlu1 %v2317_v50, %s5908_s8  ;;  %2451 = vrot.lane.b32.xlu0 %v2316_v26, %s5908_s8 }
 0x9bc   : > { %v2277_v54 = vsel %vm373_vm13, %v2272_v51, %v3971_v14  ;;  %v2278_v48 = vsel %vm373_vm13, %v3971_v14, %v3972_v23  ;;  %vm5912_vm13 = vcmask 850944  }
 0x9bd   : > { %v3183_v59 = vpack.c.bf16 %v2287_v45, %v2277_v54  ;;  %v2362_v17 = vpop.permute.xlu0 %2361  ;;  %v3975_v3 = vpop.permute.xlu1 %3974  ;;  %v3181_v34 = vpack.c.bf16 %v2288_v18, %v2278_v48  ;;  %vm5913_vm3 = vmmov %vm5912_vm13 }
 0x9be   : > { %v3977_v62 = vunpack.i.h.bf16 %v3975_v3  ;;  %v3976_v33 = vunpack.i.l.bf16 %v3975_v3 }
 0x9bf   : > { %2496 = vperm.xlu0 %3932, %v2759_v43   ;;  %3182 = vmatprep.subr.bf16.mxu1 %v3181_v34 }
 0x9c0   : > { %3184 = vmatpush1.bf16.msra.mxu1 %v3183_v59  ;;  %v2328_v19 = vsel %vm5910_vm5, %v3976_v33, %v3977_v62  ;;  %v2327_v29 = vsel %vm5911_vm6, %v2322_v58, %v3976_v33 }
 0x9c1   : > { %v2382_v11 = vpop.permute.xlu0 %2381  ;;  %v3980_v6 = vpop.permute.xlu1 %3979  ;;  %3186 = vmatprep.subr.bf16.mxu1 %v3185_v52  ;;  %v3189_v15 = vpack.c.bf16 %v2328_v19, %v2318_v21  ;;  %v3191_v44 = vpack.c.bf16 %v2327_v29, %v2317_v50 }
 0x9c2   : > { %v3982_v37 = vunpack.i.h.bf16 %v3980_v6  ;;  %v3981_v4 = vunpack.i.l.bf16 %v3980_v6 }
 0x9c4   : > { %3188 = vmatpush1.bf16.msra.mxu1 %v3187_v20  ;;  %v2337_v61 = vsel %vm5912_vm13, %v5684_v31, %v3981_v4  ;;  %v2338_v27 = vsel %vm5913_vm3, %v3981_v4, %v3982_v37 }
 0x9c5   : > { %v3985_v8 = vpop.permute.xlu0 %3984  ;;  %v3990_v36 = vpop.permute.xlu1 %3989  ;;  %3190 = vmatprep.subr.bf16.mxu1 %v3189_v15 }
 0x9c6   : > { %v3987_v46 = vunpack.i.h.bf16 %v3985_v8  ;;  %v3986_v10 = vunpack.i.l.bf16 %v3985_v8  ;;  %v3992_v32 = vunpack.i.h.bf16 %v3990_v36  ;;  %v3991_v25 = vunpack.i.l.bf16 %v3990_v36 }
 0x9c8   : > { %v2347_v24 = vsel %vm1978_vm4, %v2342_v41, %v3986_v10  ;;  %3192 = vmatpush1.bf16.msra.mxu1 %v3191_v44  ;;  %v2348_v53 = vsel %vm1978_vm4, %v3986_v10, %v3987_v46  ;;  %v2357_v0 = vsel %vm1989_vm14, %v5695_v22, %v3991_v25  ;;  %v2358_v18 = vsel %vm1989_vm14, %v3991_v25, %v3992_v32 }
 0x9c9   : > { %v3195_v7 = vpack.c.bf16 %v2347_v24, %v2337_v61  ;;  %v3995_v57 = vpop.permute.xlu0 %3994  ;;  %v4000_v55 = vpop.permute.xlu1 %3999  ;;  %v3193_v28 = vpack.c.bf16 %v2348_v53, %v2338_v27 }
 0x9ca   : > { %v3997_v39 = vunpack.i.h.bf16 %v3995_v57  ;;  %v3996_v30 = vunpack.i.l.bf16 %v3995_v57  ;;  %v4002_v45 = vunpack.i.h.bf16 %v4000_v55  ;;  %v4001_v12 = vunpack.i.l.bf16 %v4000_v55 }
 0x9cb   : > { %3194 = vmatprep.subr.bf16.mxu1 %v3193_v28 }
 0x9cc   : > { %v2367_v31 = vsel %vm5914_vm2, %v2362_v17, %v3996_v30  ;;  %3196 = vmatpush1.bf16.msra.mxu1 %v3195_v7  ;;  %v2368_v13 = vsel %vm5915_vm7, %v3996_v30, %v3997_v39  ;;  %v2377_v63 = vsel %vm2011_vm15, %v5707_v40, %v4001_v12  ;;  %v2378_v5 = vsel %vm2011_vm15, %v4001_v12, %v4002_v45 }
 0x9cd   : > { %v3199_v16 = vpack.c.bf16 %v2367_v31, %v2357_v0  ;;  %v4005_v35 = vpop.permute.xlu0 %4004  ;;  %v3197_v2 = vpack.c.bf16 %v2368_v13, %v2358_v18  ;;  %v4010_v47 = vpop.permute.xlu1 %4009 }
 0x9ce   : > { %v4007_v42 = vunpack.i.h.bf16 %v4005_v35  ;;  %v4006_v26 = vunpack.i.l.bf16 %v4005_v35  ;;  %v4012_v49 = vunpack.i.h.bf16 %v4010_v47  ;;  %v4011_v38 = vunpack.i.l.bf16 %v4010_v47 }
 0x9cf   : > { %3198 = vmatprep.subr.bf16.mxu1 %v3197_v2 }
 0x9d0   : > { %v2387_v60 = vsel %vm2022_vm11, %v2382_v11, %v4006_v26  ;;  %3200 = vmatpush1.bf16.msra.mxu1 %v3199_v16  ;;  %v2388_v9 = vsel %vm2022_vm11, %v4006_v26, %v4007_v42  ;;  %v2454_v14 = vsel %vm2090_vm0, %v4011_v38, %v4012_v49  ;;  %v2575_v49 = vld [vmem:[%s5868_s6] sm:$0xff] }
 0x9d1   : > { %v3203_v51 = vpack.c.bf16 %v2387_v60, %v2377_v63  ;;  %v3201_v22 = vpack.c.bf16 %v2388_v9, %v2378_v5 }
 0x9d3   : > { %3202 = vmatprep.subr.bf16.mxu1 %v3201_v22  ;;  %v2592_v22 = vld [vmem:[%s5868_s6 + $0x88] sm:$0xff] }
 0x9d4   : > { %3204 = vmatpush1.bf16.msra.mxu1 %v3203_v51  ;;  %v2591_v51 = vld [vmem:[%s5868_s6 + $0x80] sm:$0xff] }
 0xa15   : > { %v4015_v1 = vpop.permute.xlu0 %4014  ;;  %v4020_v58 = vpop.permute.xlu1 %4019 }
 0xa16   : > { %v4017_v21 = vunpack.i.h.bf16 %v4015_v1  ;;  %v4016_v41 = vunpack.i.l.bf16 %v4015_v1  ;;  %v4022_v56 = vunpack.i.h.bf16 %v4020_v58  ;;  %v4021_v40 = vunpack.i.l.bf16 %v4020_v58  ;;  %v2593_v58 = vld [vmem:[%s5868_s6 + $0x90] sm:$0xff] }
 0xa18   : > { %v2455_v50 = vsel %vm2090_vm0, %v4022_v56, %v4016_v41  ;;  %v2453_v23 = vsel %vm2090_vm0, %v4021_v40, %v4011_v38  ;;  %v2456_v54 = vsel %vm2090_vm0, %v4016_v41, %v4017_v21  ;;  %v2576_v38 = vld [vmem:[%s5868_s6 + $0x8] sm:$0xff]  ;;  %v2594_v21 = vld [vmem:[%s5868_s6 + $0x98] sm:$0xff]  ;;  %v3221_v41 = vpack.c.bf16 %v2592_v22, %v2591_v51  ;;  %v2757_v56 = vld [vmem:[%s5863_s1 + $0x30] sm:$0xff] }
 0xa19   : > { %v3207_v43 = vpack.c.bf16 %v2455_v50, %v2453_v23  ;;  %v4025_v48 = vpop.permute.xlu0 %4024  ;;  %v4030_v59 = vpop.permute.xlu1 %4029  ;;  %v3205_v17 = vpack.c.bf16 %v2456_v54, %v2454_v14  ;;  %v3223_v40 = vpack.c.bf16 %v2576_v38, %v2575_v49  ;;  %v3225_v23 = vpack.c.bf16 %v2594_v21, %v2593_v58  ;;  %v2577_v14 = vld [vmem:[%s5868_s6 + $0x10] sm:$0xff]  ;;  %v2578_v54 = vld [vmem:[%s5868_s6 + $0x18] sm:$0xff] }
 0xa1a   : > { %v4027_v3 = vunpack.i.h.bf16 %v4025_v48  ;;  %v4026_v34 = vunpack.i.l.bf16 %v4025_v48  ;;  %v4032_v62 = vunpack.i.h.bf16 %v4030_v59  ;;  %v4031_v33 = vunpack.i.l.bf16 %v4030_v59  ;;  %v2596_v48 = vld [vmem:[%s5868_s6 + $0xa8] sm:$0xff] }
 0xa1b   : > { %3206 = vmatprep.subr.bf16.mxu1 %v3205_v17  ;;  %v3227_v59 = vpack.c.bf16 %v2578_v54, %v2577_v14 }
 0xa1c   : > { %3208 = vmatpush1.bf16.msra.mxu1 %v3207_v43  ;;  %v2458_v52 = vsel %vm2090_vm0, %v4026_v34, %v4027_v3  ;;  %v2460_v19 = vsel %vm2090_vm0, %v4031_v33, %v4032_v62  ;;  %v2595_v43 = vld [vmem:[%s5868_s6 + $0xa0] sm:$0xff]  ;;  %v2597_v62 = vld [vmem:[%s5868_s6 + $0xb0] sm:$0xff] }
 0xa1d   : > { %v4040_v11 = vpop.permute.xlu1 %4039  ;;  %v4035_v6 = vpop.permute.xlu0 %4034  ;;  %v3209_v20 = vpack.c.bf16 %v2460_v19, %v2458_v52  ;;  %v3229_v17 = vpack.c.bf16 %v2596_v48, %v2595_v43  ;;  %v2579_v3 = vld [vmem:[%s5868_s6 + $0x20] sm:$0xff] }
 0xa1e   : > { %v4037_v29 = vunpack.i.h.bf16 %v4035_v6  ;;  %v4036_v15 = vunpack.i.l.bf16 %v4035_v6  ;;  %v4042_v37 = vunpack.i.h.bf16 %v4040_v11  ;;  %v4041_v4 = vunpack.i.l.bf16 %v4040_v11  ;;  %v2581_v11 = vld [vmem:[%s5868_s6 + $0x30] sm:$0xff]  ;;  %v2582_v6 = vld [vmem:[%s5868_s6 + $0x38] sm:$0xff] }
 0xa1f   : > { %3210 = vmatprep.subr.bf16.mxu1 %v3209_v20  ;;  %v2599_v20 = vld [vmem:[%s5868_s6 + $0xc0] sm:$0xff] }
 0xa20   : > { %v2459_v8 = vsel %vm2090_vm0, %v4037_v29, %v4031_v33  ;;  %v2457_v36 = vsel %vm2090_vm0, %v4036_v15, %v4026_v34  ;;  %v2462_v7 = vsel %vm2090_vm0, %v4041_v4, %v4042_v37  ;;  %v2580_v34 = vld [vmem:[%s5868_s6 + $0x28] sm:$0xff]  ;;  %v2598_v33 = vld [vmem:[%s5868_s6 + $0xb8] sm:$0xff]  ;;  %v3235_v15 = vpack.c.bf16 %v2582_v6, %v2581_v11 }
 0xa21   : > { %v3211_v44 = vpack.c.bf16 %v2459_v8, %v2457_v36  ;;  %v4050_v46 = vpop.permute.xlu1 %4049  ;;  %v4045_v10 = vpop.permute.xlu0 %4044  ;;  %v3231_v52 = vpack.c.bf16 %v2580_v34, %v2579_v3  ;;  %v3233_v19 = vpack.c.bf16 %v2598_v33, %v2597_v62  ;;  %v2600_v29 = vld [vmem:[%s5868_s6 + $0xc8] sm:$0xff]  ;;  %v2601_v36 = vld [vmem:[%s5868_s6 + $0xd0] sm:$0xff] }
 0xa22   : > { %v4052_v32 = vunpack.i.h.bf16 %v4050_v46  ;;  %v4051_v25 = vunpack.i.l.bf16 %v4050_v46  ;;  %v4047_v61 = vunpack.i.h.bf16 %v4045_v10  ;;  %v4046_v24 = vunpack.i.l.bf16 %v4045_v10  ;;  %v2584_v8 = vld [vmem:[%s5868_s6 + $0x48] sm:$0xff] }
 0xa23   : > { %3212 = vmatpush1.bf16.msra.mxu1 %v3211_v44  ;;  %v3237_v37 = vpack.c.bf16 %v2600_v29, %v2599_v20  ;;  %v2602_v44 = vld [vmem:[%s5868_s6 + $0xd8] sm:$0xff] }
 0xa24   : > { %v2461_v27 = vsel %vm2090_vm0, %v4051_v25, %v4041_v4  ;;  %v2463_v53 = vsel %vm2090_vm0, %v4052_v32, %v4046_v24  ;;  %v2464_v57 = vsel %vm2090_vm0, %v4046_v24, %v4047_v61  ;;  %v2583_v4 = vld [vmem:[%s5868_s6 + $0x40] sm:$0xff]  ;;  %v3241_v10 = vpack.c.bf16 %v2602_v44, %v2601_v36  ;;  %v2585_v32 = vld [vmem:[%s5868_s6 + $0x50] sm:$0xff]  ;;  %v2586_v25 = vld [vmem:[%s5868_s6 + $0x58] sm:$0xff] }
 0xa25   : > { %v3215_v55 = vpack.c.bf16 %v2463_v53, %v2461_v27  ;;  %v4060_v28 = vpop.permute.xlu1 %4059  ;;  %v4055_v39 = vpop.permute.xlu0 %4054  ;;  %v3213_v30 = vpack.c.bf16 %v2464_v57, %v2462_v7  ;;  %v3239_v46 = vpack.c.bf16 %v2584_v8, %v2583_v4  ;;  %v2603_v61 = vld [vmem:[%s5868_s6 + $0xe0] sm:$0xff]  ;;  %v2604_v24 = vld [vmem:[%s5868_s6 + $0xe8] sm:$0xff]  ;;  %v3243_v27 = vpack.c.bf16 %v2586_v25, %v2585_v32 }
 0xa26   : > { %v4062_v0 = vunpack.i.h.bf16 %v4060_v28  ;;  %v4061_v18 = vunpack.i.l.bf16 %v4060_v28  ;;  %v4057_v31 = vunpack.i.h.bf16 %v4055_v39  ;;  %v4056_v45 = vunpack.i.l.bf16 %v4055_v39  ;;  %v2587_v7 = vld [vmem:[%s5868_s6 + $0x60] sm:$0xff]  ;;  %v2588_v57 = vld [vmem:[%s5868_s6 + $0x68] sm:$0xff]  ;;  %v2605_v28 = vld [vmem:[%s5868_s6 + $0xf0] sm:$0xff] }
 0xa27   : > { %3214 = vmatprep.subr.bf16.mxu1 %v3213_v30  ;;  %v3245_v53 = vpack.c.bf16 %v2604_v24, %v2603_v61  ;;  %v2606_v39 = vld [vmem:[%s5868_s6 + $0xf8] sm:$0xff]  ;;  %v2589_v30 = vld [vmem:[%s5868_s6 + $0x70] sm:$0xff] }
 0xa28   : > { %3216 = vmatpush1.bf16.msra.mxu1 %v3215_v55  ;;  %v2466_v12 = vsel %vm2090_vm0, %v4056_v45, %v4057_v31  ;;  %v2468_v13 = vsel %vm2090_vm0, %v4061_v18, %v4062_v0  ;;  %v3247_v55 = vpack.c.bf16 %v2588_v57, %v2587_v7  ;;  %v3249_v0 = vpack.c.bf16 %v2606_v39, %v2605_v28 }
 0xa29   : > { %v2450_v16 = vpop.permute.xlu1 %2449  ;;  %v4065_v35 = vpop.permute.xlu0 %4064  ;;  %v3217_v2 = vpack.c.bf16 %v2468_v13, %v2466_v12 }
 0xa2a   : > { %v4067_v42 = vunpack.i.h.bf16 %v4065_v35  ;;  %v4066_v26 = vunpack.i.l.bf16 %v4065_v35 }
 0xa2b   : > { %3218 = vmatprep.subr.bf16.mxu1 %v3217_v2 }
 0xa2c   : > { %v2467_v63 = vsel %vm2090_vm0, %v4067_v42, %v4061_v18  ;;  %v2465_v60 = vsel %vm2090_vm0, %v4066_v26, %v4056_v45  ;;  %v2590_v18 = vld [vmem:[%s5868_s6 + $0x78] sm:$0xff] }
 0xa2d   : > { %v3219_v5 = vpack.c.bf16 %v2467_v63, %v2465_v60  ;;  %v2452_v9 = vpop.permute.xlu0 %2451  ;;  %v2448_v1 = vpop.permute.xlu1 %2447  ;;  %v3251_v31 = vpack.c.bf16 %v2590_v18, %v2589_v30 }
 0xa2e   : > { %v2470_v47 = vsel %vm2090_vm0, %v2450_v16, %v2452_v9  ;;  %v2469_v50 = vsel %vm2090_vm0, %v2448_v1, %v2450_v16 }
 0xa2f   : > { %3220 = vmatpush1.bf16.msra.mxu1 %v3219_v5 }
 0xa30   : > { %2550 = vmatprep.subr.mxu1 %v2470_v47 }
 0xa33   : > { %2551 = vmatpush1.msra.mxu1 %v2469_v50 }
 0xa34   : > { %2567 = vmatmul.mubr.f32.vlgmr.msra.gmra.mrb[6].mxu1 %v2757_v56  ;;  %3222 = vmatprep.subr.bf16.mxu1 %v3221_v41 }
 0xa35   : > { %3224 = vmatpush3.bf16.msra.mxu1 %v3223_v40 }
 0xa36   : > { %3226 = vmatprep.subr.bf16.mxu1 %v3225_v23 }
 0xa39   : > { %3228 = vmatpush3.bf16.msra.mxu1 %v3227_v59 }
 0xa3a   : > { %3230 = vmatprep.subr.bf16.mxu1 %v3229_v17 }
 0xa3d   : > { %3232 = vmatpush3.bf16.msra.mxu1 %v3231_v52 }
 0xa3e   : > { %3234 = vmatprep.subr.bf16.mxu1 %v3233_v19  ;;  %v2497_v45 = vpop.permute.xlu0 %2496 }
 0xa41   : > { %3236 = vmatpush3.bf16.msra.mxu1 %v3235_v15 }
 0xa42   : > { %3238 = vmatprep.subr.bf16.mxu1 %v3237_v37 }
 0xa45   : > { %3240 = vmatpush3.bf16.msra.mxu1 %v3239_v46 }
 0xa46   : > { %3242 = vmatprep.subr.bf16.mxu1 %v3241_v10 }
 0xa49   : > { %3244 = vmatpush3.bf16.msra.mxu1 %v3243_v27 }
 0xa4a   : > { %3246 = vmatprep.subr.bf16.mxu1 %v3245_v53 }
 0xa4d   : > { %3248 = vmatpush3.bf16.msra.mxu1 %v3247_v55 }
 0xa4e   : > { %3250 = vmatprep.subr.bf16.mxu1 %v3249_v0 }
 0xa51   : > { %3252 = vmatpush3.bf16.msra.mxu1 %v3251_v31 }
 0xb07   : > { %v2568_v12 = vpop.f32.mrb[6].mxu1 }
 0xb08   : > { %v2569_v13 = vadd.f32 %v2568_v12, %v2497_v45  ;;  %v2570_v16 = vpop.f32.mrb[7].mxu1 }
 0xb09   : > { %v2571_v35 = vadd.f32 %v2570_v16, %v2497_v45 }
 0xb0a   : > { %v2573_v42 = vmax.f32 %v2569_v13, 0.0 }
 0xb0b   : > { %v2574_v2 = vmax.f32 %v2571_v35, 0.0 }
 0xb0d   : > { %2671 = vmatprep.mubr.f32.mxu1 %v2574_v2 }
 0xb0e   : > { %2672 = vmatmul.mubr.f32.vlgmr.msra.gmra.mrb[8].mxu1 %v2573_v42 }
 0xbe1   : > { %v2798_v26 = vpop.f32.mrb[8].mxu1 }
 0xbe2   : > { %v2799_v63 = vpop.f32.mrb[9].mxu1 }
 0xbe3   : > { %v2800_v60 = vadd.f32 %v2799_v63, %v2798_v26 }
 0xbe5   : > { %2678 = vst.msk [vmem:[%s276_s28] sm:$0x7] %vm2677_vm8, %v2800_v60 }
 0xbe6 PF: > { %s17_s24 = sadd.s32 1, %s4074_s24  }
 0xbe7   : > { %p14_p4 = scmp.ge.s32.totalorder %s17_s24, 4  }
 0xbe9   :  { %16 = sbr.rel (!%p14_p4) target bundleno = 1 (0x1), region = 84 }

</bundles_post_ra>
